<compile_context>
chip_gen: v5e
topology: v5e:2x2
jax: 0.10.0
libtpu: 0.0.40
codegen_flags: <defaults>
</compile_context>

<pallas_src>
import functools

import jax
import jax.numpy as jnp
from jax.experimental import pallas as pl
from jax.experimental.pallas import tpu as pltpu

LN_EPS = 1e-5
LANE = 128


def _round_up(v, m):
    return (v + m - 1) // m * m


# ------------------------------ Pallas kernel ------------------------------

def _convt_ln_relu_kernel(cols_ref, w_ref, b_ref, g_ref, beta_ref, o_ref, *,
                          inv_count, eps):
    """Fused (cols @ W + b) -> per-sample LayerNorm(C,H,W) -> affine -> ReLU.

    cols_ref: (1, M, Kp)  bf16   im2col columns of one sample
    w_ref:    (Kp, Cp)    bf16   conv-transpose weight as a matmul matrix
    b_ref:    (1, Cp)     f32    conv bias       (0 in padded lanes)
    g_ref:    (1, Cp)     f32    LayerNorm gamma (0 in padded lanes)
    beta_ref: (1, Cp)     f32    LayerNorm beta  (0 in padded lanes)
    o_ref:    (1, M, Cp)  f32
    """
    x = cols_ref[0]                                             # (M, Kp) bf16
    y = jnp.dot(x, w_ref[...], preferred_element_type=jnp.float32)
    y = y + b_ref[...]                                          # (M, Cp) f32

    # One-pass stats; padded lanes are exactly 0 (zero weight cols + zero bias)
    # so they add nothing, and inv_count counts only real elements.
    s = jnp.sum(y)
    ss = jnp.sum(y * y)
    mean = s * inv_count
    var = jnp.maximum(ss * inv_count - mean * mean, 0.0)
    rstd = jax.lax.rsqrt(var + eps)

    out = (y - mean) * rstd * g_ref[...] + beta_ref[...]
    o_ref[0] = jnp.maximum(out, 0.0)                            # ReLU


# ------------------------------- JAX wrapper --------------------------------

def _pad_or_crop(x, lo, hi, axis):
    pads = [(0, 0)] * x.ndim
    pads[axis] = (max(lo, 0), max(hi, 0))
    x = jnp.pad(x, pads)
    start = -min(lo, 0)
    stop = x.shape[axis] + min(hi, 0)
    return jax.lax.slice_in_dim(x, start, stop, axis=axis)


def relu_ins_convtranspose2d(x, params, *, stride, padding, output_padding,
                             eps=LN_EPS):
    """Forward pass.  x: (N, Cin, H, W) float32 -> (N, Cout, Ho, Wo) float32."""
    w = params["w"]          # (Cin, Cout, K, K)  (PyTorch ConvTranspose2d layout)
    b = params["b"]          # (Cout,)
    gamma = params["ln_w"]   # (Cout,)
    beta = params["ln_b"]    # (Cout,)

    n, cin, h, win = x.shape
    cin_w, cout, kh, kw = w.shape
    assert cin_w == cin
    sh = sw = int(stride)
    ph = pw = int(padding)
    oph = opw = int(output_padding)

    # --- JAX glue: transposed conv == stride-1 cross-correlation on the -----
    # --- zero-dilated, (K-1-p)-padded (+output_padding) input ---------------
    xq = jnp.transpose(x, (0, 2, 3, 1)).astype(jnp.float32)      # NHWC
    hd, wd = (h - 1) * sh + 1, (win - 1) * sw + 1
    xd = jnp.zeros((n, hd, wd, cin), jnp.float32).at[:, ::sh, ::sw, :].set(xq)
    xd = _pad_or_crop(xd, kh - 1 - ph, kh - 1 - ph + oph, axis=1)
    xd = _pad_or_crop(xd, kw - 1 - pw, kw - 1 - pw + opw, axis=2)
    ho = (h - 1) * sh - 2 * ph + kh + oph
    wo = (win - 1) * sw - 2 * pw + kw + opw

    # im2col (stride 1, tap-major then channel) -> (N, Ho*Wo, K*K*Cin)
    # TODO(synk): for very large Ho*Wo, tile the spatial axis and do a
    # two-pass (stats then normalize) grid instead of one block per sample.
    taps = [xd[:, i:i + ho, j:j + wo, :] for i in range(kh) for j in range(kw)]
    cols = jnp.concatenate(taps, axis=-1).reshape(n, ho * wo, kh * kw * cin)

    # Matmul weight = channel-transposed, spatially-flipped kernel.
    w2 = jnp.transpose(w, (2, 3, 0, 1))[::-1, ::-1].reshape(kh * kw * cin, cout)

    # Lane-dense zero padding of contraction dim and Cout to multiples of 128.
    kk = kh * kw * cin
    kp = _round_up(kk, LANE)
    cp = _round_up(cout, LANE)
    m = ho * wo
    cols = jnp.pad(cols, ((0, 0), (0, 0), (0, kp - kk))).astype(jnp.bfloat16)
    w2 = jnp.pad(w2, ((0, kp - kk), (0, cp - cout))).astype(jnp.bfloat16)
    b2 = jnp.pad(b, (0, cp - cout)).reshape(1, cp).astype(jnp.float32)
    g2 = jnp.pad(gamma, (0, cp - cout)).reshape(1, cp).astype(jnp.float32)
    be2 = jnp.pad(beta, (0, cp - cout)).reshape(1, cp).astype(jnp.float32)

    inv_count = 1.0 / float(cout * ho * wo)    # real (C,H,W) elements / sample

    # VMEM budget from actual block sizes; never request all of v7x's 64 MiB.
    block_bytes = m * kp * 2 + kp * cp * 2 + 3 * cp * 4 + m * cp * 4
    vmem_limit = int(min(max(3 * block_bytes + (4 << 20), 16 << 20), 48 << 20))

    kern = functools.partial(_convt_ln_relu_kernel,
                             inv_count=inv_count, eps=float(eps))
    out = pl.pallas_call(
        kern,
        out_shape=jax.ShapeDtypeStruct((n, m, cp), jnp.float32),
        grid=(n,),
        in_specs=[
            pl.BlockSpec((1, m, kp), lambda i: (i, 0, 0)),   # per-sample cols
            pl.BlockSpec((kp, cp), lambda i: (0, 0)),        # weight (resident)
            pl.BlockSpec((1, cp), lambda i: (0, 0)),         # bias
            pl.BlockSpec((1, cp), lambda i: (0, 0)),         # gamma
            pl.BlockSpec((1, cp), lambda i: (0, 0)),         # beta
        ],
        out_specs=pl.BlockSpec((1, m, cp), lambda i: (i, 0, 0)),
        compiler_params=pltpu.CompilerParams(
            dimension_semantics=("parallel",),
            vmem_limit_bytes=vmem_limit),
    )(cols, w2, b2, g2, be2)

    y = out[:, :, :cout].reshape(n, ho, wo, cout)
    return jnp.transpose(y, (0, 3, 1, 2))                       # NCHW


# --------------------------- Parameter initialization -----------------------

def init_params(key, n_in, n_out, kernel_size):
    # gaussian_weights_init: Conv* weight ~ N(0, 0.02); bias keeps default init.
    kw_, kb_ = jax.random.split(key)
    w = 0.02 * jax.random.normal(
        kw_, (n_in, n_out, kernel_size, kernel_size), jnp.float32)
    bound = 1.0 / float(n_in * kernel_size * kernel_size) ** 0.5
    b = jax.random.uniform(kb_, (n_out,), jnp.float32, -bound, bound)
    return {
        "w": w,
        "b": b,
        "ln_w": jnp.ones((n_out,), jnp.float32),   # LayerNorm weight (n_out,1,1)
        "ln_b": jnp.zeros((n_out,), jnp.float32),  # LayerNorm bias   (n_out,1,1)
    }


# ----------------------------------- main -----------------------------------

if __name__ == "__main__":
    key = jax.random.PRNGKey(0)
    kp_, kx_ = jax.random.split(key)

    # ReLUINSConvTranspose2d(n_in=4, n_out=8, kernel_size=3, stride=2,
    #                        padding=1, output_padding=1)
    n_in, n_out, ksize, stride, padding, out_padding = 4, 8, 3, 2, 1, 1
    N, H, W = 2, 16, 16

    params = init_params(kp_, n_in, n_out, ksize)
    x = jax.random.normal(kx_, (N, n_in, H, W), jnp.float32)

    fwd = jax.jit(functools.partial(
        relu_ins_convtranspose2d,
        stride=stride, padding=padding, output_padding=out_padding))
    y = fwd(x, params)
    jax.block_until_ready(y)

    Hout = (H - 1) * stride - 2 * padding + ksize + out_padding
    Wout = (W - 1) * stride - 2 * padding + ksize + out_padding
    assert y.shape == (N, n_out, Hout, Wout), y.shape
    assert y.dtype == jnp.float32
    assert bool(jnp.all(jnp.isfinite(y)))
    assert bool(jnp.all(y >= 0))   # ReLU output is non-negative
    print("KERNEL_OK")
</pallas_src>

<mosaic_0001>
module attributes {stable_mosaic.version = 11 : i64} {
  func.func @_convt_ln_relu_kernel(%arg0: i32, %arg1: memref<1x1024x128xbf16, #tpu.memory_space<vmem>>, %arg2: memref<128x128xbf16, #tpu.memory_space<vmem>>, %arg3: memref<1x128xf32, #tpu.memory_space<vmem>>, %arg4: memref<1x128xf32, #tpu.memory_space<vmem>>, %arg5: memref<1x128xf32, #tpu.memory_space<vmem>>, %arg6: memref<1x1024x128xf32, #tpu.memory_space<vmem>>) attributes {dimension_semantics = [#tpu.dimension_semantics<parallel>], iteration_bounds = array<i64: 2>, scalar_prefetch = 0 : i64, scratch_operands = 0 : i64, tpu.core_type = #tpu.core_type<tc>, window_params = [{transform_indices = @transform_0, window_bounds = array<i64: 1, 1024, 128>}, {pipeline_mode = #tpu.pipeline_mode<synchronous>, transform_indices = @transform_1, window_bounds = array<i64: 128, 128>}, {pipeline_mode = #tpu.pipeline_mode<synchronous>, transform_indices = @transform_2, window_bounds = array<i64: 1, 128>}, {pipeline_mode = #tpu.pipeline_mode<synchronous>, transform_indices = @transform_3, window_bounds = array<i64: 1, 128>}, {pipeline_mode = #tpu.pipeline_mode<synchronous>, transform_indices = @transform_4, window_bounds = array<i64: 1, 128>}, {transform_indices = @transform_5, window_bounds = array<i64: 1, 1024, 128>}]} {
    %c0 = arith.constant 0 : index
    %c0_0 = arith.constant 0 : index
    %c0_1 = arith.constant 0 : index
    %0 = vector.load %arg1[%c0, %c0_0, %c0_1] : memref<1x1024x128xbf16, #tpu.memory_space<vmem>>, vector<1x1024x128xbf16>
    %1 = vector.shape_cast %0 : vector<1x1024x128xbf16> to vector<1024x128xbf16>
    %c0_2 = arith.constant 0 : index
    %c0_3 = arith.constant 0 : index
    %2 = vector.load %arg2[%c0_2, %c0_3] : memref<128x128xbf16, #tpu.memory_space<vmem>>, vector<128x128xbf16>
    %cst = arith.constant dense<0.000000e+00> : vector<1024x128xf32>
    %3 = tpu.matmul %1, %2, %cst {dimension_numbers = #tpu.dot_dimension_numbers<[1], [0], [0], [1], [0, 0, 1, 1], [], []>} : vector<1024x128xbf16>, vector<128x128xbf16>, vector<1024x128xf32> -> vector<1024x128xf32>
    %c0_4 = arith.constant 0 : index
    %c0_5 = arith.constant 0 : index
    %4 = vector.load %arg3[%c0_4, %c0_5] : memref<1x128xf32, #tpu.memory_space<vmem>>, vector<1x128xf32>
    %5 = vector.broadcast %4 : vector<1x128xf32> to vector<1024x128xf32>
    %6 = arith.addf %3, %5 : vector<1024x128xf32>
    %7 = vector.shape_cast %6 : vector<1024x128xf32> to vector<1x1024x128xf32>
    %cst_6 = arith.constant dense<0.000000e+00> : vector<1xf32>
    %8 = vector.multi_reduction <add>, %7, %cst_6 [1, 2] : vector<1x1024x128xf32> to vector<1xf32>
    %9 = vector.shape_cast %8 : vector<1xf32> to vector<1x1x1xf32>
    %10 = vector.extract %9[0, 0, 0] : f32 from vector<1x1x1xf32>
    %11 = arith.mulf %6, %6 : vector<1024x128xf32>
    %12 = vector.shape_cast %11 : vector<1024x128xf32> to vector<1x1024x128xf32>
    %cst_7 = arith.constant dense<0.000000e+00> : vector<1xf32>
    %13 = vector.multi_reduction <add>, %12, %cst_7 [1, 2] : vector<1x1024x128xf32> to vector<1xf32>
    %14 = vector.shape_cast %13 : vector<1xf32> to vector<1x1x1xf32>
    %15 = vector.extract %14[0, 0, 0] : f32 from vector<1x1x1xf32>
    %cst_8 = arith.constant 1.22070313E-4 : f32
    %16 = arith.mulf %10, %cst_8 : f32
    %cst_9 = arith.constant 1.22070313E-4 : f32
    %17 = arith.mulf %15, %cst_9 : f32
    %18 = arith.mulf %16, %16 : f32
    %19 = arith.subf %17, %18 : f32
    %cst_10 = arith.constant 0.000000e+00 : f32
    %20 = arith.maximumf %19, %cst_10 : f32
    %cst_11 = arith.constant 9.99999974E-6 : f32
    %21 = arith.addf %20, %cst_11 : f32
    %22 = math.rsqrt %21 : f32
    %23 = vector.broadcast %16 : f32 to vector<1024x128xf32>
    %24 = arith.subf %6, %23 : vector<1024x128xf32>
    %25 = vector.broadcast %22 : f32 to vector<1024x128xf32>
    %26 = arith.mulf %24, %25 : vector<1024x128xf32>
    %c0_12 = arith.constant 0 : index
    %c0_13 = arith.constant 0 : index
    %27 = vector.load %arg4[%c0_12, %c0_13] : memref<1x128xf32, #tpu.memory_space<vmem>>, vector<1x128xf32>
    %28 = vector.broadcast %27 : vector<1x128xf32> to vector<1024x128xf32>
    %29 = arith.mulf %26, %28 : vector<1024x128xf32>
    %c0_14 = arith.constant 0 : index
    %c0_15 = arith.constant 0 : index
    %30 = vector.load %arg5[%c0_14, %c0_15] : memref<1x128xf32, #tpu.memory_space<vmem>>, vector<1x128xf32>
    %31 = vector.broadcast %30 : vector<1x128xf32> to vector<1024x128xf32>
    %32 = arith.addf %29, %31 : vector<1024x128xf32>
    %cst_16 = arith.constant 0.000000e+00 : f32
    %33 = vector.broadcast %cst_16 : f32 to vector<1024x128xf32>
    %34 = arith.maximumf %32, %33 : vector<1024x128xf32>
    %c0_17 = arith.constant 0 : index
    %c0_18 = arith.constant 0 : index
    %c0_19 = arith.constant 0 : index
    %35 = vector.load %arg6[%c0_17, %c0_18, %c0_19] : memref<1x1024x128xf32, #tpu.memory_space<vmem>>, vector<1x1024x128xf32>
    %36 = vector.shape_cast %35 : vector<1x1024x128xf32> to vector<1024x128xf32>
    %37 = vector.shape_cast %34 : vector<1024x128xf32> to vector<1x1024x128xf32>
    tpu.vector_store %arg6[%c0_17, %c0_18, %c0_19], %37 {strides = array<i32>} : memref<1x1024x128xf32, #tpu.memory_space<vmem>>, vector<1x1024x128xf32>,
    return
  }
  func.func @transform_0(%arg0: i32) -> (i32, i32, i32) {
    %c0_i32 = arith.constant 0 : i32
    %c0_i32_0 = arith.constant 0 : i32
    %c0_i32_1 = arith.constant 0 : i32
    return %arg0, %c0_i32, %c0_i32_0 : i32, i32, i32
  }
  func.func @transform_1(%arg0: i32) -> (i32, i32) {
    %c0_i32 = arith.constant 0 : i32
    %c0_i32_0 = arith.constant 0 : i32
    %c0_i32_1 = arith.constant 0 : i32
    return %c0_i32, %c0_i32_0 : i32, i32
  }
  func.func @transform_2(%arg0: i32) -> (i32, i32) {
    %c0_i32 = arith.constant 0 : i32
    %c0_i32_0 = arith.constant 0 : i32
    %c0_i32_1 = arith.constant 0 : i32
    return %c0_i32, %c0_i32_0 : i32, i32
  }
  func.func @transform_3(%arg0: i32) -> (i32, i32) {
    %c0_i32 = arith.constant 0 : i32
    %c0_i32_0 = arith.constant 0 : i32
    %c0_i32_1 = arith.constant 0 : i32
    return %c0_i32, %c0_i32_0 : i32, i32
  }
  func.func @transform_4(%arg0: i32) -> (i32, i32) {
    %c0_i32 = arith.constant 0 : i32
    %c0_i32_0 = arith.constant 0 : i32
    %c0_i32_1 = arith.constant 0 : i32
    return %c0_i32, %c0_i32_0 : i32, i32
  }
  func.func @transform_5(%arg0: i32) -> (i32, i32, i32) {
    %c0_i32 = arith.constant 0 : i32
    %c0_i32_0 = arith.constant 0 : i32
    %c0_i32_1 = arith.constant 0 : i32
    return %arg0, %c0_i32, %c0_i32_0 : i32, i32, i32
  }
}

</mosaic_0001>

<bundles_post_ra>
// kernel: relu_ins_convtranspose2d.1
= control target key start
LH: loop header
LB: loop body
LE: loop exit
PB: predicated region body
PF: predicated region fallthrough
CT: control target
= control target key end

     0   :  { %s2842_s18 = smov 0   ;;  %s5863_s0 = inlined_call_operand.vmem [shape: bf16[2,1024,128], index: 0, kind: input, shape index: {}]   ;;  %s5864_s1 = inlined_call_operand.vmem [shape: bf16[128,128], index: 1, kind: input, shape index: {}]   ;;  %s5865_s2 = inlined_call_operand.vmem [shape: f32[1,128], index: 2, kind: input, shape index: {}]   ;;  %s5866_s3 = inlined_call_operand.vmem [shape: f32[1,128], index: 3, kind: input, shape index: {}]   ;;  %s5867_s4 = inlined_call_operand.vmem [shape: f32[1,128], index: 4, kind: input, shape index: {}]   ;;  %s5868_s5 = inlined_call_operand.vmem [shape: f32[2,1024,128], index: 5, kind: output, shape index: {}]  }
   0x1 LB: > { %s2385_s19 = sadd.s32 4294967295, %s2809_s18   ;;  %p2389_p0 = scmp.ge.s32.totalorder %s2809_s18, 1  ;;  %s2809_s18 = sphi %s2842_s18, %s15_s18  }
   0x2   : > { %p187_p1 = scmp.lt.s32.totalorder %s2809_s18, 3 }
   0x4   : > { %p188_p2 = pnand %p2389_p0, %p187_p1 }
   0x6   : > { %191 = sbr.rel (%p188_p2) target bundleno = 1149 (0x47d), region = 40 }
   0xb   : > { %v2757_v0 = vld [vmem:[%s5864_s1 + $0x38] sm:$0xff]  ;;  %v2756_v1 = vld [vmem:[%s5864_s1 + $0x30] sm:$0xff]  ;;  %v2755_v2 = vld [vmem:[%s5864_s1 + $0x28] sm:$0xff]  ;;  %p215_p3 = scmp.lt.s32.totalorder %s2385_s19, 1  ;;  %s2811_s27 = smov 0.0  }
   0xc   : > { %805 = vmatpush.bf16.msra.mxu0 %v2757_v0  ;;  %2758 = vmatpush.bf16.msra.mxu1 %v2757_v0  ;;  %v2754_v3 = vld [vmem:[%s5864_s1 + $0x20] sm:$0xff]  ;;  %v2753_v4 = vld [vmem:[%s5864_s1 + $0x18] sm:$0xff]  ;;  %v2752_v5 = vld [vmem:[%s5864_s1 + $0x10] sm:$0xff] }
   0xd   : > { %2759 = vmatpush.bf16.msra.mxu2 %v2757_v0  ;;  %2760 = vmatpush.bf16.msra.mxu3 %v2757_v0  ;;  %s6593_s19 = smov (!%p215_p3, %s2385_s19), 1  ;;  %v2751_v6 = vld [vmem:[%s5864_s1 + $0x8] sm:$0xff]  ;;  %v2750_v7 = vld [vmem:[%s5864_s1] sm:$0xff] }
   0xe   : > { %s2684_s9 = sshll.u32 %s6593_s19, 9  ;;  %s2685_s10 = sshll.u32 %s6593_s19, 10 }
   0xf   : > { %s2884_s14 = scalar_lea.vmem %s5863_s0, %s2684_s9  ;;  %s5333_s12 = scalar_lea.vmem %s5868_s5, %s2685_s10 }
  0x10   : > { %806 = vmatpush.bf16.msra.mxu0 %v2756_v1  ;;  %2761 = vmatpush.bf16.msra.mxu1 %v2756_v1  ;;  %v2686_v8 = vld [vmem:[%s2884_s14] sm:$0xff]  ;;  %v2687_v9 = vld [vmem:[%s2884_s14 + $0x8] sm:$0xff]  ;;  %v2688_v11 = vld [vmem:[%s2884_s14 + $0x10] sm:$0xff] }
  0x11   : > { %2762 = vmatpush.bf16.msra.mxu2 %v2756_v1  ;;  %2763 = vmatpush.bf16.msra.mxu3 %v2756_v1  ;;  %v2702_v10 = vld [vmem:[%s2884_s14 + $0x80] sm:$0xff]  ;;  %v2703_v12 = vld [vmem:[%s2884_s14 + $0x88] sm:$0xff]  ;;  %v2689_v13 = vld [vmem:[%s2884_s14 + $0x18] sm:$0xff] }
  0x12   : > { %v2704_v14 = vld [vmem:[%s2884_s14 + $0x90] sm:$0xff]  ;;  %v2690_v15 = vld [vmem:[%s2884_s14 + $0x20] sm:$0xff]  ;;  %v2705_v16 = vld [vmem:[%s2884_s14 + $0x98] sm:$0xff] }
  0x13   : > { %v2691_v17 = vld [vmem:[%s2884_s14 + $0x28] sm:$0xff]  ;;  %v2718_v18 = vld [vmem:[%s2884_s14 + $0x100] sm:$0xff]  ;;  %v2692_v20 = vld [vmem:[%s2884_s14 + $0x30] sm:$0xff] }
  0x14   : > { %807 = vmatpush.bf16.msra.mxu0 %v2755_v2  ;;  %2764 = vmatpush.bf16.msra.mxu1 %v2755_v2  ;;  %v2706_v19 = vld [vmem:[%s2884_s14 + $0xa0] sm:$0xff]  ;;  %v2719_v21 = vld [vmem:[%s2884_s14 + $0x108] sm:$0xff]  ;;  %v2693_v23 = vld [vmem:[%s2884_s14 + $0x38] sm:$0xff] }
  0x15   : > { %2765 = vmatpush.bf16.msra.mxu2 %v2755_v2  ;;  %2766 = vmatpush.bf16.msra.mxu3 %v2755_v2  ;;  %v2707_v22 = vld [vmem:[%s2884_s14 + $0xa8] sm:$0xff]  ;;  %v2720_v24 = vld [vmem:[%s2884_s14 + $0x110] sm:$0xff]  ;;  %v2694_v26 = vld [vmem:[%s2884_s14 + $0x40] sm:$0xff] }
  0x16   : > { %v2708_v25 = vld [vmem:[%s2884_s14 + $0xb0] sm:$0xff]  ;;  %v2721_v28 = vld [vmem:[%s2884_s14 + $0x118] sm:$0xff]  ;;  %v2695_v31 = vld [vmem:[%s2884_s14 + $0x48] sm:$0xff] }
  0x17   : > { %v2709_v30 = vld [vmem:[%s2884_s14 + $0xb8] sm:$0xff]  ;;  %v2722_v33 = vld [vmem:[%s2884_s14 + $0x120] sm:$0xff]  ;;  %v2696_v38 = vld [vmem:[%s2884_s14 + $0x50] sm:$0xff] }
  0x18   : > { %808 = vmatpush.bf16.msra.mxu0 %v2754_v3  ;;  %2767 = vmatpush.bf16.msra.mxu1 %v2754_v3  ;;  %v2734_v34 = vld [vmem:[%s2884_s14 + $0x180] sm:$0xff]  ;;  %v2723_v41 = vld [vmem:[%s2884_s14 + $0x128] sm:$0xff]  ;;  %v2697_v46 = vld [vmem:[%s2884_s14 + $0x58] sm:$0xff] }
  0x19   : > { %2768 = vmatpush.bf16.msra.mxu2 %v2754_v3  ;;  %2769 = vmatpush.bf16.msra.mxu3 %v2754_v3  ;;  %v2710_v37 = vld [vmem:[%s2884_s14 + $0xc0] sm:$0xff]  ;;  %v2735_v42 = vld [vmem:[%s2884_s14 + $0x188] sm:$0xff]  ;;  %v2724_v49 = vld [vmem:[%s2884_s14 + $0x130] sm:$0xff] }
  0x1a   : > { %v2711_v45 = vld [vmem:[%s2884_s14 + $0xc8] sm:$0xff]  ;;  %v2736_v50 = vld [vmem:[%s2884_s14 + $0x190] sm:$0xff]  ;;  %v2698_v54 = vld [vmem:[%s2884_s14 + $0x60] sm:$0xff] }
  0x1b   : > { %v2712_v53 = vld [vmem:[%s2884_s14 + $0xd0] sm:$0xff]  ;;  %v2725_v57 = vld [vmem:[%s2884_s14 + $0x138] sm:$0xff]  ;;  %v2699_v62 = vld [vmem:[%s2884_s14 + $0x68] sm:$0xff] }
  0x1c   : > { %809 = vmatpush.bf16.msra.mxu0 %v2753_v4  ;;  %2770 = vmatpush.bf16.msra.mxu1 %v2753_v4  ;;  %v2737_v58 = vld [vmem:[%s2884_s14 + $0x198] sm:$0xff]  ;;  %v2726_v1 = vld [vmem:[%s2884_s14 + $0x140] sm:$0xff] }
  0x1d   : > { %2771 = vmatpush.bf16.msra.mxu2 %v2753_v4  ;;  %2772 = vmatpush.bf16.msra.mxu3 %v2753_v4  ;;  %v2713_v61 = vld [vmem:[%s2884_s14 + $0xd8] sm:$0xff]  ;;  %v2738_v2 = vld [vmem:[%s2884_s14 + $0x1a0] sm:$0xff] }
  0x20   : > { %810 = vmatpush.bf16.msra.mxu0 %v2752_v5  ;;  %2773 = vmatpush.bf16.msra.mxu1 %v2752_v5 }
  0x21   : > { %2774 = vmatpush.bf16.msra.mxu2 %v2752_v5  ;;  %2775 = vmatpush.bf16.msra.mxu3 %v2752_v5 }
  0x24   : > { %811 = vmatpush.bf16.msra.mxu0 %v2751_v6  ;;  %2776 = vmatpush.bf16.msra.mxu1 %v2751_v6 }
  0x25   : > { %2777 = vmatpush.bf16.msra.mxu2 %v2751_v6  ;;  %2778 = vmatpush.bf16.msra.mxu3 %v2751_v6  ;;  %v2714_v6 = vld [vmem:[%s2884_s14 + $0xe0] sm:$0xff] }
  0x28   : > { %812 = vmatpush.bf16.msra.mxu0 %v2750_v7  ;;  %2779 = vmatpush.bf16.msra.mxu1 %v2750_v7 }
  0x29   : > { %2780 = vmatpush.bf16.msra.mxu2 %v2750_v7  ;;  %2781 = vmatpush.bf16.msra.mxu3 %v2750_v7  ;;  %v2700_v7 = vld [vmem:[%s2884_s14 + $0x70] sm:$0xff] }
  0x2b   : > { %813 = vmatmul.bf16.vlgmr.msra.gmra.mxu0 %v2686_v8  ;;  %893 = vmatmul.bf16.vlgmr.msra.gmra.mxu1 %v2702_v10 }
  0x2c   : > { %973 = vmatmul.bf16.vlgmr.msra.gmra.mxu2 %v2718_v18  ;;  %1053 = vmatmul.bf16.vlgmr.msra.gmra.mxu3 %v2734_v34  ;;  %v2741_v34 = vld [vmem:[%s2884_s14 + $0x1b8] sm:$0xff] }
  0x3b   : > { %818 = vmatmul.bf16.gmra.mxu0 %v2687_v9  ;;  %898 = vmatmul.bf16.gmra.mxu1 %v2703_v12  ;;  %v2739_v12 = vld [vmem:[%s2884_s14 + $0x1a8] sm:$0xff] }
  0x3c   : > { %978 = vmatmul.bf16.gmra.mxu2 %v2719_v21  ;;  %1058 = vmatmul.bf16.gmra.mxu3 %v2735_v42  ;;  %v2728_v21 = vld [vmem:[%s2884_s14 + $0x150] sm:$0xff] }
  0x4b   : > { %823 = vmatmul.bf16.gmra.mxu0 %v2688_v11  ;;  %903 = vmatmul.bf16.gmra.mxu1 %v2704_v14  ;;  %v2727_v11 = vld [vmem:[%s2884_s14 + $0x148] sm:$0xff] }
  0x4c   : > { %983 = vmatmul.bf16.gmra.mxu2 %v2720_v24  ;;  %1063 = vmatmul.bf16.gmra.mxu3 %v2736_v50  ;;  %v2742_v50 = vld [vmem:[%s2884_s14 + $0x1c0] sm:$0xff] }
  0x5b   : > { %828 = vmatmul.bf16.gmra.mxu0 %v2689_v13  ;;  %908 = vmatmul.bf16.gmra.mxu1 %v2705_v16  ;;  %v2715_v16 = vld [vmem:[%s2884_s14 + $0xe8] sm:$0xff] }
  0x5c   : > { %988 = vmatmul.bf16.gmra.mxu2 %v2721_v28  ;;  %1068 = vmatmul.bf16.gmra.mxu3 %v2737_v58 }
  0x6b   : > { %833 = vmatmul.bf16.gmra.mxu0 %v2690_v15  ;;  %913 = vmatmul.bf16.gmra.mxu1 %v2706_v19 }
  0x6c   : > { %993 = vmatmul.bf16.gmra.mxu2 %v2722_v33  ;;  %1073 = vmatmul.bf16.gmra.mxu3 %v2738_v2  ;;  %v2729_v33 = vld [vmem:[%s2884_s14 + $0x158] sm:$0xff] }
  0x7b   : > { %838 = vmatmul.bf16.gmra.mxu0 %v2691_v17  ;;  %918 = vmatmul.bf16.gmra.mxu1 %v2707_v22  ;;  %v2701_v17 = vld [vmem:[%s2884_s14 + $0x78] sm:$0xff]  ;;  %v2740_v22 = vld [vmem:[%s2884_s14 + $0x1b0] sm:$0xff] }
  0x7c   : > { %998 = vmatmul.bf16.gmra.mxu2 %v2723_v41  ;;  %1078 = vmatmul.bf16.gmra.mxu3 %v2739_v12  ;;  %v2717_v41 = vld [vmem:[%s2884_s14 + $0xf8] sm:$0xff] }
  0x8b   : > { %843 = vmatmul.bf16.gmra.mxu0 %v2692_v20  ;;  %923 = vmatmul.bf16.gmra.mxu1 %v2708_v25 }
  0x8c   : > { %1003 = vmatmul.bf16.gmra.mxu2 %v2724_v49  ;;  %1083 = vmatmul.bf16.gmra.mxu3 %v2740_v22  ;;  %v2730_v49 = vld [vmem:[%s2884_s14 + $0x160] sm:$0xff] }
  0x9b   : > { %848 = vmatmul.bf16.gmra.mxu0 %v2693_v23  ;;  %928 = vmatmul.bf16.gmra.mxu1 %v2709_v30 }
  0x9c   : > { %1008 = vmatmul.bf16.gmra.mxu2 %v2725_v57  ;;  %1088 = vmatmul.bf16.gmra.mxu3 %v2741_v34  ;;  %v2732_v34 = vld [vmem:[%s2884_s14 + $0x170] sm:$0xff] }
  0xa8   : > { %v2905_v27 = vpop.f32.mrf.mxu0  ;;  %v2918_v36 = vpop.f32.mrf.mxu1 }
  0xab   : > { %853 = vmatmul.bf16.gmra.mxu0 %v2694_v26  ;;  %933 = vmatmul.bf16.gmra.mxu1 %v2710_v37  ;;  %v2716_v26 = vld [vmem:[%s2884_s14 + $0xf0] sm:$0xff] }
  0xac   : > { %1013 = vmatmul.bf16.gmra.mxu2 %v2726_v1  ;;  %1093 = vmatmul.bf16.gmra.mxu3 %v2742_v50 }
  0xaf   : > { %v2968_v5 = vpop.f32.mrf.mxu2  ;;  %v3030_v58 = vpop.f32.mrf.mxu3 }
  0xb0   : > { %v2908_v29 = vpop.f32.mrf.mxu0  ;;  %v2924_v40 = vpop.f32.mrf.mxu1  ;;  %6042 = vst [vmem:[#allocation4_spill] sm:$0xff] %v3030_v58 }
  0xb7   : > { %v2976_v10 = vpop.f32.mrf.mxu2  ;;  %v3038_v2 = vpop.f32.mrf.mxu3 }
  0xb8   : > { %v2912_v32 = vpop.f32.mrf.mxu0  ;;  %v2930_v44 = vpop.f32.mrf.mxu1  ;;  %6044 = vst [vmem:[#allocation6_spill] sm:$0xff] %v3038_v2 }
  0xbb   : > { %858 = vmatmul.bf16.gmra.mxu0 %v2695_v31  ;;  %938 = vmatmul.bf16.gmra.mxu1 %v2711_v45 }
  0xbc   : > { %1018 = vmatmul.bf16.gmra.mxu2 %v2727_v11 }
  0xbf   : > { %v2984_v15 = vpop.f32.mrf.mxu2 }
  0xc0   : > { %v2916_v35 = vpop.f32.mrf.mxu0  ;;  %v2936_v48 = vpop.f32.mrf.mxu1 }
  0xc7   : > { %v2992_v20 = vpop.f32.mrf.mxu2 }
  0xc8   : > { %v2922_v39 = vpop.f32.mrf.mxu0  ;;  %v2942_v52 = vpop.f32.mrf.mxu1 }
  0xcb   : > { %863 = vmatmul.bf16.gmra.mxu0 %v2696_v38  ;;  %943 = vmatmul.bf16.gmra.mxu1 %v2712_v53 }
  0xcc   : > { %1023 = vmatmul.bf16.gmra.mxu2 %v2728_v21 }
  0xcf   : > { %v3000_v25 = vpop.f32.mrf.mxu2 }
  0xd0   : > { %v2928_v43 = vpop.f32.mrf.mxu0  ;;  %v2948_v56 = vpop.f32.mrf.mxu1 }
  0xd7   : > { %v3007_v31 = vpop.f32.mrf.mxu2 }
  0xd8   : > { %v2934_v47 = vpop.f32.mrf.mxu0  ;;  %v2954_v60 = vpop.f32.mrf.mxu1 }
  0xdb   : > { %868 = vmatmul.bf16.gmra.mxu0 %v2697_v46  ;;  %948 = vmatmul.bf16.gmra.mxu1 %v2713_v61 }
  0xdc   : > { %1028 = vmatmul.bf16.gmra.mxu2 %v2729_v33 }
  0xdf   : > { %v3013_v38 = vpop.f32.mrf.mxu2 }
  0xe0   : > { %v2940_v51 = vpop.f32.mrf.mxu0  ;;  %v2960_v0 = vpop.f32.mrf.mxu1 }
  0xe7   : > { %v3020_v46 = vpop.f32.mrf.mxu2 }
  0xe8   : > { %v2946_v55 = vpop.f32.mrf.mxu0  ;;  %v2966_v4 = vpop.f32.mrf.mxu1  ;;  %6040 = vst [vmem:[#allocation2_spill] sm:$0xff] %v3020_v46 }
  0xeb   : > { %873 = vmatmul.bf16.gmra.mxu0 %v2698_v54  ;;  %953 = vmatmul.bf16.gmra.mxu1 %v2714_v6  ;;  %v2731_v6 = vld [vmem:[%s2884_s14 + $0x168] sm:$0xff] }
  0xec   : > { %1033 = vmatmul.bf16.gmra.mxu2 %v2730_v49  ;;  %v3063_v49 = vld [vmem:[%s5865_s2] ss:$0 sm:$0xff] }
  0xed   : > { %v3067_v50 = vadd.f32 %v3063_v49, %v2908_v29  ;;  %v3087_v29 = vadd.f32 %v3063_v49, %v2916_v35  ;;  %v3099_v58 = vadd.f32 %v3063_v49, %v2922_v39 }
  0xef   : > { %v3028_v57 = vpop.f32.mrf.mxu2  ;;  %6049 = vst [vmem:[#allocation11_spill] sm:$0xff] %v3067_v50  ;;  %v1273_v35 = vmul.f32 %v3087_v29, %v3087_v29 }
  0xf0   : > { %v2952_v59 = vpop.f32.mrf.mxu0  ;;  %v2974_v9 = vpop.f32.mrf.mxu1  ;;  %6041 = vst [vmem:[#allocation3_spill] sm:$0xff] %v3028_v57 }
  0xf1   : > { %6054 = vst [vmem:[#allocation16_spill] sm:$0xff] %v3087_v29 }
  0xf2   : > { %6055 = vst [vmem:[#allocation17_spill] sm:$0xff] %v3099_v58 }
  0xf7   : > { %v3036_v1 = vpop.f32.mrf.mxu2 }
  0xf8   : > { %v2958_v63 = vpop.f32.mrf.mxu0  ;;  %v2982_v14 = vpop.f32.mrf.mxu1  ;;  %6043 = vst [vmem:[#allocation5_spill] sm:$0xff] %v3036_v1  ;;  %v3108_v1 = vadd.f32 %v3063_v49, %v2928_v43 }
  0xfa   : > { %6056 = vst [vmem:[#allocation18_spill] sm:$0xff] %v3108_v1 }
  0xfb   : > { %878 = vmatmul.bf16.gmra.mxu0 %v2699_v62  ;;  %958 = vmatmul.bf16.gmra.mxu1 %v2715_v16 }
  0xfc   : > { %1038 = vmatmul.bf16.gmra.mxu2 %v2731_v6 }
  0xff   : > { %v3046_v16 = vpop.f32.mrf.mxu2 }
 0x100   : > { %v2964_v3 = vpop.f32.mrf.mxu0  ;;  %v2990_v19 = vpop.f32.mrf.mxu1  ;;  %6045 = vst [vmem:[#allocation7_spill] sm:$0xff] %v3046_v16 }
 0x107   : > { %v3052_v22 = vpop.f32.mrf.mxu2 }
 0x108   : > { %v2972_v8 = vpop.f32.mrf.mxu0  ;;  %v2998_v24 = vpop.f32.mrf.mxu1  ;;  %6047 = vst [vmem:[#allocation9_spill] sm:$0xff] %v3052_v22 }
 0x10b   : > { %883 = vmatmul.bf16.gmra.mxu0 %v2700_v7  ;;  %963 = vmatmul.bf16.gmra.mxu1 %v2716_v26  ;;  %v2743_v7 = vld [vmem:[%s2884_s14 + $0x1c8] sm:$0xff] }
 0x10c   : > { %1098 = vmatmul.bf16.gmra.mxu3 %v2743_v7  ;;  %1043 = vmatmul.bf16.gmra.mxu2 %v2732_v34  ;;  %v3081_v34 = vadd.f32 %v3063_v49, %v2912_v32 }
 0x10e   : > { %6053 = vst [vmem:[#allocation15_spill] sm:$0xff] %v3081_v34 }
 0x10f   : > { %v3071_v7 = vpop.f32.mrf.mxu2 }
 0x110   : > { %v2980_v13 = vpop.f32.mrf.mxu0  ;;  %v3005_v30 = vpop.f32.mrf.mxu1  ;;  %6050 = vst [vmem:[#allocation12_spill] sm:$0xff] %v3071_v7 }
 0x117   : > { %v3110_v57 = vpop.f32.mrf.mxu2 }
 0x118   : > { %v2988_v18 = vpop.f32.mrf.mxu0  ;;  %v3016_v42 = vpop.f32.mrf.mxu1  ;;  %6057 = vst [vmem:[#allocation19_spill] sm:$0xff] %v3110_v57  ;;  %v1275_v57 = vmul.f32 %v3108_v1, %v3108_v1 }
 0x11b   : > { %888 = vmatmul.bf16.gmra.mxu0 %v2701_v17  ;;  %968 = vmatmul.bf16.gmra.mxu1 %v2717_v41  ;;  %v3048_v17 = vpop.f32.mrf.mxu3  ;;  %v2744_v41 = vld [vmem:[%s2884_s14 + $0x1d0] sm:$0xff] }
 0x11c   : > { %6046 = vst [vmem:[#allocation8_spill] sm:$0xff] %v3048_v17  ;;  %1103 = vmatmul.bf16.gmra.mxu3 %v2744_v41  ;;  %v3077_v17 = vadd.f32 %v3063_v49, %v2905_v27  ;;  %v1271_v41 = vmul.f32 %v3067_v50, %v3067_v50  ;;  %v1272_v27 = vmul.f32 %v3081_v34, %v3081_v34 }
 0x11e   : > { %6052 = vst [vmem:[#allocation14_spill] sm:$0xff] %v3077_v17  ;;  %v1134_v32 = vadd.f32 %v3067_v50, %v3077_v17 }
 0x120   : > { %v2996_v23 = vpop.f32.mrf.mxu0  ;;  %v3024_v53 = vpop.f32.mrf.mxu1  ;;  %v1135_v16 = vadd.f32 %v1134_v32, %v3081_v34  ;;  %v2745_v32 = vld [vmem:[%s2884_s14 + $0x1d8] sm:$0xff] }
 0x122   : > { %v1136_v39 = vadd.f32 %v1135_v16, %v3087_v29 }
 0x123   : > { %v3054_v26 = vpop.f32.mrf.mxu3 }
 0x124   : > { %6048 = vst [vmem:[#allocation10_spill] sm:$0xff] %v3054_v26  ;;  %v1137_v43 = vadd.f32 %v1136_v39, %v3099_v58 }
 0x128   : > { %v3003_v28 = vpop.f32.mrf.mxu0  ;;  %v3032_v61 = vpop.f32.mrf.mxu1 }
 0x12b   : > { %v3073_v26 = vpop.f32.mrf.mxu3 }
 0x12c   : > { %6051 = vst [vmem:[#allocation13_spill] sm:$0xff] %v3073_v26  ;;  %v1270_v26 = vmul.f32 %v3077_v17, %v3077_v17  ;;  %v2733_v17 = vld [vmem:[%s2884_s14 + $0x178] sm:$0xff]  ;;  %1108 = vmatmul.bf16.gmra.mxu3 %v2745_v32  ;;  %v3150_v32 = vpop.f32.mrf.mxu2 }
 0x12d   : > { %1048 = vmatmul.bf16.gmra.mxu2 %v2733_v17 }
 0x12e   : > { %v1398_v7 = vadd.f32 %v1271_v41, %v1270_v26  ;;  %v1274_v26 = vmul.f32 %v3099_v58, %v3099_v58  ;;  %v3119_v41 = vadd.f32 %v3063_v49, %v2934_v47  ;;  %v1138_v47 = vadd.f32 %v1137_v43, %v3108_v1 }
 0x130   : > { %v3011_v37 = vpop.f32.mrf.mxu0  ;;  %v3044_v12 = vpop.f32.mrf.mxu1  ;;  %v1399_v50 = vadd.f32 %v1398_v7, %v1272_v27  ;;  %6058 = vst [vmem:[#allocation20_spill] sm:$0xff] %v3119_v41  ;;  %v3128_v7 = vadd.f32 %v3063_v49, %v2940_v51  ;;  %v1276_v29 = vmul.f32 %v3119_v41, %v3119_v41  ;;  %v1139_v51 = vadd.f32 %v1138_v47, %v3119_v41 }
 0x131   : > { %v3164_v41 = vadd.f32 %v3063_v49, %v2964_v3 }
 0x132   : > { %v1400_v34 = vadd.f32 %v1399_v50, %v1273_v35  ;;  %6059 = vst [vmem:[#allocation21_spill] sm:$0xff] %v3128_v7  ;;  %v3137_v50 = vadd.f32 %v3063_v49, %v2946_v55  ;;  %v1277_v17 = vmul.f32 %v3128_v7, %v3128_v7  ;;  %v1140_v55 = vadd.f32 %v1139_v51, %v3128_v7 }
 0x133   : > { %v3112_v46 = vpop.f32.mrf.mxu3  ;;  %6063 = vst [vmem:[#allocation25_spill] sm:$0xff] %v3164_v41  ;;  %v1281_v3 = vmul.f32 %v3164_v41, %v3164_v41 }
 0x134   : > { %v1401_v27 = vadd.f32 %v1400_v34, %v1274_v26  ;;  %6060 = vst [vmem:[#allocation22_spill] sm:$0xff] %v3137_v50  ;;  %v3146_v34 = vadd.f32 %v3063_v49, %v2952_v59  ;;  %v1278_v1 = vmul.f32 %v3137_v50, %v3137_v50  ;;  %v1141_v47 = vadd.f32 %v1140_v55, %v3137_v50 }
 0x136   : > { %v1402_v39 = vadd.f32 %v1401_v27, %v1275_v57  ;;  %6061 = vst [vmem:[#allocation23_spill] sm:$0xff] %v3146_v34  ;;  %v3157_v57 = vadd.f32 %v3063_v49, %v2958_v63  ;;  %v1279_v59 = vmul.f32 %v3146_v34, %v3146_v34  ;;  %v3171_v63 = vadd.f32 %v3063_v49, %v2972_v8 }
 0x138   : > { %v3018_v45 = vpop.f32.mrf.mxu0  ;;  %v3056_v33 = vpop.f32.mrf.mxu1  ;;  %v1403_v43 = vadd.f32 %v1402_v39, %v1276_v29  ;;  %6062 = vst [vmem:[#allocation24_spill] sm:$0xff] %v3157_v57  ;;  %v1142_v39 = vadd.f32 %v1141_v47, %v3146_v34  ;;  %v1280_v51 = vmul.f32 %v3157_v57, %v3157_v57  ;;  %v1282_v34 = vmul.f32 %v3171_v63, %v3171_v63 }
 0x139   : > { %6064 = vst [vmem:[#allocation26_spill] sm:$0xff] %v3171_v63 }
 0x13a   : > { %v1404_v27 = vadd.f32 %v1403_v43, %v1277_v17  ;;  %v1143_v50 = vadd.f32 %v1142_v39, %v3157_v57  ;;  %v3194_v39 = vpop.f32.mrf.mxu2 }
 0x13b   : > { %v3148_v26 = vpop.f32.mrf.mxu3 }
 0x13c   : > { %v1405_v29 = vadd.f32 %v1404_v27, %v1278_v1  ;;  %v3182_v1 = vadd.f32 %v3063_v49, %v2980_v13  ;;  %v1144_v8 = vadd.f32 %v1143_v50, %v3164_v41  ;;  %v3208_v41 = vadd.f32 %v3063_v49, %v3003_v28 }
 0x13e   : > { %v1406_v55 = vadd.f32 %v1405_v29, %v1279_v59  ;;  %6065 = vst [vmem:[#allocation27_spill] sm:$0xff] %v3182_v1  ;;  %v3191_v59 = vadd.f32 %v3063_v49, %v2988_v18  ;;  %v2746_v29 = vld [vmem:[%s2884_s14 + $0x1e0] sm:$0xff]  ;;  %v1145_v7 = vadd.f32 %v1144_v8, %v3171_v63  ;;  %v1283_v13 = vmul.f32 %v3182_v1, %v3182_v1 }
 0x13f   : > { %1113 = vmatmul.bf16.gmra.mxu3 %v2746_v29  ;;  %6068 = vst [vmem:[#allocation30_spill] sm:$0xff] %v3208_v41  ;;  %v1286_v28 = vmul.f32 %v3208_v41, %v3208_v41 }
 0x140   : > { %v3026_v54 = vpop.f32.mrf.mxu0  ;;  %v3089_v2 = vpop.f32.mrf.mxu1  ;;  %v1407_v47 = vadd.f32 %v1406_v55, %v1280_v51  ;;  %6066 = vst [vmem:[#allocation28_spill] sm:$0xff] %v3191_v59  ;;  %v3201_v51 = vadd.f32 %v3063_v49, %v2996_v23  ;;  %v1146_v55 = vadd.f32 %v1145_v7, %v3182_v1  ;;  %v1284_v18 = vmul.f32 %v3191_v59, %v3191_v59 }
 0x141   : > { %v3215_v23 = vadd.f32 %v3063_v49, %v3011_v37 }
 0x142   : > { %v1408_v57 = vadd.f32 %v1407_v47, %v1281_v3  ;;  %6067 = vst [vmem:[#allocation29_spill] sm:$0xff] %v3201_v51  ;;  %v1147_v8 = vadd.f32 %v1146_v55, %v3191_v59  ;;  %v1285_v63 = vmul.f32 %v3201_v51, %v3201_v51  ;;  %v3233_v59 = vadd.f32 %v3063_v49, %v3026_v54 }
 0x143   : > { %v3184_v27 = vpop.f32.mrf.mxu3  ;;  %6069 = vst [vmem:[#allocation31_spill] sm:$0xff] %v3215_v23  ;;  %v1287_v37 = vmul.f32 %v3215_v23, %v3215_v23 }
 0x144   : > { %v1409_v50 = vadd.f32 %v1408_v57, %v1282_v34  ;;  %v1148_v29 = vadd.f32 %v1147_v8, %v3201_v51  ;;  %6071 = vst [vmem:[#allocation33_spill] sm:$0xff] %v3233_v59  ;;  %v1289_v54 = vmul.f32 %v3233_v59, %v3233_v59 }
 0x146   : > { %v1410_v47 = vadd.f32 %v1409_v50, %v1283_v13  ;;  %v3226_v13 = vadd.f32 %v3063_v49, %v3018_v45  ;;  %v1149_v55 = vadd.f32 %v1148_v29, %v3208_v41 }
 0x148   : > { %v3034_v62 = vpop.f32.mrf.mxu0  ;;  %v3130_v16 = vpop.f32.mrf.mxu1  ;;  %v1411_v57 = vadd.f32 %v1410_v47, %v1284_v18  ;;  %6070 = vst [vmem:[#allocation32_spill] sm:$0xff] %v3226_v13  ;;  %v1150_v8 = vadd.f32 %v1149_v55, %v3215_v23  ;;  %v1288_v45 = vmul.f32 %v3226_v13, %v3226_v13 }
 0x149   : > { %v3235_v18 = vpop.f32.mrf.mxu2 }
 0x14a   : > { %v1412_v50 = vadd.f32 %v1411_v57, %v1285_v63  ;;  %v3242_v63 = vadd.f32 %v3063_v49, %v3034_v62  ;;  %v1151_v41 = vadd.f32 %v1150_v8, %v3226_v13 }
 0x14b   : > { %v3217_v34 = vpop.f32.mrf.mxu3 }
 0x14c   : > { %v1413_v47 = vadd.f32 %v1412_v50, %v1286_v28  ;;  %6072 = vst [vmem:[#allocation34_spill] sm:$0xff] %v3242_v63  ;;  %v1152_v55 = vadd.f32 %v1151_v41, %v3233_v59  ;;  %v1290_v62 = vmul.f32 %v3242_v63, %v3242_v63 }
 0x14e   : > { %v1414_v29 = vadd.f32 %v1413_v47, %v1287_v37  ;;  %v2747_v47 = vld [vmem:[%s2884_s14 + $0x1e8] sm:$0xff]  ;;  %v1153_v23 = vadd.f32 %v1152_v55, %v3242_v63 }
 0x14f   : > { %1118 = vmatmul.bf16.gmra.mxu3 %v2747_v47 }
 0x150   : > { %v3042_v11 = vpop.f32.mrf.mxu0  ;;  %v3175_v43 = vpop.f32.mrf.mxu1  ;;  %v1415_v50 = vadd.f32 %v1414_v29, %v1288_v45 }
 0x151   : > { %v3249_v51 = vadd.f32 %v3063_v49, %v3042_v11 }
 0x152   : > { %v1416_v13 = vadd.f32 %v1415_v50, %v1289_v54  ;;  %v3277_v50 = vpop.f32.mrf.mxu2 }
 0x153   : > { %6073 = vst [vmem:[#allocation35_spill] sm:$0xff] %v3249_v51  ;;  %v3251_v28 = vpop.f32.mrf.mxu3  ;;  %v1291_v11 = vmul.f32 %v3249_v51, %v3249_v51  ;;  %v1154_v29 = vadd.f32 %v1153_v23, %v3249_v51 }
 0x154   : > { %v1417_v41 = vadd.f32 %v1416_v13, %v1290_v62 }
 0x156   : > { %v1418_v55 = vadd.f32 %v1417_v41, %v1291_v11 }
 0x158   : > { %v3050_v21 = vpop.f32.mrf.mxu0  ;;  %v3219_v7 = vpop.f32.mrf.mxu1 }
 0x159   : > { %v3258_v37 = vadd.f32 %v3063_v49, %v3050_v21 }
 0x15b   : > { %6074 = vst [vmem:[#allocation36_spill] sm:$0xff] %v3258_v37  ;;  %v1292_v21 = vmul.f32 %v3258_v37, %v3258_v37  ;;  %v1155_v63 = vadd.f32 %v1154_v29, %v3258_v37  ;;  %v3286_v23 = vpop.f32.mrf.mxu3 }
 0x15d   : > { %v1419_v62 = vadd.f32 %v1418_v55, %v1292_v21 }
 0x160   : > { %v3069_v6 = vpop.f32.mrf.mxu0  ;;  %v3261_v8 = vpop.f32.mrf.mxu1 }
 0x161   : > { %v3268_v45 = vadd.f32 %v3063_v49, %v3069_v6 }
 0x163   : > { %6075 = vst [vmem:[#allocation37_spill] sm:$0xff] %v3268_v45  ;;  %v1293_v6 = vmul.f32 %v3268_v45, %v3268_v45  ;;  %v1156_v47 = vadd.f32 %v1155_v63, %v3268_v45  ;;  %v3315_v45 = vpop.f32.mrf.mxu3 }
 0x165   : > { %v1420_v41 = vadd.f32 %v1419_v62, %v1293_v6 }
 0x168   : > { %v3103_v22 = vpop.f32.mrf.mxu0  ;;  %v3301_v51 = vpop.f32.mrf.mxu1 }
 0x169   : > { %v3275_v59 = vadd.f32 %v3063_v49, %v3103_v22 }
 0x16b   : > { %6076 = vst [vmem:[#allocation38_spill] sm:$0xff] %v3275_v59  ;;  %v1294_v22 = vmul.f32 %v3275_v59, %v3275_v59  ;;  %v1157_v29 = vadd.f32 %v1156_v47, %v3275_v59 }
 0x16d   : > { %v1421_v63 = vadd.f32 %v1420_v41, %v1294_v22  ;;  %v3317_v22 = vpop.f32.mrf.mxu2 }
 0x170   : > { %v3139_v35 = vpop.f32.mrf.mxu0 }
 0x171   : > { %v3284_v13 = vadd.f32 %v3063_v49, %v3139_v35 }
 0x173   : > { %6077 = vst [vmem:[#allocation39_spill] sm:$0xff] %v3284_v13  ;;  %v1295_v37 = vmul.f32 %v3284_v13, %v3284_v13  ;;  %v1158_v21 = vadd.f32 %v1157_v29, %v3284_v13 }
 0x175   : > { %v1422_v62 = vadd.f32 %v1421_v63, %v1295_v37  ;;  %v2748_v63 = vld [vmem:[%s2884_s14 + $0x1f0] sm:$0xff] }
 0x176   : > { %1123 = vmatmul.bf16.gmra.mxu3 %v2748_v63  ;;  %v3342_v63 = vpop.f32.mrf.mxu3 }
 0x178   : > { %v3173_v17 = vpop.f32.mrf.mxu0 }
 0x179   : > { %v3293_v11 = vadd.f32 %v3063_v49, %v3173_v17 }
 0x17b   : > { %6078 = vst [vmem:[#allocation40_spill] sm:$0xff] %v3293_v11  ;;  %v1296_v55 = vmul.f32 %v3293_v11, %v3293_v11  ;;  %v1159_v47 = vadd.f32 %v1158_v21, %v3293_v11 }
 0x17d   : > { %v1423_v41 = vadd.f32 %v1422_v62, %v1296_v55 }
 0x180   : > { %v881_v3 = vpop.f32.mrf.mxu0 }
 0x181   : > { %v3299_v35 = vadd.f32 %v3063_v49, %v881_v3 }
 0x183   : > { %6079 = vst [vmem:[#allocation41_spill] sm:$0xff] %v3299_v35  ;;  %v1297_v3 = vmul.f32 %v3299_v35, %v3299_v35  ;;  %v1160_v29 = vadd.f32 %v1159_v47, %v3299_v35  ;;  %v3332_v47 = vpop.f32.mrf.mxu1 }
 0x185   : > { %v1424_v21 = vadd.f32 %v1423_v41, %v1297_v3 }
 0x188   : > { %v884_v57 = vpop.f32.mrf.mxu0 }
 0x189   : > { %v3307_v17 = vadd.f32 %v3063_v49, %v884_v57 }
 0x18b   : > { %6080 = vst [vmem:[#allocation42_spill] sm:$0xff] %v3307_v17  ;;  %v1298_v57 = vmul.f32 %v3307_v17, %v3307_v17  ;;  %v1161_v11 = vadd.f32 %v1160_v29, %v3307_v17 }
 0x18d   : > { %v1425_v13 = vadd.f32 %v1424_v21, %v1298_v57 }
 0x190   : > { %v886_v54 = vpop.f32.mrf.mxu0 }
 0x191   : > { %v3313_v59 = vadd.f32 %v3063_v49, %v886_v54 }
 0x193   : > { %6081 = vst [vmem:[#allocation43_spill] sm:$0xff] %v3313_v59  ;;  %v1299_v54 = vmul.f32 %v3313_v59, %v3313_v59  ;;  %v1162_v1 = vadd.f32 %v1161_v11, %v3313_v59  ;;  %v3346_v11 = vadd.f32 %v3063_v49, %v2924_v40 }
 0x195   : > { %v1426_v3 = vadd.f32 %v1425_v13, %v1299_v54  ;;  %6085 = vst [vmem:[#allocation47_spill] sm:$0xff] %v3346_v11  ;;  %v3357_v13 = vadd.f32 %v3063_v49, %v2930_v44  ;;  %v3371_v44 = vadd.f32 %v3063_v49, %v2942_v52 }
 0x197   : > { %6086 = vst [vmem:[#allocation48_spill] sm:$0xff] %v3357_v13  ;;  %v1306_v52 = vmul.f32 %v3371_v44, %v3371_v44 }
 0x198   : > { %v889_v6 = vpop.f32.mrf.mxu0  ;;  %6088 = vst [vmem:[#allocation50_spill] sm:$0xff] %v3371_v44 }
 0x199   : > { %v3323_v37 = vadd.f32 %v3063_v49, %v889_v6  ;;  %v3336_v6 = vadd.f32 %v3063_v49, %v2918_v36  ;;  %v3351_v36 = vpop.f32.mrf.mxu2 }
 0x19b   : > { %6082 = vst [vmem:[#allocation44_spill] sm:$0xff] %v3323_v37  ;;  %v1300_v55 = vmul.f32 %v3323_v37, %v3323_v37  ;;  %v1163_v41 = vadd.f32 %v1162_v1, %v3323_v37  ;;  %v1302_v1 = vmul.f32 %v3336_v6, %v3336_v6 }
 0x19c   : > { %6083 = vst [vmem:[#allocation45_spill] sm:$0xff] %v3336_v6 }
 0x19d   : > { %v1427_v57 = vadd.f32 %v1426_v3, %v1300_v55  ;;  %v1303_v55 = vmul.f32 %v3346_v11, %v3346_v11 }
 0x1a0   : > { %v891_v62 = vpop.f32.mrf.mxu0 }
 0x1a1   : > { %v3340_v29 = vadd.f32 %v3063_v49, %v891_v62  ;;  %v3364_v62 = vadd.f32 %v3063_v49, %v2936_v48 }
 0x1a3   : > { %6084 = vst [vmem:[#allocation46_spill] sm:$0xff] %v3340_v29  ;;  %v1164_v21 = vadd.f32 %v1163_v41, %v3340_v29  ;;  %v1301_v59 = vmul.f32 %v3340_v29, %v3340_v29  ;;  %v1304_v29 = vmul.f32 %v3357_v13, %v3357_v13  ;;  %v1305_v48 = vmul.f32 %v3364_v62, %v3364_v62 }
 0x1a4   : > { %6087 = vst [vmem:[#allocation49_spill] sm:$0xff] %v3364_v62 }
 0x1a5   : > { %v1165_v54 = vadd.f32 %v1164_v21, %v3336_v6  ;;  %v1428_v40 = vadd.f32 %v1427_v57, %v1301_v59  ;;  %v3374_v57 = vpop.f32.mrf.mxu1  ;;  %v3376_v6 = vpop.f32.mrf.mxu3 }
 0x1a7   : > { %v1166_v3 = vadd.f32 %v1165_v54, %v3346_v11  ;;  %v1429_v41 = vadd.f32 %v1428_v40, %v1302_v1  ;;  %v3382_v1 = vadd.f32 %v3063_v49, %v2948_v56  ;;  %v2749_v11 = vld [vmem:[%s2884_s14 + $0x1f8] sm:$0xff] }
 0x1a8   : > { %1128 = vmatmul.bf16.gmra.mxu3 %v2749_v11 }
 0x1a9   : > { %v1167_v21 = vadd.f32 %v1166_v3, %v3357_v13  ;;  %v1430_v59 = vadd.f32 %v1429_v41, %v1303_v55  ;;  %6089 = vst [vmem:[#allocation51_spill] sm:$0xff] %v3382_v1  ;;  %v3390_v55 = vadd.f32 %v3063_v49, %v2954_v60  ;;  %v3393_v13 = vpop.f32.mrf.mxu2  ;;  %v1307_v56 = vmul.f32 %v3382_v1, %v3382_v1 }
 0x1ab   : > { %v1168_v54 = vadd.f32 %v1167_v21, %v3364_v62  ;;  %v1431_v40 = vadd.f32 %v1430_v59, %v1304_v29  ;;  %6090 = vst [vmem:[#allocation52_spill] sm:$0xff] %v3390_v55  ;;  %v3399_v29 = vadd.f32 %v3063_v49, %v2960_v0  ;;  %v1308_v60 = vmul.f32 %v3390_v55, %v3390_v55 }
 0x1ac   : > { %v3413_v0 = vadd.f32 %v3063_v49, %v2974_v9 }
 0x1ad   : > { %v1169_v3 = vadd.f32 %v1168_v54, %v3371_v44  ;;  %v1432_v41 = vadd.f32 %v1431_v40, %v1305_v48  ;;  %6091 = vst [vmem:[#allocation53_spill] sm:$0xff] %v3399_v29  ;;  %v3406_v54 = vadd.f32 %v3063_v49, %v2966_v4  ;;  %v1309_v40 = vmul.f32 %v3399_v29, %v3399_v29 }
 0x1ae   : > { %6093 = vst [vmem:[#allocation55_spill] sm:$0xff] %v3413_v0  ;;  %v1311_v9 = vmul.f32 %v3413_v0, %v3413_v0 }
 0x1af   : > { %v1170_v21 = vadd.f32 %v1169_v3, %v3382_v1  ;;  %v1433_v59 = vadd.f32 %v1432_v41, %v1306_v52  ;;  %6092 = vst [vmem:[#allocation54_spill] sm:$0xff] %v3406_v54  ;;  %v3416_v41 = vpop.f32.mrf.mxu1  ;;  %v3418_v1 = vpop.f32.mrf.mxu3  ;;  %v1310_v4 = vmul.f32 %v3406_v54, %v3406_v54 }
 0x1b1   : > { %v1171_v11 = vadd.f32 %v1170_v21, %v3390_v55  ;;  %v1434_v48 = vadd.f32 %v1433_v59, %v1307_v56  ;;  %v3424_v56 = vadd.f32 %v3063_v49, %v2982_v14  ;;  %v3440_v14 = vadd.f32 %v3063_v49, %v2998_v24 }
 0x1b2   : > { %v3454_v24 = vadd.f32 %v3063_v49, %v3016_v42 }
 0x1b3   : > { %v1172_v3 = vadd.f32 %v1171_v11, %v3399_v29  ;;  %v1435_v52 = vadd.f32 %v1434_v48, %v1308_v60  ;;  %6094 = vst [vmem:[#allocation56_spill] sm:$0xff] %v3424_v56  ;;  %v3431_v60 = vadd.f32 %v3063_v49, %v2990_v19  ;;  %v3434_v29 = vpop.f32.mrf.mxu2  ;;  %v1312_v55 = vmul.f32 %v3424_v56, %v3424_v56 }
 0x1b4   : > { %6096 = vst [vmem:[#allocation58_spill] sm:$0xff] %v3440_v14  ;;  %v3447_v19 = vadd.f32 %v3063_v49, %v3005_v30  ;;  %v1316_v42 = vmul.f32 %v3454_v24, %v3454_v24 }
 0x1b5   : > { %v1173_v21 = vadd.f32 %v1172_v3, %v3406_v54  ;;  %v1436_v59 = vadd.f32 %v1435_v52, %v1309_v40  ;;  %6095 = vst [vmem:[#allocation57_spill] sm:$0xff] %v3431_v60  ;;  %v1313_v52 = vmul.f32 %v3431_v60, %v3431_v60 }
 0x1b6   : > { %6097 = vst [vmem:[#allocation59_spill] sm:$0xff] %v3447_v19  ;;  %v1315_v30 = vmul.f32 %v3447_v19, %v3447_v19 }
 0x1b7   : > { %v1174_v11 = vadd.f32 %v1173_v21, %v3413_v0  ;;  %v1437_v48 = vadd.f32 %v1436_v59, %v1310_v4  ;;  %v1314_v59 = vmul.f32 %v3440_v14, %v3440_v14  ;;  %6098 = vst [vmem:[#allocation60_spill] sm:$0xff] %v3454_v24 }
 0x1b9   : > { %v1175_v40 = vadd.f32 %v1174_v11, %v3424_v56  ;;  %v1438_v3 = vadd.f32 %v1437_v48, %v1311_v9  ;;  %v3457_v11 = vpop.f32.mrf.mxu1  ;;  %v3459_v48 = vpop.f32.mrf.mxu3  ;;  %v6121_v56 = vld [vmem:[#allocation12_spill] sm:$0xff] }
 0x1bb   : > { %v1176_v4 = vadd.f32 %v1175_v40, %v3431_v60  ;;  %v1439_v21 = vadd.f32 %v1438_v3, %v1312_v55  ;;  %v3465_v55 = vadd.f32 %v3063_v49, %v3024_v53  ;;  %v3481_v53 = vadd.f32 %v3063_v49, %v3044_v12 }
 0x1bc   : > { %v3495_v12 = vadd.f32 %v3063_v49, %v3089_v2 }
 0x1bd   : > { %v1440_v0 = vadd.f32 %v1439_v21, %v1313_v52  ;;  %v1177_v9 = vadd.f32 %v1176_v4, %v3440_v14  ;;  %6099 = vst [vmem:[#allocation61_spill] sm:$0xff] %v3465_v55  ;;  %v3472_v52 = vadd.f32 %v3063_v49, %v3032_v61  ;;  %v3475_v14 = vpop.f32.mrf.mxu2  ;;  %v1317_v60 = vmul.f32 %v3465_v55, %v3465_v55 }
 0x1be   : > { %6101 = vst [vmem:[#allocation63_spill] sm:$0xff] %v3481_v53  ;;  %v3488_v61 = vadd.f32 %v3063_v49, %v3056_v33  ;;  %v1321_v2 = vmul.f32 %v3495_v12, %v3495_v12 }
 0x1bf   : > { %v1178_v40 = vadd.f32 %v1177_v9, %v3447_v19  ;;  %v1441_v3 = vadd.f32 %v1440_v0, %v1314_v59  ;;  %6100 = vst [vmem:[#allocation62_spill] sm:$0xff] %v3472_v52  ;;  %v1318_v9 = vmul.f32 %v3472_v52, %v3472_v52 }
 0x1c0   : > { %6102 = vst [vmem:[#allocation64_spill] sm:$0xff] %v3488_v61  ;;  %v1320_v33 = vmul.f32 %v3488_v61, %v3488_v61 }
 0x1c1   : > { %v1179_v4 = vadd.f32 %v1178_v40, %v3454_v24  ;;  %v1442_v21 = vadd.f32 %v1441_v3, %v1315_v30  ;;  %v1319_v3 = vmul.f32 %v3481_v53, %v3481_v53  ;;  %6103 = vst [vmem:[#allocation65_spill] sm:$0xff] %v3495_v12 }
 0x1c3   : > { %v1180_v0 = vadd.f32 %v1179_v4, %v3465_v55  ;;  %v1443_v59 = vadd.f32 %v1442_v21, %v1316_v42  ;;  %v966_v21 = vpop.f32.mrf.mxu1  ;;  %v3498_v55 = vpop.f32.mrf.mxu3 }
 0x1c5   : > { %v1181_v30 = vadd.f32 %v1180_v0, %v3472_v52  ;;  %v1444_v40 = vadd.f32 %v1443_v59, %v1317_v60  ;;  %v3504_v0 = vadd.f32 %v3063_v49, %v3130_v16  ;;  %v3520_v16 = vadd.f32 %v3063_v49, %v3219_v7 }
 0x1c6   : > { %v3534_v7 = vadd.f32 %v3063_v49, %v3301_v51 }
 0x1c7   : > { %v1182_v4 = vadd.f32 %v1181_v30, %v3481_v53  ;;  %v1445_v42 = vadd.f32 %v1444_v40, %v1318_v9  ;;  %6104 = vst [vmem:[#allocation66_spill] sm:$0xff] %v3504_v0  ;;  %v3511_v30 = vadd.f32 %v3063_v49, %v3175_v43  ;;  %v3514_v53 = vpop.f32.mrf.mxu2  ;;  %v1322_v52 = vmul.f32 %v3504_v0, %v3504_v0 }
 0x1c8   : > { %6106 = vst [vmem:[#allocation68_spill] sm:$0xff] %v3520_v16  ;;  %v3527_v43 = vadd.f32 %v3063_v49, %v3261_v8  ;;  %v1326_v51 = vmul.f32 %v3534_v7, %v3534_v7 }
 0x1c9   : > { %v1183_v60 = vadd.f32 %v1182_v4, %v3488_v61  ;;  %v1446_v59 = vadd.f32 %v1445_v42, %v1319_v3  ;;  %6105 = vst [vmem:[#allocation67_spill] sm:$0xff] %v3511_v30  ;;  %v1323_v42 = vmul.f32 %v3511_v30, %v3511_v30 }
 0x1ca   : > { %6107 = vst [vmem:[#allocation69_spill] sm:$0xff] %v3527_v43  ;;  %v1325_v8 = vmul.f32 %v3527_v43, %v3527_v43 }
 0x1cb   : > { %v1184_v9 = vadd.f32 %v1183_v60, %v3495_v12  ;;  %v1447_v40 = vadd.f32 %v1446_v59, %v1320_v33  ;;  %v1324_v59 = vmul.f32 %v3520_v16, %v3520_v16  ;;  %6108 = vst [vmem:[#allocation70_spill] sm:$0xff] %v3534_v7 }
 0x1cd   : > { %v1185_v3 = vadd.f32 %v1184_v9, %v3504_v0  ;;  %v1448_v4 = vadd.f32 %v1447_v40, %v1321_v2  ;;  %v969_v40 = vpop.f32.mrf.mxu1  ;;  %v3537_v0 = vpop.f32.mrf.mxu3 }
 0x1cf   : > { %v1186_v33 = vadd.f32 %v1185_v3, %v3511_v30  ;;  %v1449_v60 = vadd.f32 %v1448_v4, %v1322_v52  ;;  %v3544_v52 = vadd.f32 %v3063_v49, %v3332_v47  ;;  %v3560_v47 = vadd.f32 %v3063_v49, %v3416_v41 }
 0x1d1   : > { %v1187_v9 = vadd.f32 %v1186_v33, %v3520_v16  ;;  %v1450_v2 = vadd.f32 %v1449_v60, %v1323_v42  ;;  %6109 = vst [vmem:[#allocation71_spill] sm:$0xff] %v3544_v52  ;;  %v3551_v42 = vadd.f32 %v3063_v49, %v3374_v57  ;;  %v3553_v60 = vpop.f32.mrf.mxu2  ;;  %v3567_v57 = vadd.f32 %v3063_v49, %v3457_v11 }
 0x1d2   : > { %6111 = vst [vmem:[#allocation73_spill] sm:$0xff] %v3560_v47  ;;  %v3581_v11 = vadd.f32 %v3063_v49, %v969_v40 }
 0x1d3   : > { %v1188_v12 = vadd.f32 %v1187_v9, %v3527_v43  ;;  %v1451_v3 = vadd.f32 %v1450_v2, %v1324_v59  ;;  %6110 = vst [vmem:[#allocation72_spill] sm:$0xff] %v3551_v42  ;;  %v1327_v59 = vmul.f32 %v3544_v52, %v3544_v52 }
 0x1d4   : > { %6112 = vst [vmem:[#allocation74_spill] sm:$0xff] %v3567_v57  ;;  %v1332_v40 = vmul.f32 %v3581_v11, %v3581_v11 }
 0x1d5   : > { %v1189_v4 = vadd.f32 %v1188_v12, %v3534_v7  ;;  %v1452_v33 = vadd.f32 %v1451_v3, %v1325_v8  ;;  %v1328_v8 = vmul.f32 %v3551_v42, %v3551_v42  ;;  %v971_v41 = vpop.f32.mrf.mxu1  ;;  %6114 = vst [vmem:[#allocation76_spill] sm:$0xff] %v3581_v11 }
 0x1d7   : > { %v1453_v16 = vadd.f32 %v1452_v33, %v1326_v51  ;;  %v1190_v9 = vadd.f32 %v1189_v4, %v3544_v52  ;;  %v1329_v51 = vmul.f32 %v3560_v47, %v3560_v47  ;;  %v3573_v33 = vadd.f32 %v3063_v49, %v966_v21  ;;  %v6116_v52 = vld [vmem:[#allocation2_spill] sm:$0xff] }
 0x1d8   : > { %v3587_v21 = vadd.f32 %v3063_v49, %v971_v41 }
 0x1d9   : > { %v1454_v12 = vadd.f32 %v1453_v16, %v1327_v59  ;;  %v1191_v2 = vadd.f32 %v1190_v9, %v3551_v42  ;;  %6113 = vst [vmem:[#allocation75_spill] sm:$0xff] %v3573_v33  ;;  %v3575_v16 = vpop.f32.mrf.mxu3  ;;  %v1330_v42 = vmul.f32 %v3567_v57, %v3567_v57 }
 0x1da   : > { %6115 = vst [vmem:[#allocation77_spill] sm:$0xff] %v3587_v21 }
 0x1db   : > { %v1455_v3 = vadd.f32 %v1454_v12, %v1328_v8  ;;  %v1192_v4 = vadd.f32 %v1191_v2, %v3560_v47  ;;  %v1331_v8 = vmul.f32 %v3573_v33, %v3573_v33  ;;  %v3589_v47 = vpop.f32.mrf.mxu2 }
 0x1dd   : > { %v1456_v9 = vadd.f32 %v1455_v3, %v1329_v51  ;;  %v1193_v59 = vadd.f32 %v1192_v4, %v3567_v57  ;;  %v3593_v3 = vadd.f32 %v3063_v49, %v2968_v5 }
 0x1df   : > { %v1457_v12 = vadd.f32 %v1456_v9, %v1330_v42  ;;  %v1194_v2 = vadd.f32 %v1193_v59, %v3573_v33  ;;  %v3600_v42 = vadd.f32 %v3063_v49, %v2976_v10  ;;  %v1333_v59 = vmul.f32 %v3587_v21, %v3587_v21 }
 0x1e0   : > { %v1334_v5 = vmul.f32 %v3593_v3, %v3593_v3 }
 0x1e1   : > { %v1458_v4 = vadd.f32 %v1457_v12, %v1331_v8  ;;  %v1195_v51 = vadd.f32 %v1194_v2, %v3581_v11  ;;  %v3609_v12 = vadd.f32 %v3063_v49, %v2984_v15  ;;  %v3612_v11 = vpop.f32.mrf.mxu3  ;;  %v1335_v10 = vmul.f32 %v3600_v42, %v3600_v42 }
 0x1e2   : > { %v3625_v15 = vadd.f32 %v3063_v49, %v3000_v25  ;;  %v3641_v25 = vadd.f32 %v3063_v49, %v3013_v38  ;;  %v6117_v38 = vld [vmem:[#allocation3_spill] sm:$0xff] }
 0x1e3   : > { %v1459_v9 = vadd.f32 %v1458_v4, %v1332_v40  ;;  %v1196_v41 = vadd.f32 %v1195_v51, %v3587_v21  ;;  %v3618_v4 = vadd.f32 %v3063_v49, %v2992_v20  ;;  %v1336_v33 = vmul.f32 %v3609_v12, %v3609_v12 }
 0x1e4   : > { %v3634_v20 = vadd.f32 %v3063_v49, %v3007_v31  ;;  %v3648_v31 = vadd.f32 %v3063_v49, %v6116_v52  ;;  %v1340_v7 = vmul.f32 %v3641_v25, %v3641_v25  ;;  %v3657_v43 = vadd.f32 %v3063_v49, %v6117_v38  ;;  %v6118_v52 = vld [vmem:[#allocation5_spill] sm:$0xff]  ;;  %v6119_v38 = vld [vmem:[#allocation7_spill] sm:$0xff] }
 0x1e5   : > { %v1197_v2 = vadd.f32 %v1196_v41, %v3593_v3  ;;  %v1460_v8 = vadd.f32 %v1459_v9, %v1333_v59  ;;  %v3628_v59 = vpop.f32.mrf.mxu2  ;;  %v1337_v57 = vmul.f32 %v3618_v4, %v3618_v4  ;;  %v3664_v30 = vadd.f32 %v3063_v49, %v6118_v52  ;;  %v6120_v52 = vld [vmem:[#allocation9_spill] sm:$0xff] }
 0x1e6   : > { %v1342_v61 = vmul.f32 %v3657_v43, %v3657_v43  ;;  %v3673_v24 = vadd.f32 %v3063_v49, %v6119_v38  ;;  %v3680_v19 = vadd.f32 %v3063_v49, %v6120_v52  ;;  %v3687_v38 = vadd.f32 %v3063_v49, %v6121_v56  ;;  %v6122_v52 = vld [vmem:[#allocation19_spill] sm:$0xff] }
 0x1e7   : > { %v1198_v51 = vadd.f32 %v1197_v2, %v3600_v42  ;;  %v1461_v40 = vadd.f32 %v1460_v8, %v1334_v5  ;;  %v1338_v8 = vmul.f32 %v3625_v15, %v3625_v15  ;;  %v3696_v44 = vadd.f32 %v3063_v49, %v6122_v52 }
 0x1e8   : > { %v1345_v54 = vmul.f32 %v3680_v19, %v3680_v19  ;;  %v3703_v56 = vadd.f32 %v3063_v49, %v3150_v32  ;;  %v3710_v52 = vadd.f32 %v3063_v49, %v3194_v39  ;;  %v3717_v32 = vadd.f32 %v3063_v49, %v3235_v18 }
 0x1e9   : > { %v1199_v9 = vadd.f32 %v1198_v51, %v3609_v12  ;;  %v1462_v41 = vadd.f32 %v1461_v40, %v1335_v10  ;;  %v1339_v40 = vmul.f32 %v3634_v20, %v3634_v20  ;;  %v1347_v62 = vmul.f32 %v3696_v44, %v3696_v44 }
 0x1ea   : > { %v3724_v39 = vadd.f32 %v3063_v49, %v3277_v50  ;;  %v1350_v37 = vmul.f32 %v3717_v32, %v3717_v32  ;;  %v3733_v18 = vadd.f32 %v3063_v49, %v3317_v22  ;;  %v3740_v50 = vadd.f32 %v3063_v49, %v3351_v36 }
 0x1eb   : > { %v1200_v5 = vadd.f32 %v1199_v9, %v3618_v4  ;;  %v1463_v2 = vadd.f32 %v1462_v41, %v1336_v33  ;;  %v3651_v41 = vpop.f32.mrf.mxu3  ;;  %v3747_v22 = vadd.f32 %v3063_v49, %v3393_v13  ;;  %v3754_v36 = vadd.f32 %v3063_v49, %v3434_v29 }
 0x1ec   : > { %v1352_v17 = vmul.f32 %v3733_v18, %v3733_v18  ;;  %v3761_v13 = vadd.f32 %v3063_v49, %v3475_v14  ;;  %v3770_v29 = vadd.f32 %v3063_v49, %v3514_v53 }
 0x1ed   : > { %v1201_v10 = vadd.f32 %v1200_v5, %v3625_v15  ;;  %v1464_v51 = vadd.f32 %v1463_v2, %v1337_v57  ;;  %v1341_v2 = vmul.f32 %v3648_v31, %v3648_v31  ;;  %v1355_v35 = vmul.f32 %v3754_v36, %v3754_v36 }
 0x1ee   : > { %v1357_v53 = vmul.f32 %v3770_v29, %v3770_v29 }
 0x1ef   : > { %v1202_v9 = vadd.f32 %v1201_v10, %v3634_v20  ;;  %v1465_v33 = vadd.f32 %v1464_v51, %v1338_v8  ;;  %v3667_v51 = vpop.f32.mrf.mxu2 }
 0x1f1   : > { %v1203_v57 = vadd.f32 %v1202_v9, %v3641_v25  ;;  %v1466_v5 = vadd.f32 %v1465_v33, %v1339_v40  ;;  %v1343_v33 = vmul.f32 %v3664_v30, %v3664_v30 }
 0x1f3   : > { %v1204_v8 = vadd.f32 %v1203_v57, %v3648_v31  ;;  %v1467_v10 = vadd.f32 %v1466_v5, %v1340_v7  ;;  %v1344_v5 = vmul.f32 %v3673_v24, %v3673_v24 }
 0x1f5   : > { %v1205_v40 = vadd.f32 %v1204_v8, %v3657_v43  ;;  %v1468_v9 = vadd.f32 %v1467_v10, %v1341_v2  ;;  %v3690_v10 = vpop.f32.mrf.mxu3 }
 0x1f7   : > { %v1206_v7 = vadd.f32 %v1205_v40, %v3664_v30  ;;  %v1469_v57 = vadd.f32 %v1468_v9, %v1342_v61  ;;  %v1346_v9 = vmul.f32 %v3687_v38, %v3687_v38 }
 0x1f9   : > { %v1207_v8 = vadd.f32 %v1206_v7, %v3673_v24  ;;  %v1470_v2 = vadd.f32 %v1469_v57, %v1343_v33  ;;  %v1044_v57 = vpop.f32.mrf.mxu2 }
 0x1fb   : > { %v1471_v61 = vadd.f32 %v1470_v2, %v1344_v5  ;;  %v1208_v40 = vadd.f32 %v1207_v8, %v3680_v19  ;;  %v1348_v2 = vmul.f32 %v3703_v56, %v3703_v56 }
 0x1fd   : > { %v1209_v33 = vadd.f32 %v1208_v40, %v3687_v38  ;;  %v1472_v7 = vadd.f32 %v1471_v61, %v1345_v54  ;;  %v1349_v40 = vmul.f32 %v3710_v52, %v3710_v52 }
 0x1ff   : > { %v1210_v5 = vadd.f32 %v1209_v33, %v3696_v44  ;;  %v1473_v8 = vadd.f32 %v1472_v7, %v1346_v9  ;;  %v3727_v7 = vpop.f32.mrf.mxu3 }
 0x201   : > { %v1211_v54 = vadd.f32 %v1210_v5, %v3703_v56  ;;  %v1474_v61 = vadd.f32 %v1473_v8, %v1347_v62  ;;  %v1351_v8 = vmul.f32 %v3724_v39, %v3724_v39 }
 0x203   : > { %v1212_v33 = vadd.f32 %v1211_v54, %v3710_v52  ;;  %v1475_v9 = vadd.f32 %v1474_v61, %v1348_v2  ;;  %v1046_v61 = vpop.f32.mrf.mxu2 }
 0x205   : > { %v1213_v62 = vadd.f32 %v1212_v33, %v3717_v32  ;;  %v1476_v5 = vadd.f32 %v1475_v9, %v1349_v40  ;;  %v1353_v9 = vmul.f32 %v3740_v50, %v3740_v50 }
 0x207   : > { %v1214_v2 = vadd.f32 %v1213_v62, %v3724_v39  ;;  %v1477_v54 = vadd.f32 %v1476_v5, %v1350_v37  ;;  %v1354_v5 = vmul.f32 %v3747_v22, %v3747_v22 }
 0x209   : > { %v1215_v40 = vadd.f32 %v1214_v2, %v3733_v18  ;;  %v1478_v33 = vadd.f32 %v1477_v54, %v1351_v8  ;;  %v3764_v54 = vpop.f32.mrf.mxu3 }
 0x20b   : > { %v1216_v37 = vadd.f32 %v1215_v40, %v3740_v50  ;;  %v1479_v62 = vadd.f32 %v1478_v33, %v1352_v17  ;;  %v1356_v33 = vmul.f32 %v3761_v13, %v3761_v13 }
 0x20d   : > { %v1217_v2 = vadd.f32 %v1216_v37, %v3747_v22  ;;  %v1480_v8 = vadd.f32 %v1479_v62, %v1353_v9  ;;  %v3778_v9 = vadd.f32 %v3063_v49, %v3553_v60  ;;  %v1049_v37 = vpop.f32.mrf.mxu2  ;;  %v3792_v60 = vadd.f32 %v3063_v49, %v3628_v59 }
 0x20e   : > { %v3807_v59 = vadd.f32 %v3063_v49, %v1044_v57 }
 0x20f   : > { %v1218_v17 = vadd.f32 %v1217_v2, %v3754_v36  ;;  %v1481_v40 = vadd.f32 %v1480_v8, %v1354_v5  ;;  %v3785_v5 = vadd.f32 %v3063_v49, %v3589_v47  ;;  %6124 = vst [vmem:[#allocation3_spill] sm:$0xff] %v3792_v60  ;;  %v3799_v47 = vadd.f32 %v3063_v49, %v3667_v51 }
 0x210   : > { %6126 = vst [vmem:[#allocation7_spill] sm:$0xff] %v3807_v59  ;;  %v3813_v51 = vadd.f32 %v3063_v49, %v1046_v61  ;;  %v6130_v61 = vld [vmem:[#allocation4_spill] sm:$0xff] }
 0x211   : > { %v1219_v14 = vadd.f32 %v1218_v17, %v3761_v13  ;;  %v1482_v21 = vadd.f32 %v1481_v40, %v1355_v35  ;;  %6123 = vst [vmem:[#allocation2_spill] sm:$0xff] %v3785_v5  ;;  %v1358_v35 = vmul.f32 %v3778_v9, %v3778_v9 }
 0x212   : > { %6125 = vst [vmem:[#allocation5_spill] sm:$0xff] %v3799_v47 }
 0x213   : > { %v1220_v62 = vadd.f32 %v1219_v14, %v3770_v29  ;;  %v1483_v58 = vadd.f32 %v1482_v21, %v1356_v33  ;;  %v1359_v21 = vmul.f32 %v3785_v5, %v3785_v5  ;;  %6127 = vst [vmem:[#allocation9_spill] sm:$0xff] %v3813_v51 }
 0x215   : > { %v1484_v2 = vadd.f32 %v1483_v58, %v1357_v53  ;;  %v1221_v8 = vadd.f32 %v1220_v62, %v3778_v9  ;;  %v3801_v58 = vpop.f32.mrf.mxu3  ;;  %v1360_v62 = vmul.f32 %v3792_v60, %v3792_v60 }
 0x217   : > { %v1485_v17 = vadd.f32 %v1484_v2, %v1358_v35  ;;  %v1222_v40 = vadd.f32 %v1221_v8, %v3785_v5  ;;  %v1361_v8 = vmul.f32 %v3799_v47, %v3799_v47  ;;  %v1051_v35 = vpop.f32.mrf.mxu2 }
 0x219   : > { %v1486_v33 = vadd.f32 %v1485_v17, %v1359_v21  ;;  %v1223_v14 = vadd.f32 %v1222_v40, %v3792_v60  ;;  %v1362_v40 = vmul.f32 %v3807_v59, %v3807_v59  ;;  %v3819_v21 = vadd.f32 %v3063_v49, %v1049_v37  ;;  %v6135_v60 = vld [vmem:[#allocation13_spill] sm:$0xff] }
 0x21b   : > { %v1487_v53 = vadd.f32 %v1486_v33, %v1360_v62  ;;  %v1224_v2 = vadd.f32 %v1223_v14, %v3799_v47  ;;  %6128 = vst [vmem:[#allocation12_spill] sm:$0xff] %v3819_v21  ;;  %v1363_v14 = vmul.f32 %v3813_v51, %v3813_v51  ;;  %v3825_v62 = vadd.f32 %v3063_v49, %v1051_v35  ;;  %v6134_v47 = vld [vmem:[#allocation10_spill] sm:$0xff] }
 0x21c   : > { %v1364_v37 = vmul.f32 %v3819_v21, %v3819_v21 }
 0x21d   : > { %v1488_v5 = vadd.f32 %v1487_v53, %v1361_v8  ;;  %v1225_v17 = vadd.f32 %v1224_v2, %v3807_v59  ;;  %6129 = vst [vmem:[#allocation19_spill] sm:$0xff] %v3825_v62  ;;  %v3829_v53 = vadd.f32 %v3063_v49, %v6130_v61  ;;  %v3834_v59 = vpop.f32.mrf.mxu3 }
 0x21f   : > { %v1489_v57 = vadd.f32 %v1488_v5, %v1362_v40  ;;  %v1226_v33 = vadd.f32 %v1225_v17, %v3813_v51  ;;  %v6131_v5 = vld [vmem:[#allocation6_spill] sm:$0xff]  ;;  %v1365_v51 = vmul.f32 %v3825_v62, %v3825_v62 }
 0x220   : > { %v3838_v17 = vadd.f32 %v3063_v49, %v6131_v5 }
 0x221   : > { %v1490_v2 = vadd.f32 %v1489_v57, %v1363_v14  ;;  %v1227_v8 = vadd.f32 %v1226_v33, %v3819_v21  ;;  %v1366_v57 = vmul.f32 %v3829_v53, %v3829_v53  ;;  %v6133_v14 = vld [vmem:[#allocation8_spill] sm:$0xff] }
 0x222   : > { %6132 = vst [vmem:[#allocation4_spill] sm:$0xff] %v3838_v17  ;;  %v3847_v33 = vadd.f32 %v3063_v49, %v6133_v14  ;;  %v1367_v5 = vmul.f32 %v3838_v17, %v3838_v17  ;;  %v3861_v14 = vadd.f32 %v3063_v49, %v6135_v60  ;;  %v3877_v60 = vadd.f32 %v3063_v49, %v3148_v26 }
 0x223   : > { %v1491_v40 = vadd.f32 %v1490_v2, %v1364_v37  ;;  %v1228_v35 = vadd.f32 %v1227_v8, %v3825_v62  ;;  %v3854_v2 = vadd.f32 %v3063_v49, %v6134_v47  ;;  %v3868_v47 = vadd.f32 %v3063_v49, %v3112_v46 }
 0x224   : > { %v1368_v62 = vmul.f32 %v3847_v33, %v3847_v33  ;;  %6136 = vst [vmem:[#allocation6_spill] sm:$0xff] %v3877_v60  ;;  %v3884_v46 = vadd.f32 %v3063_v49, %v3184_v27  ;;  %v3891_v26 = vadd.f32 %v3063_v49, %v3217_v34  ;;  %v3898_v27 = vadd.f32 %v3063_v49, %v3251_v28 }
 0x225   : > { %v1229_v61 = vadd.f32 %v1228_v35, %v3829_v53  ;;  %v1492_v21 = vadd.f32 %v1491_v40, %v1365_v51  ;;  %v1369_v40 = vmul.f32 %v3854_v2, %v3854_v2  ;;  %v3905_v34 = vadd.f32 %v3063_v49, %v3286_v23 }
 0x226   : > { %6137 = vst [vmem:[#allocation8_spill] sm:$0xff] %v3891_v26  ;;  %v3914_v28 = vadd.f32 %v3063_v49, %v3315_v45  ;;  %v3921_v23 = vadd.f32 %v3063_v49, %v3342_v63  ;;  %v3928_v45 = vadd.f32 %v3063_v49, %v3376_v6  ;;  %v3935_v63 = vadd.f32 %v3063_v49, %v3418_v1  ;;  %v3943_v6 = vld [vmem:[%s5865_s2] ss:$0 sm:$0xff] }
 0x227   : > { %v1230_v8 = vadd.f32 %v1229_v61, %v3838_v17  ;;  %v1493_v37 = vadd.f32 %v1492_v21, %v1366_v57  ;;  %v3871_v57 = vpop.f32.mrf.mxu3  ;;  %v1370_v17 = vmul.f32 %v3861_v14, %v3861_v14  ;;  %6138 = vst [vmem:[#allocation10_spill] sm:$0xff] %v3898_v27 }
 0x228   : > { %6139 = vst [vmem:[#allocation13_spill] sm:$0xff] %v3921_v23  ;;  %v1380_v1 = vmul.f32 %v3935_v63, %v3935_v63 }
 0x229   : > { %v1231_v35 = vadd.f32 %v1230_v8, %v3847_v33  ;;  %v1494_v51 = vadd.f32 %v1493_v37, %v1367_v5  ;;  %v1371_v37 = vmul.f32 %v3868_v47, %v3868_v47  ;;  %6140 = vst [vmem:[#allocation78_spill] sm:$0xff] %v3935_v63 }
 0x22b   : > { %v1232_v61 = vadd.f32 %v1231_v35, %v3854_v2  ;;  %v1495_v21 = vadd.f32 %v1494_v51, %v1368_v62  ;;  %v1372_v51 = vmul.f32 %v3877_v60, %v3877_v60 }
 0x22d   : > { %v1233_v5 = vadd.f32 %v1232_v61, %v3861_v14  ;;  %v1496_v8 = vadd.f32 %v1495_v21, %v1369_v40  ;;  %v1373_v21 = vmul.f32 %v3884_v46, %v3884_v46 }
 0x22f   : > { %v1234_v62 = vadd.f32 %v1233_v5, %v3868_v47  ;;  %v1497_v35 = vadd.f32 %v1496_v8, %v1370_v17  ;;  %v1374_v8 = vmul.f32 %v3891_v26, %v3891_v26 }
 0x231   : > { %v1235_v61 = vadd.f32 %v1234_v62, %v3877_v60  ;;  %v1498_v40 = vadd.f32 %v1497_v35, %v1371_v37  ;;  %v3908_v35 = vpop.f32.mrf.mxu3  ;;  %v1375_v60 = vmul.f32 %v3898_v27, %v3898_v27 }
 0x233   : > { %v1236_v5 = vadd.f32 %v1235_v61, %v3884_v46  ;;  %v1499_v17 = vadd.f32 %v1498_v40, %v1372_v51  ;;  %v1376_v40 = vmul.f32 %v3905_v34, %v3905_v34 }
 0x235   : > { %v1237_v62 = vadd.f32 %v1236_v5, %v3891_v26  ;;  %v1500_v37 = vadd.f32 %v1499_v17, %v1373_v21  ;;  %v1377_v17 = vmul.f32 %v3914_v28, %v3914_v28 }
 0x237   : > { %v1238_v51 = vadd.f32 %v1237_v62, %v3898_v27  ;;  %v1501_v61 = vadd.f32 %v1500_v37, %v1374_v8  ;;  %v1378_v62 = vmul.f32 %v3921_v23, %v3921_v23 }
 0x239   : > { %v1239_v21 = vadd.f32 %v1238_v51, %v3905_v34  ;;  %v1502_v5 = vadd.f32 %v1501_v61, %v1375_v60  ;;  %v1379_v51 = vmul.f32 %v3928_v45, %v3928_v45  ;;  %v3947_v61 = vadd.f32 %v3943_v6, %v3459_v48  ;;  %v1124_v49 = vpop.f32.mrf.mxu3 }
 0x23a   : > { %v3961_v48 = vadd.f32 %v3943_v6, %v3537_v0  ;;  %v3975_v0 = vadd.f32 %v3943_v6, %v3612_v11  ;;  %v3989_v11 = vadd.f32 %v3943_v6, %v3690_v10  ;;  %v4003_v10 = vadd.f32 %v3943_v6, %v3764_v54 }
 0x23b   : > { %v1503_v26 = vadd.f32 %v1502_v5, %v1376_v40  ;;  %v1240_v8 = vadd.f32 %v1239_v21, %v3914_v28 }
 0x23c   : > { %6142 = vst [vmem:[#allocation80_spill] sm:$0xff] %v3975_v0 }
 0x23d   : > { %v1241_v37 = vadd.f32 %v1240_v8, %v3921_v23  ;;  %v1504_v60 = vadd.f32 %v1503_v26, %v1377_v17  ;;  %v3954_v26 = vadd.f32 %v3943_v6, %v3498_v55  ;;  %v1381_v8 = vmul.f32 %v3947_v61, %v3947_v61  ;;  %6144 = vst [vmem:[#allocation82_spill] sm:$0xff] %v3989_v11 }
 0x23e   : > { %v3968_v55 = vadd.f32 %v3943_v6, %v3575_v16  ;;  %v3982_v16 = vadd.f32 %v3943_v6, %v3651_v41  ;;  %v3996_v41 = vadd.f32 %v3943_v6, %v3727_v7  ;;  %6146 = vst [vmem:[#allocation84_spill] sm:$0xff] %v4003_v10 }
 0x23f   : > { %v1242_v40 = vadd.f32 %v1241_v37, %v3928_v45  ;;  %v1505_v21 = vadd.f32 %v1504_v60, %v1378_v62  ;;  %6141 = vst [vmem:[#allocation79_spill] sm:$0xff] %v3954_v26  ;;  %v1382_v60 = vmul.f32 %v3954_v26, %v3954_v26 }
 0x240   : > { %6143 = vst [vmem:[#allocation81_spill] sm:$0xff] %v3982_v16 }
 0x241   : > { %v1243_v5 = vadd.f32 %v1242_v40, %v3935_v63  ;;  %v1506_v17 = vadd.f32 %v1505_v21, %v1379_v51  ;;  %v1383_v21 = vmul.f32 %v3961_v48, %v3961_v48  ;;  %6145 = vst [vmem:[#allocation83_spill] sm:$0xff] %v3996_v41 }
 0x243   : > { %v1244_v62 = vadd.f32 %v1243_v5, %v3947_v61  ;;  %v1507_v37 = vadd.f32 %v1506_v17, %v1380_v1  ;;  %v1384_v17 = vmul.f32 %v3968_v55, %v3968_v55 }
 0x245   : > { %v1245_v40 = vadd.f32 %v1244_v62, %v3954_v26  ;;  %v1508_v51 = vadd.f32 %v1507_v37, %v1381_v8  ;;  %v1126_v37 = vpop.f32.mrf.mxu3  ;;  %v1385_v26 = vmul.f32 %v3975_v0, %v3975_v0 }
 0x247   : > { %v1246_v5 = vadd.f32 %v1245_v40, %v3961_v48  ;;  %v1509_v1 = vadd.f32 %v1508_v51, %v1382_v60  ;;  %v1386_v51 = vmul.f32 %v3982_v16, %v3982_v16 }
 0x249   : > { %v1247_v62 = vadd.f32 %v1246_v5, %v3968_v55  ;;  %v1510_v8 = vadd.f32 %v1509_v1, %v1383_v21  ;;  %v1387_v1 = vmul.f32 %v3989_v11, %v3989_v11 }
 0x24b   : > { %v1248_v60 = vadd.f32 %v1247_v62, %v3975_v0  ;;  %v1511_v40 = vadd.f32 %v1510_v8, %v1384_v17  ;;  %v1388_v8 = vmul.f32 %v3996_v41, %v3996_v41 }
 0x24d   : > { %v1249_v21 = vadd.f32 %v1248_v60, %v3982_v16  ;;  %v1512_v5 = vadd.f32 %v1511_v40, %v1385_v26  ;;  %v4011_v60 = vadd.f32 %v3943_v6, %v3801_v58  ;;  %v1389_v40 = vmul.f32 %v4003_v10, %v4003_v10 }
 0x24e   : > { %v4025_v58 = vadd.f32 %v3943_v6, %v3871_v57 }
 0x24f   : > { %v1250_v62 = vadd.f32 %v1249_v21, %v3989_v11  ;;  %v1513_v17 = vadd.f32 %v1512_v5, %v1386_v51  ;;  %v4018_v21 = vadd.f32 %v3943_v6, %v3834_v59  ;;  %v1129_v51 = vpop.f32.mrf.mxu3  ;;  %v4032_v59 = vadd.f32 %v3943_v6, %v3908_v35 }
 0x250   : > { %6147 = vst [vmem:[#allocation85_spill] sm:$0xff] %v4025_v58 }
 0x251   : > { %v1251_v0 = vadd.f32 %v1250_v62, %v3996_v41  ;;  %v1514_v7 = vadd.f32 %v1513_v17, %v1387_v1  ;;  %v1390_v1 = vmul.f32 %v4011_v60, %v4011_v60  ;;  %v1391_v17 = vmul.f32 %v4018_v21, %v4018_v21  ;;  %6148 = vst [vmem:[#allocation86_spill] sm:$0xff] %v4032_v59 }
 0x253   : > { %v1252_v26 = vadd.f32 %v1251_v0, %v4003_v10  ;;  %v1515_v54 = vadd.f32 %v1514_v7, %v1388_v8 }
 0x255   : > { %v1516_v5 = vadd.f32 %v1515_v54, %v1389_v40  ;;  %v1253_v11 = vadd.f32 %v1252_v26, %v4011_v60  ;;  %v1392_v26 = vmul.f32 %v4025_v58, %v4025_v58  ;;  %v4038_v40 = vadd.f32 %v3943_v6, %v1124_v49 }
 0x256   : > { %v4050_v49 = vadd.f32 %v3943_v6, %v1129_v51 }
 0x257   : > { %v1517_v0 = vadd.f32 %v1516_v5, %v1390_v1  ;;  %v1254_v62 = vadd.f32 %v1253_v11, %v4018_v21  ;;  %6149 = vst [vmem:[#allocation87_spill] sm:$0xff] %v4038_v40  ;;  %v1393_v11 = vmul.f32 %v4032_v59, %v4032_v59  ;;  %v1394_v35 = vmul.f32 %v4038_v40, %v4038_v40 }
 0x258   : > { %6151 = vst [vmem:[#allocation89_spill] sm:$0xff] %v4050_v49  ;;  %v6167_v16 = vld [vmem:[#allocation86_spill] sm:$0xff] }
 0x259   : > { %v1518_v8 = vadd.f32 %v1517_v0, %v1391_v17  ;;  %v1255_v7 = vadd.f32 %v1254_v62, %v4025_v58  ;;  %v4047_v0 = vadd.f32 %v3943_v6, %v1126_v37  ;;  %v1131_v62 = vpop.f32.mrf.mxu3  ;;  %v1396_v37 = vmul.f32 %v4050_v49, %v4050_v49 }
 0x25b   : > { %v1519_v57 = vadd.f32 %v1518_v8, %v1392_v26  ;;  %v1256_v54 = vadd.f32 %v1255_v7, %v4032_v59  ;;  %6150 = vst [vmem:[#allocation88_spill] sm:$0xff] %v4047_v0  ;;  %v1395_v7 = vmul.f32 %v4047_v0, %v4047_v0  ;;  %v4056_v26 = vadd.f32 %v3943_v6, %v1131_v62 }
 0x25d   : > { %v1520_v5 = vadd.f32 %v1519_v57, %v1393_v11  ;;  %v1257_v1 = vadd.f32 %v1256_v54, %v4038_v40  ;;  %v1397_v51 = vmul.f32 %v4056_v26, %v4056_v26 }
 0x25f   : > { %v1521_v17 = vadd.f32 %v1520_v5, %v1394_v35  ;;  %v1258_v8 = vadd.f32 %v1257_v1, %v4047_v0  ;;  %v6170_v10 = vld [vmem:[#allocation89_spill] sm:$0xff] }
 0x261   : > { %v1259_v57 = vadd.f32 %v1258_v8, %v4050_v49  ;;  %v1522_v11 = vadd.f32 %v1521_v17, %v1395_v7 }
 0x262   : > { %v6169_v41 = vld [vmem:[#allocation88_spill] sm:$0xff] }
 0x263   : > { %v1260_v54 = vadd.f32 %v1259_v57, %v4056_v26  ;;  %v1523_v5 = vadd.f32 %v1522_v11, %v1396_v37 }
 0x265   : > { %1261 = vadd.xlane.f32.xlu0 %v1260_v54  ;;  %v1524_v1 = vadd.f32 %v1523_v5, %v1397_v51 }
 0x26d   : > { %1525 = vadd.xlane.f32.xlu0 %v1524_v1 }
 0x2d8   : > { %v1262_v35 = vpop.xlane.xlu0 %1261 }
 0x2d9   : > { %v1263_v0 = vrot.slane %v1262_v35, 4 }
 0x2db   : > { %v1264_v40 = vadd.f32 %v1263_v0, %v1262_v35 }
 0x2dd   : > { %v1265_v6 = vrot.slane %v1264_v40, 2 }
 0x2df   : > { %v1266_v62 = vadd.f32 %v1265_v6, %v1264_v40 }
 0x2e0   : > { %v1526_v59 = vpop.xlane.xlu0 %1525 }
 0x2e1   : > { %v1527_v8 = vrot.slane %v1526_v59, 4  ;;  %v1267_v58 = vrot.slane %v1266_v62, 1 }
 0x2e3   : > { %v1528_v57 = vadd.f32 %v1527_v8, %v1526_v59  ;;  %v1268_v17 = vadd.f32 %v1267_v58, %v1266_v62  ;;  %v6160_v8 = vld [vmem:[#allocation6_spill] sm:$0xff]  ;;  %v6161_v62 = vld [vmem:[#allocation8_spill] sm:$0xff] }
 0x2e5   : > { %v1529_v7 = vrot.slane %v1528_v57, 2  ;;  %2782 = vpush %v1268_v17 }
 0x2e7   : > { %v1530_v49 = vadd.f32 %v1529_v7, %v1528_v57  ;;  %v6166_v7 = vld [vmem:[#allocation85_spill] sm:$0xff] }
 0x2e9   : > { %v1531_v54 = vrot.slane %v1530_v49, 1 }
 0x2eb   : > { %v1532_v11 = vadd.f32 %v1531_v54, %v1530_v49 }
 0x2ed   : > { %2784 = vpush %v1532_v11  ;;  %v6159_v11 = vld [vmem:[#allocation4_spill] sm:$0xff] }
 0x316   : > { %s2783_s21 = spop %2782 }
 0x317   : > { %s1534_s22 = smul.f32 0.00012207031, %s2783_s21 }
 0x319   : > { %s1536_s23 = smul.f32 %s1534_s22, %s1534_s22  ;;  %v4064_v1 = vstv %s1534_s22 }
 0x31a   : > { %v6171_v23 = vsub.f32 %v3593_v3, %v4064_v1  ;;  %v6172_v63 = vsub.f32 %v3600_v42, %v4064_v1  ;;  %v6173_v27 = vsub.f32 %v3609_v12, %v4064_v1  ;;  %v6174_v17 = vsub.f32 %v3618_v4, %v4064_v1 }
 0x31e   : > { %s2785_s24 = spop %2784 }
 0x31f   : > { %s1535_s25 = smul.f32 0.00012207031, %s2785_s24 }
 0x321   : > { %s1537_s26 = ssub.f32 %s1535_s25, %s1536_s23 }
 0x323   : > { %s1538_s28 = smax.f32 %s2811_s27, %s1537_s26 }
 0x324   : > { %s1539_s29 = sadd.f32 1e-05, %s1538_s28 }
 0x326   : > { %v1540_v40 = vstv %s1539_s29 }
 0x327   : > { %2800 = vrsqrt.f32 %v1540_v40  ;;  %vm1547_vm1 = vweird.f32 %v1540_v40 }
 0x32d   : > { %v2801_v0 = vpop.eup %2800 }
 0x32e   : > { %v1542_v59 = vmul.f32 %v2801_v0, %v1540_v40  ;;  %vm1548_vm0 = vweird.f32 %v2801_v0  ;;  %v6168_v40 = vld [vmem:[#allocation87_spill] sm:$0xff] }
 0x32f   : > { %vm1549_vm2 = vmor %vm1547_vm1, %vm1548_vm0 }
 0x330   : > { %v1543_v58 = vmul.f32 %v2801_v0, %v1542_v59  ;;  %v6152_v59 = vld [vmem:[#allocation2_spill] sm:$0xff] }
 0x332   : > { %v1544_v37 = vmul.f32 0.5, %v1543_v58  ;;  %v6153_v58 = vld [vmem:[#allocation3_spill] sm:$0xff] }
 0x334   : > { %v1545_v5 = vsub.f32 1.5, %v1544_v37  ;;  %v6154_v37 = vld [vmem:[#allocation5_spill] sm:$0xff] }
 0x336   : > { %v1546_v51 = vmul.f32 %v2801_v0, %v1545_v5  ;;  %v6155_v5 = vld [vmem:[#allocation7_spill] sm:$0xff] }
 0x338   : > { %v1550_v49 = vsel %vm1549_vm2, %v2801_v0, %v1546_v51  ;;  %v6156_v51 = vld [vmem:[#allocation9_spill] sm:$0xff]  ;;  %v6158_v0 = vld [vmem:[#allocation19_spill] sm:$0xff] }
 0x339   : > { %2786 = vpush %v1550_v49  ;;  %v6157_v49 = vld [vmem:[#allocation12_spill] sm:$0xff] }
 0x36a   : > { %s2787_s30 = spop %2786 }
 0x36b   : > { %v4178_v54 = vstv %s2787_s30 }
 0x36c   : > { %6165 = vst [vmem:[#allocation2_spill] sm:$0xff] %v4178_v54  ;;  %v4200_v6 = vmul.f32 %v4178_v54, %v6171_v23  ;;  %v4206_v35 = vmul.f32 %v4178_v54, %v6172_v63  ;;  %v4212_v57 = vmul.f32 %v4178_v54, %v6173_v27  ;;  %v4218_v3 = vmul.f32 %v4178_v54, %v6174_v17 }
 0x36d   : > { %v6175_v23 = vsub.f32 %v3625_v15, %v4064_v1  ;;  %v6176_v63 = vsub.f32 %v3634_v20, %v4064_v1  ;;  %v6177_v27 = vsub.f32 %v3641_v25, %v4064_v1  ;;  %v6178_v17 = vsub.f32 %v3648_v31, %v4064_v1 }
 0x36f   : > { %v4224_v42 = vmul.f32 %v4178_v54, %v6175_v23  ;;  %v4230_v12 = vmul.f32 %v4178_v54, %v6176_v63  ;;  %v4236_v4 = vmul.f32 %v4178_v54, %v6177_v27  ;;  %v4242_v15 = vmul.f32 %v4178_v54, %v6178_v17 }
 0x370   : > { %v6179_v23 = vsub.f32 %v3657_v43, %v4064_v1  ;;  %v6180_v63 = vsub.f32 %v3664_v30, %v4064_v1  ;;  %v6181_v27 = vsub.f32 %v3673_v24, %v4064_v1  ;;  %v6182_v17 = vsub.f32 %v3680_v19, %v4064_v1 }
 0x372   : > { %v4248_v20 = vmul.f32 %v4178_v54, %v6179_v23  ;;  %v4254_v25 = vmul.f32 %v4178_v54, %v6180_v63  ;;  %v4260_v31 = vmul.f32 %v4178_v54, %v6181_v27  ;;  %v4266_v43 = vmul.f32 %v4178_v54, %v6182_v17 }
 0x373   : > { %v6183_v23 = vsub.f32 %v3687_v38, %v4064_v1  ;;  %v6184_v63 = vsub.f32 %v3696_v44, %v4064_v1  ;;  %v6185_v27 = vsub.f32 %v3703_v56, %v4064_v1  ;;  %v6186_v17 = vsub.f32 %v3710_v52, %v4064_v1 }
 0x375   : > { %v4272_v30 = vmul.f32 %v4178_v54, %v6183_v23  ;;  %v4278_v24 = vmul.f32 %v4178_v54, %v6184_v63  ;;  %v4284_v19 = vmul.f32 %v4178_v54, %v6185_v27  ;;  %v4290_v38 = vmul.f32 %v4178_v54, %v6186_v17 }
 0x376   : > { %v6187_v23 = vsub.f32 %v3717_v32, %v4064_v1  ;;  %v6188_v63 = vsub.f32 %v3724_v39, %v4064_v1  ;;  %v6189_v27 = vsub.f32 %v3733_v18, %v4064_v1  ;;  %v6190_v17 = vsub.f32 %v3740_v50, %v4064_v1 }
 0x378   : > { %v4296_v44 = vmul.f32 %v4178_v54, %v6187_v23  ;;  %v4302_v56 = vmul.f32 %v4178_v54, %v6188_v63  ;;  %v4308_v52 = vmul.f32 %v4178_v54, %v6189_v27  ;;  %v4314_v32 = vmul.f32 %v4178_v54, %v6190_v17 }
 0x379   : > { %v6191_v23 = vsub.f32 %v3747_v22, %v4064_v1  ;;  %v6192_v63 = vsub.f32 %v3754_v36, %v4064_v1  ;;  %v6193_v27 = vsub.f32 %v3761_v13, %v4064_v1  ;;  %v6194_v17 = vsub.f32 %v3770_v29, %v4064_v1 }
 0x37b   : > { %v4320_v39 = vmul.f32 %v4178_v54, %v6191_v23  ;;  %v4326_v18 = vmul.f32 %v4178_v54, %v6192_v63  ;;  %v4332_v50 = vmul.f32 %v4178_v54, %v6193_v27  ;;  %v4338_v22 = vmul.f32 %v4178_v54, %v6194_v17 }
 0x37c   : > { %v6195_v23 = vsub.f32 %v3778_v9, %v4064_v1  ;;  %v6196_v63 = vsub.f32 %v6152_v59, %v4064_v1  ;;  %v6197_v27 = vsub.f32 %v6153_v58, %v4064_v1  ;;  %v6198_v17 = vsub.f32 %v6154_v37, %v4064_v1 }
 0x37e   : > { %v4344_v36 = vmul.f32 %v4178_v54, %v6195_v23  ;;  %v4350_v13 = vmul.f32 %v4178_v54, %v6196_v63  ;;  %v4356_v29 = vmul.f32 %v4178_v54, %v6197_v27  ;;  %v4362_v9 = vmul.f32 %v4178_v54, %v6198_v17 }
 0x37f   : > { %v6199_v23 = vsub.f32 %v6155_v5, %v4064_v1  ;;  %v6200_v63 = vsub.f32 %v6156_v51, %v4064_v1  ;;  %v6201_v27 = vsub.f32 %v6157_v49, %v4064_v1  ;;  %v6202_v17 = vsub.f32 %v6158_v0, %v4064_v1 }
 0x381   : > { %v4368_v59 = vmul.f32 %v4178_v54, %v6199_v23  ;;  %v4374_v58 = vmul.f32 %v4178_v54, %v6200_v63  ;;  %v4380_v37 = vmul.f32 %v4178_v54, %v6201_v27  ;;  %v4386_v5 = vmul.f32 %v4178_v54, %v6202_v17 }
 0x382   : > { %v6203_v23 = vsub.f32 %v3829_v53, %v4064_v1  ;;  %v6204_v63 = vsub.f32 %v6159_v11, %v4064_v1  ;;  %v6205_v27 = vsub.f32 %v3847_v33, %v4064_v1  ;;  %v6206_v17 = vsub.f32 %v3854_v2, %v4064_v1 }
 0x384   : > { %v4392_v51 = vmul.f32 %v4178_v54, %v6203_v23  ;;  %v4398_v49 = vmul.f32 %v4178_v54, %v6204_v63  ;;  %v4404_v0 = vmul.f32 %v4178_v54, %v6205_v27  ;;  %v4410_v53 = vmul.f32 %v4178_v54, %v6206_v17 }
 0x385   : > { %v6207_v23 = vsub.f32 %v3861_v14, %v4064_v1  ;;  %v6208_v63 = vsub.f32 %v3868_v47, %v4064_v1  ;;  %v6210_v27 = vsub.f32 %v6160_v8, %v4064_v1  ;;  %v6211_v17 = vsub.f32 %v3884_v46, %v4064_v1 }
 0x387   : > { %v4416_v11 = vmul.f32 %v4178_v54, %v6207_v23  ;;  %v4422_v33 = vmul.f32 %v4178_v54, %v6208_v63  ;;  %v4428_v2 = vmul.f32 %v4178_v54, %v6210_v27  ;;  %v4434_v14 = vmul.f32 %v4178_v54, %v6211_v17  ;;  %v6214_v63 = vld [vmem:[#allocation10_spill] sm:$0xff] }
 0x388   : > { %v6212_v23 = vsub.f32 %v6161_v62, %v4064_v1  ;;  %v6216_v27 = vsub.f32 %v3905_v34, %v4064_v1  ;;  %v6218_v17 = vsub.f32 %v3914_v28, %v4064_v1 }
 0x389   : > { %6209 = vst [vmem:[#allocation3_spill] sm:$0xff] %v4422_v33  ;;  %v6215_v33 = vsub.f32 %v6214_v63, %v4064_v1 }
 0x38a   : > { %v4440_v47 = vmul.f32 %v4178_v54, %v6212_v23  ;;  %v4452_v46 = vmul.f32 %v4178_v54, %v6216_v27  ;;  %v4458_v62 = vmul.f32 %v4178_v54, %v6218_v17  ;;  %v6219_v23 = vld [vmem:[#allocation13_spill] sm:$0xff]  ;;  %v6223_v27 = vld [vmem:[#allocation78_spill] sm:$0xff]  ;;  %v6225_v17 = vsub.f32 %v3947_v61, %v4064_v1 }
 0x38b   : > { %v4446_v8 = vmul.f32 %v4178_v54, %v6215_v33  ;;  %v6222_v33 = vsub.f32 %v3928_v45, %v4064_v1 }
 0x38c   : > { %6213 = vst [vmem:[#allocation5_spill] sm:$0xff] %v4440_v47  ;;  %v6220_v47 = vsub.f32 %v6219_v23, %v4064_v1  ;;  %v4482_v23 = vmul.f32 %v4178_v54, %v6225_v17  ;;  %v6234_v17 = vld [vmem:[#allocation80_spill] sm:$0xff] }
 0x38d   : > { %6217 = vst [vmem:[#allocation7_spill] sm:$0xff] %v4452_v46  ;;  %v4470_v34 = vmul.f32 %v4178_v54, %v6222_v33  ;;  %v6224_v46 = vsub.f32 %v6223_v27, %v4064_v1  ;;  %v6230_v33 = vsub.f32 %v3961_v48, %v4064_v1 }
 0x38e   : > { %v4464_v63 = vmul.f32 %v4178_v54, %v6220_v47  ;;  %6226 = vst [vmem:[#allocation12_spill] sm:$0xff] %v4482_v23  ;;  %v6227_v47 = vld [vmem:[#allocation79_spill] sm:$0xff]  ;;  %v6235_v23 = vsub.f32 %v6234_v17, %v4064_v1 }
 0x38f   : > { %v4476_v28 = vmul.f32 %v4178_v54, %v6224_v46  ;;  %v4494_v27 = vmul.f32 %v4178_v54, %v6230_v33  ;;  %v6232_v46 = vsub.f32 %v3968_v55, %v4064_v1  ;;  %v6239_v33 = vld [vmem:[#allocation82_spill] sm:$0xff] }
 0x390   : > { %6221 = vst [vmem:[#allocation9_spill] sm:$0xff] %v4464_v63  ;;  %v6228_v63 = vsub.f32 %v6227_v47, %v4064_v1  ;;  %v4506_v47 = vmul.f32 %v4178_v54, %v6235_v23  ;;  %v6243_v23 = vld [vmem:[#allocation84_spill] sm:$0xff] }
 0x391   : > { %6231 = vst [vmem:[#allocation4_spill] sm:$0xff] %v4494_v27  ;;  %v4500_v61 = vmul.f32 %v4178_v54, %v6232_v46  ;;  %v6240_v27 = vsub.f32 %v6239_v33, %v4064_v1  ;;  %v6241_v46 = vld [vmem:[#allocation83_spill] sm:$0xff] }
 0x392   : > { %v4488_v45 = vmul.f32 %v4178_v54, %v6228_v63  ;;  %6236 = vst [vmem:[#allocation8_spill] sm:$0xff] %v4506_v47  ;;  %v6237_v63 = vld [vmem:[#allocation81_spill] sm:$0xff]  ;;  %v6244_v47 = vsub.f32 %v6243_v23, %v4064_v1 }
 0x393   : > { %6233 = vst [vmem:[#allocation6_spill] sm:$0xff] %v4500_v61  ;;  %v4518_v55 = vmul.f32 %v4178_v54, %v6240_v27  ;;  %v6242_v61 = vsub.f32 %v6241_v46, %v4064_v1  ;;  %v6247_v27 = vsub.f32 %v4018_v21, %v4064_v1 }
 0x394   : > { %6229 = vst [vmem:[#allocation19_spill] sm:$0xff] %v4488_v45  ;;  %v6238_v45 = vsub.f32 %v6237_v63, %v4064_v1  ;;  %v4530_v63 = vmul.f32 %v4178_v54, %v6244_v47  ;;  %v6251_v47 = vsub.f32 %v6167_v16, %v4064_v1 }
 0x395   : > { %v4524_v17 = vmul.f32 %v4178_v54, %v6242_v61  ;;  %v4542_v46 = vmul.f32 %v4178_v54, %v6247_v27  ;;  %v6249_v61 = vsub.f32 %v6166_v7, %v4064_v1  ;;  %v6255_v27 = vsub.f32 %v6169_v41, %v4064_v1 }
 0x396   : > { %v4512_v48 = vmul.f32 %v4178_v54, %v6238_v45  ;;  %v6245_v45 = vsub.f32 %v4011_v60, %v4064_v1  ;;  %v4554_v60 = vmul.f32 %v4178_v54, %v6251_v47  ;;  %v6259_v47 = vsub.f32 %v4056_v26, %v4064_v1  ;;  %v4620_v26 = vld [vmem:[%s5866_s3] ss:$0 sm:$0xff] }
 0x397   : > { %6248 = vst [vmem:[#allocation86_spill] sm:$0xff] %v4542_v46  ;;  %v4548_v23 = vmul.f32 %v4178_v54, %v6249_v61  ;;  %v4566_v7 = vmul.f32 %v4178_v54, %v6255_v27  ;;  %v6257_v61 = vsub.f32 %v6170_v10, %v4064_v1  ;;  %v6309_v46 = vld [vmem:[#allocation12_spill] sm:$0xff] }
 0x398   : > { %v4536_v33 = vmul.f32 %v4178_v54, %v6245_v45  ;;  %6252 = vst [vmem:[#allocation88_spill] sm:$0xff] %v4554_v60  ;;  %v6253_v45 = vsub.f32 %v6168_v40, %v4064_v1  ;;  %v4578_v40 = vmul.f32 %v4178_v54, %v6259_v47  ;;  %v4657_v60 = vmul.f32 %v4620_v26, %v4200_v6  ;;  %v6302_v47 = vld [vmem:[#allocation7_spill] sm:$0xff]  ;;  %v6313_v27 = vld [vmem:[#allocation4_spill] sm:$0xff] }
 0x399   : > { %6250 = vst [vmem:[#allocation87_spill] sm:$0xff] %v4548_v23  ;;  %v4572_v16 = vmul.f32 %v4178_v54, %v6257_v61  ;;  %v6271_v23 = vld [vmem:[#allocation77_spill] sm:$0xff]  ;;  %v4677_v6 = vmul.f32 %v4620_v26, %v4230_v12  ;;  %v4697_v12 = vmul.f32 %v4620_v26, %v4260_v31  ;;  %v4717_v31 = vmul.f32 %v4620_v26, %v4290_v38 }
 0x39a   : > { %6246 = vst [vmem:[#allocation85_spill] sm:$0xff] %v4536_v33  ;;  %v4560_v21 = vmul.f32 %v4178_v54, %v6253_v45  ;;  %v1616_v10 = vsub.f32 %v6271_v23, %v4064_v1  ;;  %v4665_v23 = vmul.f32 %v4620_v26, %v4212_v57  ;;  %v4685_v57 = vmul.f32 %v4620_v26, %v4242_v15  ;;  %v6299_v33 = vld [vmem:[#allocation5_spill] sm:$0xff]  ;;  %v6315_v41 = vld [vmem:[#allocation6_spill] sm:$0xff]  ;;  %v6317_v45 = vld [vmem:[#allocation8_spill] sm:$0xff] }
 0x39b   : > { %6256 = vst [vmem:[#allocation10_spill] sm:$0xff] %v4566_v7  ;;  %v4661_v7 = vmul.f32 %v4620_v26, %v4206_v35  ;;  %v4681_v35 = vmul.f32 %v4620_v26, %v4236_v4  ;;  %v4701_v4 = vmul.f32 %v4620_v26, %v4266_v43  ;;  %v4705_v15 = vmul.f32 %v4620_v26, %v4272_v30 }
 0x39c   : > { %6254 = vst [vmem:[#allocation89_spill] sm:$0xff] %v4560_v21  ;;  %v1745_v61 = vmul.f32 %v4178_v54, %v1616_v10  ;;  %v4721_v43 = vmul.f32 %v4620_v26, %v4296_v44  ;;  %v4725_v30 = vmul.f32 %v4620_v26, %v4302_v56  ;;  %v4737_v38 = vmul.f32 %v4620_v26, %v4320_v39  ;;  %v6305_v54 = vld [vmem:[#allocation9_spill] sm:$0xff]  ;;  %v6311_v10 = vld [vmem:[#allocation19_spill] sm:$0xff] }
 0x39d   : > { %6258 = vst [vmem:[#allocation13_spill] sm:$0xff] %v4572_v16  ;;  %v4669_v16 = vmul.f32 %v4620_v26, %v4218_v3  ;;  %v4689_v3 = vmul.f32 %v4620_v26, %v4248_v20  ;;  %v4709_v20 = vmul.f32 %v4620_v26, %v4278_v24  ;;  %v4729_v24 = vmul.f32 %v4620_v26, %v4308_v52 }
 0x39e   : > { %6260 = vst [vmem:[#allocation78_spill] sm:$0xff] %v4578_v40  ;;  %v4653_v21 = vmul.f32 %v4620_v26, %v1745_v61  ;;  %v4673_v61 = vmul.f32 %v4620_v26, %v4224_v42  ;;  %v4693_v42 = vmul.f32 %v4620_v26, %v4254_v25  ;;  %v4713_v25 = vmul.f32 %v4620_v26, %v4284_v19  ;;  %v6295_v40 = vld [vmem:[#allocation3_spill] sm:$0xff] }
 0x39f   : > { %v4733_v19 = vmul.f32 %v4620_v26, %v4314_v32  ;;  %v4741_v44 = vmul.f32 %v4620_v26, %v4326_v18  ;;  %v4745_v56 = vmul.f32 %v4620_v26, %v4332_v50  ;;  %v4749_v52 = vmul.f32 %v4620_v26, %v4338_v22 }
 0x3a0   : > { %v4753_v32 = vmul.f32 %v4620_v26, %v4344_v36  ;;  %v4757_v39 = vmul.f32 %v4620_v26, %v4350_v13  ;;  %v4761_v18 = vmul.f32 %v4620_v26, %v4356_v29  ;;  %v4765_v50 = vmul.f32 %v4620_v26, %v4362_v9 }
 0x3a1   : > { %v4769_v22 = vmul.f32 %v4620_v26, %v4368_v59  ;;  %v4773_v36 = vmul.f32 %v4620_v26, %v4374_v58  ;;  %v4777_v13 = vmul.f32 %v4620_v26, %v4380_v37  ;;  %v4781_v29 = vmul.f32 %v4620_v26, %v4386_v5 }
 0x3a2   : > { %v4785_v9 = vmul.f32 %v4620_v26, %v4392_v51  ;;  %v4789_v59 = vmul.f32 %v4620_v26, %v4398_v49  ;;  %v4793_v58 = vmul.f32 %v4620_v26, %v4404_v0  ;;  %v4797_v37 = vmul.f32 %v4620_v26, %v4410_v53 }
 0x3a3   : > { %v4801_v5 = vmul.f32 %v4620_v26, %v4416_v11  ;;  %v4805_v51 = vmul.f32 %v4620_v26, %v6295_v40  ;;  %v4809_v49 = vmul.f32 %v4620_v26, %v4428_v2  ;;  %v4813_v0 = vmul.f32 %v4620_v26, %v4434_v14 }
 0x3a4   : > { %v4817_v53 = vmul.f32 %v4620_v26, %v6299_v33  ;;  %v4821_v11 = vmul.f32 %v4620_v26, %v4446_v8  ;;  %v4825_v40 = vmul.f32 %v4620_v26, %v6302_v47  ;;  %v4829_v2 = vmul.f32 %v4620_v26, %v4458_v62 }
 0x3a5   : > { %6294 = vst [vmem:[#allocation79_spill] sm:$0xff] %v4801_v5  ;;  %v4833_v14 = vmul.f32 %v4620_v26, %v6305_v54  ;;  %v4837_v33 = vmul.f32 %v4620_v26, %v4470_v34  ;;  %v4841_v8 = vmul.f32 %v4620_v26, %v4476_v28  ;;  %v4845_v47 = vmul.f32 %v4620_v26, %v6309_v46  ;;  %v6397_v5 = vld [vmem:[#allocation27_spill] sm:$0xff] }
 0x3a6   : > { %6296 = vst [vmem:[#allocation80_spill] sm:$0xff] %v4805_v51  ;;  %v4849_v62 = vmul.f32 %v4620_v26, %v6311_v10  ;;  %v4853_v54 = vmul.f32 %v4620_v26, %v6313_v27  ;;  %v4857_v34 = vmul.f32 %v4620_v26, %v6315_v41  ;;  %v4861_v28 = vmul.f32 %v4620_v26, %v6317_v45 }
 0x3a7   : > { %6297 = vst [vmem:[#allocation81_spill] sm:$0xff] %v4809_v49  ;;  %v4865_v46 = vmul.f32 %v4620_v26, %v4512_v48  ;;  %v4869_v10 = vmul.f32 %v4620_v26, %v4518_v55  ;;  %v4873_v27 = vmul.f32 %v4620_v26, %v4524_v17  ;;  %v4877_v41 = vmul.f32 %v4620_v26, %v4530_v63 }
 0x3a8   : > { %6298 = vst [vmem:[#allocation82_spill] sm:$0xff] %v4813_v0  ;;  %v6393_v0 = vld [vmem:[#allocation25_spill] sm:$0xff] }
 0x3a9   : > { %6300 = vst [vmem:[#allocation83_spill] sm:$0xff] %v4817_v53 }
 0x3aa   : > { %6301 = vst [vmem:[#allocation84_spill] sm:$0xff] %v4821_v11 }
 0x3ab   : > { %6303 = vst [vmem:[#allocation77_spill] sm:$0xff] %v4825_v40 }
 0x3ac   : > { %6304 = vst [vmem:[#allocation3_spill] sm:$0xff] %v4829_v2 }
 0x3ad   : > { %6306 = vst [vmem:[#allocation5_spill] sm:$0xff] %v4833_v14  ;;  %v6386_v14 = vld [vmem:[#allocation22_spill] sm:$0xff] }
 0x3ae   : > { %6307 = vst [vmem:[#allocation7_spill] sm:$0xff] %v4837_v33  ;;  %v6376_v33 = vld [vmem:[#allocation18_spill] sm:$0xff] }
 0x3af   : > { %6308 = vst [vmem:[#allocation9_spill] sm:$0xff] %v4841_v8  ;;  %v6364_v8 = vld [vmem:[#allocation14_spill] sm:$0xff] }
 0x3b0   : > { %6310 = vst [vmem:[#allocation12_spill] sm:$0xff] %v4845_v47 }
 0x3b1   : > { %6312 = vst [vmem:[#allocation19_spill] sm:$0xff] %v4849_v62  ;;  %v6366_v62 = vld [vmem:[#allocation2_spill] sm:$0xff] }
 0x3b2   : > { %6314 = vst [vmem:[#allocation4_spill] sm:$0xff] %v4853_v54  ;;  %v6372_v54 = vld [vmem:[#allocation16_spill] sm:$0xff] }
 0x3b3   : > { %6316 = vst [vmem:[#allocation6_spill] sm:$0xff] %v4857_v34  ;;  %v6323_v34 = vld [vmem:[#allocation85_spill] sm:$0xff] }
 0x3b4   : > { %6318 = vst [vmem:[#allocation8_spill] sm:$0xff] %v4861_v28  ;;  %v4881_v45 = vmul.f32 %v4620_v26, %v6323_v34  ;;  %v6325_v28 = vld [vmem:[#allocation86_spill] sm:$0xff] }
 0x3b5   : > { %6319 = vst [vmem:[#allocation90_spill] sm:$0xff] %v4865_v46  ;;  %v4885_v48 = vmul.f32 %v4620_v26, %v6325_v28  ;;  %v6327_v46 = vld [vmem:[#allocation87_spill] sm:$0xff] }
 0x3b6   : > { %6320 = vst [vmem:[#allocation91_spill] sm:$0xff] %v4869_v10  ;;  %v4889_v55 = vmul.f32 %v4620_v26, %v6327_v46  ;;  %v6329_v10 = vld [vmem:[#allocation88_spill] sm:$0xff] }
 0x3b7   : > { %6321 = vst [vmem:[#allocation92_spill] sm:$0xff] %v4873_v27  ;;  %v4893_v17 = vmul.f32 %v4620_v26, %v6329_v10  ;;  %v6331_v27 = vld [vmem:[#allocation89_spill] sm:$0xff] }
 0x3b8   : > { %6322 = vst [vmem:[#allocation93_spill] sm:$0xff] %v4877_v41  ;;  %v4897_v63 = vmul.f32 %v4620_v26, %v6331_v27  ;;  %v6333_v41 = vld [vmem:[#allocation10_spill] sm:$0xff] }
 0x3b9   : > { %6324 = vst [vmem:[#allocation85_spill] sm:$0xff] %v4881_v45  ;;  %v4901_v34 = vmul.f32 %v4620_v26, %v6333_v41  ;;  %v6335_v45 = vld [vmem:[#allocation13_spill] sm:$0xff]  ;;  %v6373_v41 = vsub.f32 %v6372_v54, %v4064_v1 }
 0x3ba   : > { %6326 = vst [vmem:[#allocation86_spill] sm:$0xff] %v4885_v48  ;;  %v4905_v28 = vmul.f32 %v4620_v26, %v6335_v45  ;;  %v6337_v48 = vld [vmem:[#allocation78_spill] sm:$0xff]  ;;  %v6365_v45 = vsub.f32 %v6364_v8, %v4064_v1 }
 0x3bb   : > { %6328 = vst [vmem:[#allocation87_spill] sm:$0xff] %v4889_v55  ;;  %v4909_v46 = vmul.f32 %v4620_v26, %v6337_v48  ;;  %v6369_v55 = vld [vmem:[#allocation15_spill] sm:$0xff]  ;;  %v1685_v8 = vmul.f32 %v6366_v62, %v6373_v41  ;;  %v6390_v41 = vld [vmem:[#allocation24_spill] sm:$0xff] }
 0x3bc   : > { %6330 = vst [vmem:[#allocation88_spill] sm:$0xff] %v4893_v17  ;;  %v1682_v47 = vmul.f32 %v6366_v62, %v6365_v45  ;;  %v6370_v10 = vsub.f32 %v6369_v55, %v4064_v1 }
 0x3bd   : > { %6332 = vst [vmem:[#allocation89_spill] sm:$0xff] %v4897_v63  ;;  %v6388_v63 = vld [vmem:[#allocation23_spill] sm:$0xff] }
 0x3be   : > { %6334 = vst [vmem:[#allocation10_spill] sm:$0xff] %v4901_v34  ;;  %v1684_v17 = vmul.f32 %v6366_v62, %v6370_v10  ;;  %v6374_v34 = vld [vmem:[#allocation17_spill] sm:$0xff]  ;;  %v6387_v10 = vsub.f32 %v6386_v14, %v4064_v1  ;;  %v6389_v2 = vsub.f32 %v6388_v63, %v4064_v1  ;;  %v1814_v54 = vmul.f32 %v4620_v26, %v1682_v47  ;;  %v5021_v14 = vld [vmem:[%s5867_s4] ss:$0 sm:$0xff]  ;;  %v6392_v63 = vld [vmem:[#allocation76_spill] sm:$0xff] }
 0x3bf   : > { %6336 = vst [vmem:[#allocation13_spill] sm:$0xff] %v4905_v28  ;;  %v6367_v28 = vld [vmem:[#allocation11_spill] sm:$0xff]  ;;  %v6375_v45 = vsub.f32 %v6374_v34, %v4064_v1  ;;  %v6382_v34 = vld [vmem:[#allocation20_spill] sm:$0xff]  ;;  %v6394_v47 = vsub.f32 %v6393_v0, %v4064_v1 }
 0x3c0   : > { %6338 = vst [vmem:[#allocation78_spill] sm:$0xff] %v4909_v46  ;;  %v6368_v46 = vsub.f32 %v6367_v28, %v4064_v1  ;;  %v1690_v27 = vmul.f32 %v6366_v62, %v6387_v10  ;;  %v1691_v40 = vmul.f32 %v6366_v62, %v6389_v2  ;;  %v1817_v2 = vmul.f32 %v4620_v26, %v1685_v8 }
 0x3c1   : > { %v1686_v28 = vmul.f32 %v6366_v62, %v6375_v45  ;;  %v6383_v45 = vsub.f32 %v6382_v34, %v4064_v1  ;;  %v6391_v34 = vsub.f32 %v6390_v41, %v4064_v1  ;;  %v6398_v10 = vsub.f32 %v6397_v5, %v4064_v1 }
 0x3c2   : > { %v1683_v48 = vmul.f32 %v6366_v62, %v6368_v46  ;;  %v6377_v46 = vsub.f32 %v6376_v33, %v4064_v1  ;;  %v6384_v33 = vld [vmem:[#allocation21_spill] sm:$0xff]  ;;  %v5062_v5 = vmul.f32 %v4620_v26, %v1691_v40 }
 0x3c3   : > { %v1688_v11 = vmul.f32 %v6366_v62, %v6383_v45  ;;  %v1692_v45 = vmul.f32 %v6366_v62, %v6391_v34  ;;  %v1818_v41 = vmul.f32 %v4620_v26, %v1686_v28  ;;  %v5044_v8 = vmul.f32 %v6366_v62, %v6398_v10  ;;  %v6399_v28 = vld [vmem:[#allocation28_spill] sm:$0xff] }
 0x3c4   : > { %v1687_v55 = vmul.f32 %v6366_v62, %v6377_v46  ;;  %v6385_v46 = vsub.f32 %v6384_v33, %v4064_v1  ;;  %v1815_v33 = vmul.f32 %v4620_v26, %v1683_v48  ;;  %v5032_v48 = vmul.f32 %v6366_v62, %v6394_v47 }
 0x3c5   : > { %v5053_v47 = vmul.f32 %v4620_v26, %v1688_v11  ;;  %v5065_v10 = vmul.f32 %v4620_v26, %v1692_v45  ;;  %v5087_v45 = vadd.f32 %v5021_v14, %v4653_v21  ;;  %v5107_v21 = vadd.f32 %v5021_v14, %v4673_v61 }
 0x3c6   : > { %v1689_v53 = vmul.f32 %v6366_v62, %v6385_v46  ;;  %v1816_v46 = vmul.f32 %v4620_v26, %v1684_v17  ;;  %v1819_v34 = vmul.f32 %v4620_v26, %v1687_v55  ;;  %v6395_v17 = vld [vmem:[#allocation26_spill] sm:$0xff]  ;;  %v6400_v55 = vsub.f32 %v6399_v28, %v4064_v1 }
 0x3c7   : > { %v6396_v49 = vsub.f32 %v6395_v17, %v4064_v1  ;;  %v5068_v28 = vadd.f32 %v5021_v14, %v1814_v54  ;;  %v5091_v54 = vadd.f32 %v5021_v14, %v4657_v60  ;;  %v5111_v60 = vadd.f32 %v5021_v14, %v4677_v6 }
 0x3c8   : > { %v5050_v0 = vmul.f32 %v6366_v62, %v6400_v55  ;;  %v5056_v17 = vmul.f32 %v4620_v26, %v1689_v53  ;;  %v5071_v55 = vadd.f32 %v5021_v14, %v1815_v33  ;;  %v5074_v11 = vadd.f32 %v5021_v14, %v1816_v46 }
 0x3c9   : > { %v5038_v51 = vmul.f32 %v6366_v62, %v6396_v49  ;;  %v5059_v49 = vmul.f32 %v4620_v26, %v1690_v27  ;;  %v5077_v53 = vadd.f32 %v5021_v14, %v1817_v2  ;;  %v5080_v27 = vadd.f32 %v5021_v14, %v1818_v41  ;;  %v6407_v41 = vld [vmem:[#allocation79_spill] sm:$0xff] }
 0x3ca   : > { %v5083_v40 = vadd.f32 %v5021_v14, %v1819_v34  ;;  %v5095_v33 = vadd.f32 %v5021_v14, %v4661_v7  ;;  %v5099_v46 = vadd.f32 %v5021_v14, %v4665_v23  ;;  %v5103_v2 = vadd.f32 %v5021_v14, %v4669_v16  ;;  %v6409_v34 = vld [vmem:[#allocation80_spill] sm:$0xff] }
 0x3cb   : > { %v5115_v7 = vadd.f32 %v5021_v14, %v4681_v35  ;;  %v5119_v23 = vadd.f32 %v5021_v14, %v4685_v57  ;;  %v5123_v16 = vadd.f32 %v5021_v14, %v4689_v3  ;;  %v5127_v61 = vadd.f32 %v5021_v14, %v4693_v42 }
 0x3cc   : > { %v5131_v6 = vadd.f32 %v5021_v14, %v4697_v12  ;;  %v5135_v35 = vadd.f32 %v5021_v14, %v4701_v4  ;;  %v5139_v57 = vadd.f32 %v5021_v14, %v4705_v15  ;;  %v5143_v3 = vadd.f32 %v5021_v14, %v4709_v20 }
 0x3cd   : > { %v5147_v42 = vadd.f32 %v5021_v14, %v4713_v25  ;;  %v5151_v12 = vadd.f32 %v5021_v14, %v4717_v31  ;;  %v5155_v4 = vadd.f32 %v5021_v14, %v4721_v43  ;;  %v5159_v15 = vadd.f32 %v5021_v14, %v4725_v30 }
 0x3ce   : > { %v5163_v20 = vadd.f32 %v5021_v14, %v4729_v24  ;;  %v5167_v25 = vadd.f32 %v5021_v14, %v4733_v19  ;;  %v5171_v31 = vadd.f32 %v5021_v14, %v4737_v38  ;;  %v5175_v43 = vadd.f32 %v5021_v14, %v4741_v44 }
 0x3cf   : > { %v5179_v30 = vadd.f32 %v5021_v14, %v4745_v56  ;;  %v5183_v24 = vadd.f32 %v5021_v14, %v4749_v52  ;;  %v5187_v19 = vadd.f32 %v5021_v14, %v4753_v32  ;;  %v5191_v38 = vadd.f32 %v5021_v14, %v4757_v39 }
 0x3d0   : > { %v5195_v44 = vadd.f32 %v5021_v14, %v4761_v18  ;;  %v5199_v56 = vadd.f32 %v5021_v14, %v4765_v50  ;;  %v5203_v52 = vadd.f32 %v5021_v14, %v4769_v22  ;;  %v5207_v32 = vadd.f32 %v5021_v14, %v4773_v36 }
 0x3d1   : > { %v5211_v39 = vadd.f32 %v5021_v14, %v4777_v13  ;;  %v5215_v18 = vadd.f32 %v5021_v14, %v4781_v29  ;;  %v5219_v50 = vadd.f32 %v5021_v14, %v4785_v9  ;;  %v5223_v22 = vadd.f32 %v5021_v14, %v4789_v59 }
 0x3d2   : > { %v5227_v36 = vadd.f32 %v5021_v14, %v4793_v58  ;;  %v5231_v13 = vadd.f32 %v5021_v14, %v4797_v37  ;;  %v5235_v29 = vadd.f32 %v5021_v14, %v6407_v41  ;;  %v5239_v9 = vadd.f32 %v5021_v14, %v6409_v34 }
 0x3d3   : > { %6401 = vst [vmem:[#allocation14_spill] sm:$0xff] %v5211_v39 }
 0x3d4   : > { %6402 = vst [vmem:[#allocation2_spill] sm:$0xff] %v5215_v18 }
 0x3d5   : > { %6403 = vst [vmem:[#allocation11_spill] sm:$0xff] %v5219_v50  ;;  %v6411_v50 = vld [vmem:[#allocation81_spill] sm:$0xff] }
 0x3d6   : > { %6404 = vst [vmem:[#allocation15_spill] sm:$0xff] %v5223_v22  ;;  %v5243_v59 = vadd.f32 %v5021_v14, %v6411_v50  ;;  %v6413_v22 = vld [vmem:[#allocation82_spill] sm:$0xff] }
 0x3d7   : > { %6405 = vst [vmem:[#allocation16_spill] sm:$0xff] %v5227_v36  ;;  %v5247_v58 = vadd.f32 %v5021_v14, %v6413_v22  ;;  %v6415_v36 = vld [vmem:[#allocation83_spill] sm:$0xff] }
 0x3d8   : > { %6406 = vst [vmem:[#allocation17_spill] sm:$0xff] %v5231_v13  ;;  %v5251_v37 = vadd.f32 %v5021_v14, %v6415_v36  ;;  %v6417_v13 = vld [vmem:[#allocation84_spill] sm:$0xff] }
 0x3d9   : > { %6408 = vst [vmem:[#allocation18_spill] sm:$0xff] %v5235_v29  ;;  %v5255_v41 = vadd.f32 %v5021_v14, %v6417_v13  ;;  %v6419_v29 = vld [vmem:[#allocation77_spill] sm:$0xff] }
 0x3da   : > { %6410 = vst [vmem:[#allocation20_spill] sm:$0xff] %v5239_v9  ;;  %v5259_v34 = vadd.f32 %v5021_v14, %v6419_v29  ;;  %v6421_v9 = vld [vmem:[#allocation3_spill] sm:$0xff] }
 0x3db   : > { %6412 = vst [vmem:[#allocation21_spill] sm:$0xff] %v5243_v59  ;;  %v5263_v50 = vadd.f32 %v5021_v14, %v6421_v9  ;;  %v6423_v59 = vld [vmem:[#allocation5_spill] sm:$0xff] }
 0x3dc   : > { %6414 = vst [vmem:[#allocation22_spill] sm:$0xff] %v5247_v58  ;;  %v5267_v22 = vadd.f32 %v5021_v14, %v6423_v59  ;;  %v6425_v58 = vld [vmem:[#allocation7_spill] sm:$0xff] }
 0x3dd   : > { %6416 = vst [vmem:[#allocation23_spill] sm:$0xff] %v5251_v37  ;;  %v5271_v36 = vadd.f32 %v5021_v14, %v6425_v58  ;;  %v6427_v37 = vld [vmem:[#allocation9_spill] sm:$0xff] }
 0x3de   : > { %6418 = vst [vmem:[#allocation24_spill] sm:$0xff] %v5255_v41  ;;  %v5275_v13 = vadd.f32 %v5021_v14, %v6427_v37  ;;  %v6429_v41 = vld [vmem:[#allocation12_spill] sm:$0xff] }
 0x3df   : > { %6420 = vst [vmem:[#allocation76_spill] sm:$0xff] %v5259_v34  ;;  %v5279_v29 = vadd.f32 %v5021_v14, %v6429_v41  ;;  %v6431_v34 = vld [vmem:[#allocation19_spill] sm:$0xff] }
 0x3e0   : > { %6422 = vst [vmem:[#allocation25_spill] sm:$0xff] %v5263_v50  ;;  %v5284_v9 = vadd.f32 %v5021_v14, %v6431_v34  ;;  %v6433_v50 = vld [vmem:[#allocation4_spill] sm:$0xff] }
 0x3e1   : > { %6424 = vst [vmem:[#allocation26_spill] sm:$0xff] %v5267_v22  ;;  %v5288_v59 = vadd.f32 %v5021_v14, %v6433_v50  ;;  %v6435_v22 = vld [vmem:[#allocation6_spill] sm:$0xff] }
 0x3e2   : > { %6426 = vst [vmem:[#allocation27_spill] sm:$0xff] %v5271_v36  ;;  %v5292_v58 = vadd.f32 %v5021_v14, %v6435_v22  ;;  %v6437_v36 = vld [vmem:[#allocation8_spill] sm:$0xff] }
 0x3e3   : > { %6428 = vst [vmem:[#allocation28_spill] sm:$0xff] %v5275_v13  ;;  %v5296_v37 = vadd.f32 %v5021_v14, %v6437_v36  ;;  %v6439_v13 = vld [vmem:[#allocation90_spill] sm:$0xff] }
 0x3e4   : > { %6430 = vst [vmem:[#allocation79_spill] sm:$0xff] %v5279_v29  ;;  %v5300_v41 = vadd.f32 %v5021_v14, %v6439_v13  ;;  %v6441_v29 = vld [vmem:[#allocation91_spill] sm:$0xff] }
 0x3e5   : > { %6432 = vst [vmem:[#allocation80_spill] sm:$0xff] %v5284_v9  ;;  %v5304_v34 = vadd.f32 %v5021_v14, %v6441_v29  ;;  %v6443_v9 = vld [vmem:[#allocation92_spill] sm:$0xff] }
 0x3e6   : > { %6434 = vst [vmem:[#allocation81_spill] sm:$0xff] %v5288_v59  ;;  %v5308_v50 = vadd.f32 %v5021_v14, %v6443_v9  ;;  %v6445_v59 = vld [vmem:[#allocation93_spill] sm:$0xff] }
 0x3e7   : > { %6436 = vst [vmem:[#allocation82_spill] sm:$0xff] %v5292_v58  ;;  %v5312_v22 = vadd.f32 %v5021_v14, %v6445_v59  ;;  %v6447_v58 = vld [vmem:[#allocation85_spill] sm:$0xff] }
 0x3e8   : > { %6438 = vst [vmem:[#allocation83_spill] sm:$0xff] %v5296_v37  ;;  %v5316_v36 = vadd.f32 %v5021_v14, %v6447_v58  ;;  %v6449_v37 = vld [vmem:[#allocation86_spill] sm:$0xff]  ;;  %v6455_v59 = vld [vmem:[#allocation89_spill] sm:$0xff] }
 0x3e9   : > { %6440 = vst [vmem:[#allocation84_spill] sm:$0xff] %v5300_v41  ;;  %v5320_v13 = vadd.f32 %v5021_v14, %v6449_v37  ;;  %v6451_v41 = vld [vmem:[#allocation87_spill] sm:$0xff]  ;;  %v5337_v58 = vadd.f32 %v5021_v14, %v6455_v59  ;;  %v2075_v59 = vmax.f32 %v5071_v55, 0.0 }
 0x3ea   : > { %6442 = vst [vmem:[#allocation77_spill] sm:$0xff] %v5304_v34  ;;  %v5324_v29 = vadd.f32 %v5021_v14, %v6451_v41  ;;  %v6453_v34 = vld [vmem:[#allocation88_spill] sm:$0xff]  ;;  %v6459_v41 = vld [vmem:[#allocation13_spill] sm:$0xff] }
 0x3eb   : > { %6444 = vst [vmem:[#allocation3_spill] sm:$0xff] %v5308_v50  ;;  %v5328_v9 = vadd.f32 %v5021_v14, %v6453_v34  ;;  %v6461_v34 = vld [vmem:[#allocation78_spill] sm:$0xff] }
 0x3ec   : > { %6446 = vst [vmem:[#allocation5_spill] sm:$0xff] %v5312_v22  ;;  %v2074_v22 = vmax.f32 %v5068_v28, 0.0  ;;  %v6465_v28 = vld [vmem:[#allocation30_spill] sm:$0xff] }
 0x3ed   : > { %6448 = vst [vmem:[#allocation7_spill] sm:$0xff] %v5316_v36  ;;  %v6457_v36 = vld [vmem:[#allocation10_spill] sm:$0xff] }
 0x3ee   : > { %6450 = vst [vmem:[#allocation9_spill] sm:$0xff] %v5320_v13  ;;  %v5341_v37 = vadd.f32 %v5021_v14, %v6457_v36  ;;  %v1952_v13 = vadd.f32 %v5021_v14, %v5053_v47  ;;  %v6463_v36 = vld [vmem:[#allocation29_spill] sm:$0xff]  ;;  %v2077_v47 = vmax.f32 %v5077_v53, 0.0 }
 0x3ef   : > { %6452 = vst [vmem:[#allocation12_spill] sm:$0xff] %v5324_v29  ;;  %v5345_v29 = vadd.f32 %v5021_v14, %v6459_v41 }
 0x3f0   : > { %6454 = vst [vmem:[#allocation19_spill] sm:$0xff] %v5328_v9  ;;  %v5349_v9 = vadd.f32 %v5021_v14, %v6461_v34  ;;  %v1953_v34 = vadd.f32 %v5021_v14, %v5056_v17  ;;  %v2080_v50 = vmax.f32 %v1952_v13, 0.0 }
 0x3f1   : > { %6456 = vst [vmem:[#allocation4_spill] sm:$0xff] %v5337_v58  ;;  %v2076_v58 = vmax.f32 %v5074_v11, 0.0  ;;  %v1826_v11 = vmul.f32 %v4620_v26, %v5038_v51  ;;  %v2079_v51 = vmax.f32 %v5083_v40, 0.0 }
 0x3f2   : > { %6458 = vst [vmem:[#allocation6_spill] sm:$0xff] %v5341_v37  ;;  %v6464_v37 = vsub.f32 %v6463_v36, %v4064_v1  ;;  %v2078_v36 = vmax.f32 %v5080_v27, 0.0  ;;  %v2081_v18 = vmax.f32 %v1953_v34, 0.0 }
 0x3f3   : > { %6460 = vst [vmem:[#allocation8_spill] sm:$0xff] %v5345_v29  ;;  %v1825_v29 = vmul.f32 %v4620_v26, %v5032_v48  ;;  %v6467_v48 = vld [vmem:[#allocation31_spill] sm:$0xff] }
 0x3f4   : > { %6462 = vst [vmem:[#allocation90_spill] sm:$0xff] %v5349_v9  ;;  %v1697_v41 = vmul.f32 %v6366_v62, %v6464_v37  ;;  %v6466_v9 = vsub.f32 %v6465_v28, %v4064_v1  ;;  %v1954_v37 = vadd.f32 %v5021_v14, %v5059_v49  ;;  %v6468_v17 = vsub.f32 %v6467_v48, %v4064_v1  ;;  %v6469_v49 = vld [vmem:[#allocation32_spill] sm:$0xff] }
 0x3f5   : > { %2202 = vst [vmem:[%s5333_s12] sm:$0xff] %v2074_v22  ;;  %v1827_v28 = vmul.f32 %v4620_v26, %v5044_v8  ;;  %v6470_v27 = vsub.f32 %v6469_v49, %v4064_v1  ;;  %v1828_v48 = vmul.f32 %v4620_v26, %v5050_v0  ;;  %v6471_v8 = vld [vmem:[#allocation33_spill] sm:$0xff]  ;;  %v1957_v49 = vadd.f32 %v5021_v14, %v1825_v29 }
 0x3f6   : > { %v1698_v55 = vmul.f32 %v6366_v62, %v6466_v9  ;;  %v1699_v53 = vmul.f32 %v6366_v62, %v6468_v17  ;;  %v1955_v9 = vadd.f32 %v5021_v14, %v5062_v5  ;;  %2203 = vst [vmem:[%s5333_s12 + $0x8] sm:$0xff] %v2075_v59  ;;  %v1956_v17 = vadd.f32 %v5021_v14, %v5065_v10 }
 0x3f7   : > { %v1700_v22 = vmul.f32 %v6366_v62, %v6470_v27  ;;  %2204 = vst [vmem:[%s5333_s12 + $0x10] sm:$0xff] %v2076_v58  ;;  %v6472_v5 = vsub.f32 %v6471_v8, %v4064_v1  ;;  %v1829_v59 = vmul.f32 %v4620_v26, %v1697_v41  ;;  %v6473_v27 = vld [vmem:[#allocation34_spill] sm:$0xff]  ;;  %v1958_v58 = vadd.f32 %v5021_v14, %v1826_v11  ;;  %v6475_v8 = vld [vmem:[#allocation35_spill] sm:$0xff] }
 0x3f8   : > { %2205 = vst [vmem:[%s5333_s12 + $0x18] sm:$0xff] %v2077_v47  ;;  %v6474_v0 = vsub.f32 %v6473_v27, %v4064_v1  ;;  %v1830_v13 = vmul.f32 %v4620_v26, %v1698_v55  ;;  %v2082_v39 = vmax.f32 %v1954_v37, 0.0  ;;  %v6476_v41 = vsub.f32 %v6475_v8, %v4064_v1  ;;  %v6477_v27 = vld [vmem:[#allocation36_spill] sm:$0xff]  ;;  %v6479_v8 = vld [vmem:[#allocation37_spill] sm:$0xff] }
 0x3f9   : > { %v1701_v40 = vmul.f32 %v6366_v62, %v6472_v5  ;;  %2206 = vst [vmem:[%s5333_s12 + $0x20] sm:$0xff] %v2078_v36  ;;  %v1831_v34 = vmul.f32 %v4620_v26, %v1699_v53  ;;  %v1959_v47 = vadd.f32 %v5021_v14, %v1827_v28  ;;  %v2083_v5 = vmax.f32 %v1955_v9, 0.0 }
 0x3fa   : > { %v1702_v10 = vmul.f32 %v6366_v62, %v6474_v0  ;;  %v1703_v29 = vmul.f32 %v6366_v62, %v6476_v41  ;;  %2207 = vst [vmem:[%s5333_s12 + $0x28] sm:$0xff] %v2079_v51  ;;  %v6478_v55 = vsub.f32 %v6477_v27, %v4064_v1  ;;  %v1832_v37 = vmul.f32 %v4620_v26, %v1700_v22  ;;  %v6481_v27 = vld [vmem:[#allocation38_spill] sm:$0xff] }
 0x3fb   : > { %v1960_v36 = vadd.f32 %v5021_v14, %v1828_v48  ;;  %v2084_v0 = vmax.f32 %v1956_v17, 0.0  ;;  %2208 = vst [vmem:[%s5333_s12 + $0x30] sm:$0xff] %v2080_v50  ;;  %v6480_v53 = vsub.f32 %v6479_v8, %v4064_v1  ;;  %v1833_v9 = vmul.f32 %v4620_v26, %v1701_v40  ;;  %v6483_v8 = vld [vmem:[#allocation39_spill] sm:$0xff] }
 0x3fc   : > { %v1704_v11 = vmul.f32 %v6366_v62, %v6478_v55  ;;  %v1961_v51 = vadd.f32 %v5021_v14, %v1829_v59  ;;  %v2085_v41 = vmax.f32 %v1957_v49, 0.0  ;;  %2209 = vst [vmem:[%s5333_s12 + $0x38] sm:$0xff] %v2081_v18  ;;  %v6482_v22 = vsub.f32 %v6481_v27, %v4064_v1  ;;  %v6485_v27 = vld [vmem:[#allocation40_spill] sm:$0xff] }
 0x3fd   : > { %v1705_v28 = vmul.f32 %v6366_v62, %v6480_v53  ;;  %v1834_v17 = vmul.f32 %v4620_v26, %v1702_v10  ;;  %v1962_v50 = vadd.f32 %v5021_v14, %v1830_v13  ;;  %v2086_v55 = vmax.f32 %v1958_v58, 0.0  ;;  %2210 = vst [vmem:[%s5333_s12 + $0x40] sm:$0xff] %v2082_v39 }
 0x3fe   : > { %v1706_v48 = vmul.f32 %v6366_v62, %v6482_v22  ;;  %v6484_v40 = vsub.f32 %v6483_v8, %v4064_v1  ;;  %v1835_v49 = vmul.f32 %v4620_v26, %v1703_v29  ;;  %v1963_v18 = vadd.f32 %v5021_v14, %v1831_v34  ;;  %2211 = vst [vmem:[%s5333_s12 + $0x48] sm:$0xff] %v2083_v5  ;;  %v6487_v8 = vld [vmem:[#allocation41_spill] sm:$0xff] }
 0x3ff   : > { %v2087_v53 = vmax.f32 %v1959_v47, 0.0  ;;  %v6486_v10 = vsub.f32 %v6485_v27, %v4064_v1  ;;  %v1836_v58 = vmul.f32 %v4620_v26, %v1704_v11  ;;  %v1964_v39 = vadd.f32 %v5021_v14, %v1832_v37  ;;  %2212 = vst [vmem:[%s5333_s12 + $0x50] sm:$0xff] %v2084_v0  ;;  %v6489_v27 = vld [vmem:[#allocation42_spill] sm:$0xff] }
 0x400   : > { %v1707_v59 = vmul.f32 %v6366_v62, %v6484_v40  ;;  %v2088_v22 = vmax.f32 %v1960_v36, 0.0  ;;  %v6488_v29 = vsub.f32 %v6487_v8, %v4064_v1  ;;  %v1837_v47 = vmul.f32 %v4620_v26, %v1705_v28  ;;  %2213 = vst [vmem:[%s5333_s12 + $0x58] sm:$0xff] %v2085_v41  ;;  %v6491_v8 = vld [vmem:[#allocation43_spill] sm:$0xff] }
 0x401   : > { %v1708_v13 = vmul.f32 %v6366_v62, %v6486_v10  ;;  %v1965_v5 = vadd.f32 %v5021_v14, %v1833_v9  ;;  %v2089_v40 = vmax.f32 %v1961_v51, 0.0  ;;  %v6490_v11 = vsub.f32 %v6489_v27, %v4064_v1  ;;  %2214 = vst [vmem:[%s5333_s12 + $0x60] sm:$0xff] %v2086_v55  ;;  %v6493_v27 = vld [vmem:[#allocation44_spill] sm:$0xff] }
 0x402   : > { %v1709_v34 = vmul.f32 %v6366_v62, %v6488_v29  ;;  %v1838_v36 = vmul.f32 %v4620_v26, %v1706_v48  ;;  %v1966_v0 = vadd.f32 %v5021_v14, %v1834_v17  ;;  %v2090_v10 = vmax.f32 %v1962_v50, 0.0  ;;  %2215 = vst [vmem:[%s5333_s12 + $0x68] sm:$0xff] %v2087_v53 }
 0x403   : > { %v1710_v37 = vmul.f32 %v6366_v62, %v6490_v11  ;;  %v6492_v28 = vsub.f32 %v6491_v8, %v4064_v1  ;;  %v1839_v51 = vmul.f32 %v4620_v26, %v1707_v59  ;;  %v1967_v41 = vadd.f32 %v5021_v14, %v1835_v49  ;;  %2216 = vst [vmem:[%s5333_s12 + $0x70] sm:$0xff] %v2088_v22  ;;  %v6495_v8 = vld [vmem:[#allocation46_spill] sm:$0xff] }
 0x404   : > { %v2091_v29 = vmax.f32 %v1963_v18, 0.0  ;;  %v6494_v48 = vsub.f32 %v6493_v27, %v4064_v1  ;;  %v1840_v50 = vmul.f32 %v4620_v26, %v1708_v13  ;;  %v1968_v55 = vadd.f32 %v5021_v14, %v1836_v58  ;;  %2217 = vst [vmem:[%s5333_s12 + $0x78] sm:$0xff] %v2089_v40  ;;  %v6497_v27 = vld [vmem:[#allocation45_spill] sm:$0xff] }
 0x405   : > { %v1711_v9 = vmul.f32 %v6366_v62, %v6492_v28  ;;  %v2092_v11 = vmax.f32 %v1964_v39, 0.0  ;;  %v6496_v59 = vsub.f32 %v6495_v8, %v4064_v1  ;;  %v1841_v18 = vmul.f32 %v4620_v26, %v1709_v34  ;;  %2218 = vst [vmem:[%s5333_s12 + $0x80] sm:$0xff] %v2090_v10  ;;  %v6499_v8 = vld [vmem:[#allocation47_spill] sm:$0xff] }
 0x406   : > { %v1712_v17 = vmul.f32 %v6366_v62, %v6494_v48  ;;  %v1969_v53 = vadd.f32 %v5021_v14, %v1837_v47  ;;  %v2093_v28 = vmax.f32 %v1965_v5, 0.0  ;;  %v6498_v13 = vsub.f32 %v6497_v27, %v4064_v1  ;;  %2219 = vst [vmem:[%s5333_s12 + $0x88] sm:$0xff] %v2091_v29  ;;  %v6501_v27 = vld [vmem:[#allocation48_spill] sm:$0xff] }
 0x407   : > { %v1713_v49 = vmul.f32 %v6366_v62, %v6496_v59  ;;  %v1842_v39 = vmul.f32 %v4620_v26, %v1710_v37  ;;  %v1970_v22 = vadd.f32 %v5021_v14, %v1838_v36  ;;  %v2094_v48 = vmax.f32 %v1966_v0, 0.0  ;;  %2220 = vst [vmem:[%s5333_s12 + $0x90] sm:$0xff] %v2092_v11 }
 0x408   : > { %v1714_v58 = vmul.f32 %v6366_v62, %v6498_v13  ;;  %v6500_v34 = vsub.f32 %v6499_v8, %v4064_v1  ;;  %v1843_v5 = vmul.f32 %v4620_v26, %v1711_v9  ;;  %v1971_v40 = vadd.f32 %v5021_v14, %v1839_v51  ;;  %v6503_v8 = vld [vmem:[#allocation49_spill] sm:$0xff]  ;;  %2221 = vst [vmem:[%s5333_s12 + $0x98] sm:$0xff] %v2093_v28 }
 0x409   : > { %v2095_v59 = vmax.f32 %v1967_v41, 0.0  ;;  %v6502_v37 = vsub.f32 %v6501_v27, %v4064_v1  ;;  %v1844_v0 = vmul.f32 %v4620_v26, %v1712_v17  ;;  %v1972_v10 = vadd.f32 %v5021_v14, %v1840_v50  ;;  %v6505_v27 = vld [vmem:[#allocation50_spill] sm:$0xff]  ;;  %2222 = vst [vmem:[%s5333_s12 + $0xa0] sm:$0xff] %v2094_v48 }
 0x40a   : > { %v1715_v47 = vmul.f32 %v6366_v62, %v6500_v34  ;;  %v2096_v13 = vmax.f32 %v1968_v55, 0.0  ;;  %v6504_v9 = vsub.f32 %v6503_v8, %v4064_v1  ;;  %v1845_v41 = vmul.f32 %v4620_v26, %v1713_v49  ;;  %v6507_v8 = vld [vmem:[#allocation51_spill] sm:$0xff] }
 0x40b   : > { %v1716_v36 = vmul.f32 %v6366_v62, %v6502_v37  ;;  %v1973_v29 = vadd.f32 %v5021_v14, %v1841_v18  ;;  %v2097_v34 = vmax.f32 %v1969_v53, 0.0  ;;  %v6506_v17 = vsub.f32 %v6505_v27, %v4064_v1  ;;  %2223 = vst [vmem:[%s5333_s12 + $0xa8] sm:$0xff] %v2095_v59  ;;  %v6509_v27 = vld [vmem:[#allocation52_spill] sm:$0xff] }
 0x40c   : > { %v1717_v51 = vmul.f32 %v6366_v62, %v6504_v9  ;;  %v1846_v55 = vmul.f32 %v4620_v26, %v1714_v58  ;;  %v1974_v11 = vadd.f32 %v5021_v14, %v1842_v39  ;;  %v2098_v37 = vmax.f32 %v1970_v22, 0.0  ;;  %2224 = vst [vmem:[%s5333_s12 + $0xb0] sm:$0xff] %v2096_v13 }
 0x40d   : > { %v1718_v50 = vmul.f32 %v6366_v62, %v6506_v17  ;;  %v6508_v49 = vsub.f32 %v6507_v8, %v4064_v1  ;;  %v1847_v53 = vmul.f32 %v4620_v26, %v1715_v47  ;;  %v1975_v28 = vadd.f32 %v5021_v14, %v1843_v5  ;;  %v6511_v8 = vld [vmem:[#allocation53_spill] sm:$0xff]  ;;  %2225 = vst [vmem:[%s5333_s12 + $0xb8] sm:$0xff] %v2097_v34 }
 0x40e   : > { %v2099_v9 = vmax.f32 %v1971_v40, 0.0  ;;  %v6510_v58 = vsub.f32 %v6509_v27, %v4064_v1  ;;  %v1848_v22 = vmul.f32 %v4620_v26, %v1716_v36  ;;  %v1976_v48 = vadd.f32 %v5021_v14, %v1844_v0  ;;  %v6513_v27 = vld [vmem:[#allocation54_spill] sm:$0xff]  ;;  %2226 = vst [vmem:[%s5333_s12 + $0xc0] sm:$0xff] %v2098_v37 }
 0x40f   : > { %v1719_v18 = vmul.f32 %v6366_v62, %v6508_v49  ;;  %v2100_v17 = vmax.f32 %v1972_v10, 0.0  ;;  %v6512_v47 = vsub.f32 %v6511_v8, %v4064_v1  ;;  %v1849_v40 = vmul.f32 %v4620_v26, %v1717_v51  ;;  %v6515_v8 = vld [vmem:[#allocation55_spill] sm:$0xff] }
 0x410   : > { %v1720_v39 = vmul.f32 %v6366_v62, %v6510_v58  ;;  %v1977_v59 = vadd.f32 %v5021_v14, %v1845_v41  ;;  %v2101_v49 = vmax.f32 %v1973_v29, 0.0  ;;  %v6514_v36 = vsub.f32 %v6513_v27, %v4064_v1  ;;  %2227 = vst [vmem:[%s5333_s12 + $0xc8] sm:$0xff] %v2099_v9  ;;  %v6517_v27 = vld [vmem:[#allocation56_spill] sm:$0xff] }
 0x411   : > { %v1721_v5 = vmul.f32 %v6366_v62, %v6512_v47  ;;  %v1850_v10 = vmul.f32 %v4620_v26, %v1718_v50  ;;  %v1978_v13 = vadd.f32 %v5021_v14, %v1846_v55  ;;  %v2102_v58 = vmax.f32 %v1974_v11, 0.0  ;;  %2228 = vst [vmem:[%s5333_s12 + $0xd0] sm:$0xff] %v2100_v17 }
 0x412   : > { %v1722_v0 = vmul.f32 %v6366_v62, %v6514_v36  ;;  %v6516_v51 = vsub.f32 %v6515_v8, %v4064_v1  ;;  %v1851_v29 = vmul.f32 %v4620_v26, %v1719_v18  ;;  %v1979_v34 = vadd.f32 %v5021_v14, %v1847_v53  ;;  %v6519_v8 = vld [vmem:[#allocation57_spill] sm:$0xff]  ;;  %2229 = vst [vmem:[%s5333_s12 + $0xd8] sm:$0xff] %v2101_v49 }
 0x413   : > { %v2103_v47 = vmax.f32 %v1975_v28, 0.0  ;;  %v6518_v50 = vsub.f32 %v6517_v27, %v4064_v1  ;;  %v1852_v11 = vmul.f32 %v4620_v26, %v1720_v39  ;;  %v1980_v37 = vadd.f32 %v5021_v14, %v1848_v22  ;;  %v6521_v27 = vld [vmem:[#allocation58_spill] sm:$0xff]  ;;  %2230 = vst [vmem:[%s5333_s12 + $0xe0] sm:$0xff] %v2102_v58 }
 0x414   : > { %v1723_v41 = vmul.f32 %v6366_v62, %v6516_v51  ;;  %v2104_v36 = vmax.f32 %v1976_v48, 0.0  ;;  %v6520_v18 = vsub.f32 %v6519_v8, %v4064_v1  ;;  %v1853_v28 = vmul.f32 %v4620_v26, %v1721_v5  ;;  %v6523_v8 = vld [vmem:[#allocation59_spill] sm:$0xff] }
 0x415   : > { %v1724_v55 = vmul.f32 %v6366_v62, %v6518_v50  ;;  %v1981_v9 = vadd.f32 %v5021_v14, %v1849_v40  ;;  %v2105_v51 = vmax.f32 %v1977_v59, 0.0  ;;  %v6522_v39 = vsub.f32 %v6521_v27, %v4064_v1  ;;  %2231 = vst [vmem:[%s5333_s12 + $0xe8] sm:$0xff] %v2103_v47  ;;  %v6525_v27 = vld [vmem:[#allocation60_spill] sm:$0xff] }
 0x416   : > { %v1725_v53 = vmul.f32 %v6366_v62, %v6520_v18  ;;  %v1854_v48 = vmul.f32 %v4620_v26, %v1722_v0  ;;  %v1982_v17 = vadd.f32 %v5021_v14, %v1850_v10  ;;  %v2106_v50 = vmax.f32 %v1978_v13, 0.0  ;;  %2232 = vst [vmem:[%s5333_s12 + $0xf0] sm:$0xff] %v2104_v36 }
 0x417   : > { %v1726_v22 = vmul.f32 %v6366_v62, %v6522_v39  ;;  %v6524_v5 = vsub.f32 %v6523_v8, %v4064_v1  ;;  %v1855_v59 = vmul.f32 %v4620_v26, %v1723_v41  ;;  %v1983_v49 = vadd.f32 %v5021_v14, %v1851_v29  ;;  %v6527_v8 = vld [vmem:[#allocation61_spill] sm:$0xff]  ;;  %2233 = vst [vmem:[%s5333_s12 + $0xf8] sm:$0xff] %v2105_v51 }
 0x418   : > { %v2107_v18 = vmax.f32 %v1979_v34, 0.0  ;;  %v6526_v0 = vsub.f32 %v6525_v27, %v4064_v1  ;;  %v1856_v13 = vmul.f32 %v4620_v26, %v1724_v55  ;;  %v1984_v58 = vadd.f32 %v5021_v14, %v1852_v11  ;;  %v6529_v27 = vld [vmem:[#allocation62_spill] sm:$0xff]  ;;  %2234 = vst [vmem:[%s5333_s12 + $0x100] sm:$0xff] %v2106_v50 }
 0x419   : > { %v1727_v40 = vmul.f32 %v6366_v62, %v6524_v5  ;;  %v2108_v39 = vmax.f32 %v1980_v37, 0.0  ;;  %v6528_v41 = vsub.f32 %v6527_v8, %v4064_v1  ;;  %v1857_v34 = vmul.f32 %v4620_v26, %v1725_v53  ;;  %v6531_v8 = vld [vmem:[#allocation63_spill] sm:$0xff] }
 0x41a   : > { %v1728_v10 = vmul.f32 %v6366_v62, %v6526_v0  ;;  %v1985_v47 = vadd.f32 %v5021_v14, %v1853_v28  ;;  %v2109_v5 = vmax.f32 %v1981_v9, 0.0  ;;  %v6530_v55 = vsub.f32 %v6529_v27, %v4064_v1  ;;  %2235 = vst [vmem:[%s5333_s12 + $0x108] sm:$0xff] %v2107_v18  ;;  %v6533_v27 = vld [vmem:[#allocation64_spill] sm:$0xff] }
 0x41b   : > { %v1729_v29 = vmul.f32 %v6366_v62, %v6528_v41  ;;  %v1858_v37 = vmul.f32 %v4620_v26, %v1726_v22  ;;  %v1986_v36 = vadd.f32 %v5021_v14, %v1854_v48  ;;  %v2110_v0 = vmax.f32 %v1982_v17, 0.0  ;;  %2236 = vst [vmem:[%s5333_s12 + $0x110] sm:$0xff] %v2108_v39 }
 0x41c   : > { %v1730_v11 = vmul.f32 %v6366_v62, %v6530_v55  ;;  %v6532_v53 = vsub.f32 %v6531_v8, %v4064_v1  ;;  %v1859_v9 = vmul.f32 %v4620_v26, %v1727_v40  ;;  %v1987_v51 = vadd.f32 %v5021_v14, %v1855_v59  ;;  %v6535_v8 = vld [vmem:[#allocation65_spill] sm:$0xff]  ;;  %2237 = vst [vmem:[%s5333_s12 + $0x118] sm:$0xff] %v2109_v5 }
 0x41d   : > { %v2111_v41 = vmax.f32 %v1983_v49, 0.0  ;;  %v6534_v22 = vsub.f32 %v6533_v27, %v4064_v1  ;;  %v1860_v17 = vmul.f32 %v4620_v26, %v1728_v10  ;;  %v1988_v50 = vadd.f32 %v5021_v14, %v1856_v13  ;;  %v6537_v27 = vld [vmem:[#allocation66_spill] sm:$0xff]  ;;  %2238 = vst [vmem:[%s5333_s12 + $0x120] sm:$0xff] %v2110_v0 }
 0x41e   : > { %v1731_v28 = vmul.f32 %v6366_v62, %v6532_v53  ;;  %v2112_v55 = vmax.f32 %v1984_v58, 0.0  ;;  %v6536_v40 = vsub.f32 %v6535_v8, %v4064_v1  ;;  %v1861_v49 = vmul.f32 %v4620_v26, %v1729_v29  ;;  %v6539_v8 = vld [vmem:[#allocation67_spill] sm:$0xff] }
 0x41f   : > { %v1732_v48 = vmul.f32 %v6366_v62, %v6534_v22  ;;  %v1989_v18 = vadd.f32 %v5021_v14, %v1857_v34  ;;  %v2113_v53 = vmax.f32 %v1985_v47, 0.0  ;;  %v6538_v10 = vsub.f32 %v6537_v27, %v4064_v1  ;;  %2239 = vst [vmem:[%s5333_s12 + $0x128] sm:$0xff] %v2111_v41  ;;  %v6541_v27 = vld [vmem:[#allocation68_spill] sm:$0xff] }
 0x420   : > { %v1733_v59 = vmul.f32 %v6366_v62, %v6536_v40  ;;  %v1862_v58 = vmul.f32 %v4620_v26, %v1730_v11  ;;  %v1990_v39 = vadd.f32 %v5021_v14, %v1858_v37  ;;  %v2114_v22 = vmax.f32 %v1986_v36, 0.0  ;;  %2240 = vst [vmem:[%s5333_s12 + $0x130] sm:$0xff] %v2112_v55 }
 0x421   : > { %v1734_v13 = vmul.f32 %v6366_v62, %v6538_v10  ;;  %v6540_v29 = vsub.f32 %v6539_v8, %v4064_v1  ;;  %v1863_v47 = vmul.f32 %v4620_v26, %v1731_v28  ;;  %v1991_v5 = vadd.f32 %v5021_v14, %v1859_v9  ;;  %v6543_v8 = vld [vmem:[#allocation69_spill] sm:$0xff]  ;;  %2241 = vst [vmem:[%s5333_s12 + $0x138] sm:$0xff] %v2113_v53 }
 0x422   : > { %v2115_v40 = vmax.f32 %v1987_v51, 0.0  ;;  %v6542_v11 = vsub.f32 %v6541_v27, %v4064_v1  ;;  %v1864_v36 = vmul.f32 %v4620_v26, %v1732_v48  ;;  %v1992_v0 = vadd.f32 %v5021_v14, %v1860_v17  ;;  %v6545_v27 = vld [vmem:[#allocation70_spill] sm:$0xff]  ;;  %2242 = vst [vmem:[%s5333_s12 + $0x140] sm:$0xff] %v2114_v22 }
 0x423   : > { %v1735_v34 = vmul.f32 %v6366_v62, %v6540_v29  ;;  %v2116_v10 = vmax.f32 %v1988_v50, 0.0  ;;  %v6544_v28 = vsub.f32 %v6543_v8, %v4064_v1  ;;  %v1865_v51 = vmul.f32 %v4620_v26, %v1733_v59  ;;  %v6547_v8 = vld [vmem:[#allocation71_spill] sm:$0xff] }
 0x424   : > { %v1736_v37 = vmul.f32 %v6366_v62, %v6542_v11  ;;  %v1993_v41 = vadd.f32 %v5021_v14, %v1861_v49  ;;  %v2117_v29 = vmax.f32 %v1989_v18, 0.0  ;;  %v6546_v48 = vsub.f32 %v6545_v27, %v4064_v1  ;;  %2243 = vst [vmem:[%s5333_s12 + $0x148] sm:$0xff] %v2115_v40  ;;  %v6549_v27 = vld [vmem:[#allocation72_spill] sm:$0xff] }
 0x425   : > { %v1737_v9 = vmul.f32 %v6366_v62, %v6544_v28  ;;  %v1866_v50 = vmul.f32 %v4620_v26, %v1734_v13  ;;  %v1994_v55 = vadd.f32 %v5021_v14, %v1862_v58  ;;  %v2118_v11 = vmax.f32 %v1990_v39, 0.0  ;;  %2244 = vst [vmem:[%s5333_s12 + $0x150] sm:$0xff] %v2116_v10 }
 0x426   : > { %v1738_v17 = vmul.f32 %v6366_v62, %v6546_v48  ;;  %v6548_v59 = vsub.f32 %v6547_v8, %v4064_v1  ;;  %v1867_v18 = vmul.f32 %v4620_v26, %v1735_v34  ;;  %v1995_v53 = vadd.f32 %v5021_v14, %v1863_v47  ;;  %v6551_v8 = vld [vmem:[#allocation73_spill] sm:$0xff]  ;;  %2245 = vst [vmem:[%s5333_s12 + $0x158] sm:$0xff] %v2117_v29 }
 0x427   : > { %v2119_v28 = vmax.f32 %v1991_v5, 0.0  ;;  %v6550_v13 = vsub.f32 %v6549_v27, %v4064_v1  ;;  %v1868_v39 = vmul.f32 %v4620_v26, %v1736_v37  ;;  %v1996_v22 = vadd.f32 %v5021_v14, %v1864_v36  ;;  %v6553_v27 = vld [vmem:[#allocation74_spill] sm:$0xff]  ;;  %2246 = vst [vmem:[%s5333_s12 + $0x160] sm:$0xff] %v2118_v11 }
 0x428   : > { %v1739_v49 = vmul.f32 %v6366_v62, %v6548_v59  ;;  %v2120_v48 = vmax.f32 %v1992_v0, 0.0  ;;  %v6552_v34 = vsub.f32 %v6551_v8, %v4064_v1  ;;  %v1869_v5 = vmul.f32 %v4620_v26, %v1737_v9  ;;  %v6555_v8 = vld [vmem:[#allocation75_spill] sm:$0xff] }
 0x429   : > { %v1740_v58 = vmul.f32 %v6366_v62, %v6550_v13  ;;  %v1997_v40 = vadd.f32 %v5021_v14, %v1865_v51  ;;  %v2121_v59 = vmax.f32 %v1993_v41, 0.0  ;;  %v6554_v37 = vsub.f32 %v6553_v27, %v4064_v1  ;;  %2247 = vst [vmem:[%s5333_s12 + $0x168] sm:$0xff] %v2119_v28 }
 0x42a   : > { %v1741_v47 = vmul.f32 %v6366_v62, %v6552_v34  ;;  %v1870_v0 = vmul.f32 %v4620_v26, %v1738_v17  ;;  %v1998_v10 = vadd.f32 %v5021_v14, %v1866_v50  ;;  %v2122_v13 = vmax.f32 %v1994_v55, 0.0  ;;  %2248 = vst [vmem:[%s5333_s12 + $0x170] sm:$0xff] %v2120_v48 }
 0x42b   : > { %v1742_v36 = vmul.f32 %v6366_v62, %v6554_v37  ;;  %v6556_v9 = vsub.f32 %v6555_v8, %v4064_v1  ;;  %v1871_v41 = vmul.f32 %v4620_v26, %v1739_v49  ;;  %v1999_v29 = vadd.f32 %v5021_v14, %v1867_v18  ;;  %2249 = vst [vmem:[%s5333_s12 + $0x178] sm:$0xff] %v2121_v59 }
 0x42c   : > { %v2123_v34 = vmax.f32 %v1995_v53, 0.0  ;;  %v6557_v17 = vsub.f32 %v6392_v63, %v4064_v1  ;;  %v1872_v55 = vmul.f32 %v4620_v26, %v1740_v58  ;;  %v2000_v11 = vadd.f32 %v5021_v14, %v1868_v39  ;;  %2250 = vst [vmem:[%s5333_s12 + $0x180] sm:$0xff] %v2122_v13 }
 0x42d   : > { %v1743_v51 = vmul.f32 %v6366_v62, %v6556_v9  ;;  %v2124_v27 = vmax.f32 %v1996_v22, 0.0  ;;  %v1873_v49 = vmul.f32 %v4620_v26, %v1741_v47  ;;  %v2001_v37 = vadd.f32 %v5021_v14, %v1869_v5 }
 0x42e   : > { %v1744_v50 = vmul.f32 %v6366_v62, %v6557_v17  ;;  %v2125_v18 = vmax.f32 %v1997_v40, 0.0  ;;  %v1874_v53 = vmul.f32 %v4620_v26, %v1742_v36  ;;  %v2002_v1 = vadd.f32 %v5021_v14, %v1870_v0  ;;  %2251 = vst [vmem:[%s5333_s12 + $0x188] sm:$0xff] %v2123_v34 }
 0x42f   : > { %v2126_v62 = vmax.f32 %v1998_v10, 0.0  ;;  %v1875_v63 = vmul.f32 %v4620_v26, %v1743_v51  ;;  %v2003_v28 = vadd.f32 %v5021_v14, %v1871_v41  ;;  %v2127_v58 = vmax.f32 %v1999_v29, 0.0  ;;  %2252 = vst [vmem:[%s5333_s12 + $0x190] sm:$0xff] %v2124_v27  ;;  %v6561_v27 = vld [vmem:[#allocation15_spill] sm:$0xff] }
 0x430   : > { %v1876_v39 = vmul.f32 %v4620_v26, %v1744_v50  ;;  %v2004_v22 = vadd.f32 %v5021_v14, %v1872_v55  ;;  %v2128_v48 = vmax.f32 %v2000_v11, 0.0  ;;  %v2005_v47 = vadd.f32 %v5021_v14, %v1873_v49  ;;  %2253 = vst [vmem:[%s5333_s12 + $0x198] sm:$0xff] %v2125_v18  ;;  %v6558_v50 = vld [vmem:[#allocation14_spill] sm:$0xff]  ;;  %v6560_v11 = vld [vmem:[#allocation11_spill] sm:$0xff]  ;;  %v6562_v49 = vld [vmem:[#allocation16_spill] sm:$0xff] }
 0x431   : > { %v2129_v5 = vmax.f32 %v2001_v37, 0.0  ;;  %v2006_v40 = vadd.f32 %v5021_v14, %v1874_v53  ;;  %v2130_v59 = vmax.f32 %v2002_v1, 0.0  ;;  %2254 = vst [vmem:[%s5333_s12 + $0x1a0] sm:$0xff] %v2126_v62  ;;  %v2007_v36 = vadd.f32 %v5021_v14, %v1875_v63  ;;  %v6559_v55 = vld [vmem:[#allocation2_spill] sm:$0xff]  ;;  %v6563_v37 = vld [vmem:[#allocation17_spill] sm:$0xff]  ;;  %v6565_v62 = vld [vmem:[#allocation20_spill] sm:$0xff] }
 0x432   : > { %v2131_v26 = vmax.f32 %v2003_v28, 0.0  ;;  %2255 = vst [vmem:[%s5333_s12 + $0x1a8] sm:$0xff] %v2127_v58  ;;  %v2008_v0 = vadd.f32 %v5021_v14, %v1876_v39  ;;  %v2132_v10 = vmax.f32 %v2004_v22, 0.0  ;;  %v2133_v13 = vmax.f32 %v2005_v47, 0.0  ;;  %v6564_v53 = vld [vmem:[#allocation18_spill] sm:$0xff]  ;;  %v6566_v28 = vld [vmem:[#allocation21_spill] sm:$0xff] }
 0x433   : > { %2256 = vst [vmem:[%s5333_s12 + $0x1b0] sm:$0xff] %v2128_v48  ;;  %v2134_v8 = vmax.f32 %v2006_v40, 0.0  ;;  %v2135_v9 = vmax.f32 %v2007_v36, 0.0  ;;  %v2137_v41 = vmax.f32 %v5087_v45, 0.0  ;;  %v2138_v14 = vmax.f32 %v5091_v54, 0.0  ;;  %v6567_v39 = vld [vmem:[#allocation22_spill] sm:$0xff] }
 0x434   : > { %2257 = vst [vmem:[%s5333_s12 + $0x1b8] sm:$0xff] %v2129_v5  ;;  %v2136_v51 = vmax.f32 %v2008_v0, 0.0  ;;  %v2139_v29 = vmax.f32 %v5095_v33, 0.0  ;;  %v2140_v34 = vmax.f32 %v5099_v46, 0.0  ;;  %v2141_v17 = vmax.f32 %v5103_v2, 0.0  ;;  %v6568_v48 = vld [vmem:[#allocation23_spill] sm:$0xff] }
 0x435   : > { %2258 = vst [vmem:[%s5333_s12 + $0x1c0] sm:$0xff] %v2130_v59  ;;  %v2142_v45 = vmax.f32 %v5107_v21, 0.0  ;;  %v2143_v54 = vmax.f32 %v5111_v60, 0.0  ;;  %v2144_v33 = vmax.f32 %v5115_v7, 0.0  ;;  %v2145_v46 = vmax.f32 %v5119_v23, 0.0  ;;  %v6569_v5 = vld [vmem:[#allocation24_spill] sm:$0xff] }
 0x436   : > { %2259 = vst [vmem:[%s5333_s12 + $0x1c8] sm:$0xff] %v2131_v26  ;;  %v2146_v2 = vmax.f32 %v5123_v16, 0.0  ;;  %v2147_v21 = vmax.f32 %v5127_v61, 0.0  ;;  %v2148_v60 = vmax.f32 %v5131_v6, 0.0  ;;  %v2149_v7 = vmax.f32 %v5135_v35, 0.0  ;;  %v6570_v59 = vld [vmem:[#allocation76_spill] sm:$0xff] }
 0x437   : > { %2260 = vst [vmem:[%s5333_s12 + $0x1d0] sm:$0xff] %v2132_v10  ;;  %v2150_v23 = vmax.f32 %v5139_v57, 0.0  ;;  %v2151_v16 = vmax.f32 %v5143_v3, 0.0  ;;  %v2152_v61 = vmax.f32 %v5147_v42, 0.0  ;;  %v2153_v6 = vmax.f32 %v5151_v12, 0.0  ;;  %v6571_v26 = vld [vmem:[#allocation25_spill] sm:$0xff] }
 0x438   : > { %2261 = vst [vmem:[%s5333_s12 + $0x1d8] sm:$0xff] %v2133_v13  ;;  %v2154_v35 = vmax.f32 %v5155_v4, 0.0  ;;  %v2155_v57 = vmax.f32 %v5159_v15, 0.0  ;;  %v2156_v3 = vmax.f32 %v5163_v20, 0.0  ;;  %v2157_v42 = vmax.f32 %v5167_v25, 0.0  ;;  %v6572_v10 = vld [vmem:[#allocation26_spill] sm:$0xff] }
 0x439   : > { %2262 = vst [vmem:[%s5333_s12 + $0x1e0] sm:$0xff] %v2134_v8  ;;  %v2158_v12 = vmax.f32 %v5171_v31, 0.0  ;;  %v2159_v4 = vmax.f32 %v5175_v43, 0.0  ;;  %v2160_v15 = vmax.f32 %v5179_v30, 0.0  ;;  %v2161_v20 = vmax.f32 %v5183_v24, 0.0  ;;  %v6573_v8 = vld [vmem:[#allocation27_spill] sm:$0xff] }
 0x43a   : > { %2263 = vst [vmem:[%s5333_s12 + $0x1e8] sm:$0xff] %v2135_v9  ;;  %v2162_v25 = vmax.f32 %v5187_v19, 0.0  ;;  %v2163_v31 = vmax.f32 %v5191_v38, 0.0  ;;  %v2164_v43 = vmax.f32 %v5195_v44, 0.0  ;;  %v2165_v30 = vmax.f32 %v5199_v56, 0.0 }
 0x43b   : > { %2264 = vst [vmem:[%s5333_s12 + $0x1f0] sm:$0xff] %v2136_v51  ;;  %v2166_v24 = vmax.f32 %v5203_v52, 0.0  ;;  %v2167_v19 = vmax.f32 %v5207_v32, 0.0  ;;  %v2168_v38 = vmax.f32 %v6558_v50, 0.0  ;;  %v2169_v44 = vmax.f32 %v6559_v55, 0.0  ;;  %v6574_v51 = vld [vmem:[#allocation28_spill] sm:$0xff] }
 0x43c   : > { %2265 = vst [vmem:[%s5333_s12 + $0x1f8] sm:$0xff] %v2137_v41  ;;  %v2170_v56 = vmax.f32 %v6560_v11, 0.0  ;;  %v2171_v52 = vmax.f32 %v6561_v27, 0.0  ;;  %v2172_v32 = vmax.f32 %v6562_v49, 0.0  ;;  %v2173_v18 = vmax.f32 %v6563_v37, 0.0  ;;  %v6590_v50 = vld [vmem:[#allocation8_spill] sm:$0xff] }
 0x43d   : > { %2266 = vst [vmem:[%s5333_s12 + $0x200] sm:$0xff] %v2138_v14  ;;  %v2174_v1 = vmax.f32 %v6564_v53, 0.0  ;;  %v2175_v63 = vmax.f32 %v6565_v62, 0.0  ;;  %v2176_v58 = vmax.f32 %v6566_v28, 0.0  ;;  %v2177_v22 = vmax.f32 %v6567_v39, 0.0  ;;  %v6575_v14 = vld [vmem:[#allocation79_spill] sm:$0xff] }
 0x43e   : > { %2267 = vst [vmem:[%s5333_s12 + $0x208] sm:$0xff] %v2139_v29  ;;  %v2178_v47 = vmax.f32 %v6568_v48, 0.0  ;;  %v2179_v40 = vmax.f32 %v6569_v5, 0.0  ;;  %v2180_v36 = vmax.f32 %v6570_v59, 0.0  ;;  %v2181_v0 = vmax.f32 %v6571_v26, 0.0  ;;  %v6591_v55 = vld [vmem:[#allocation90_spill] sm:$0xff] }
 0x43f   : > { %2268 = vst [vmem:[%s5333_s12 + $0x210] sm:$0xff] %v2140_v34  ;;  %v2182_v13 = vmax.f32 %v6572_v10, 0.0  ;;  %v2183_v9 = vmax.f32 %v6573_v8, 0.0  ;;  %v2184_v41 = vmax.f32 %v6574_v51, 0.0  ;;  %v2185_v29 = vmax.f32 %v6575_v14, 0.0  ;;  %v6576_v34 = vld [vmem:[#allocation80_spill] sm:$0xff] }
 0x440   : > { %2269 = vst [vmem:[%s5333_s12 + $0x218] sm:$0xff] %v2141_v17  ;;  %v2186_v17 = vmax.f32 %v6576_v34, 0.0 }
 0x441   : > { %2270 = vst [vmem:[%s5333_s12 + $0x220] sm:$0xff] %v2142_v45  ;;  %v6577_v45 = vld [vmem:[#allocation81_spill] sm:$0xff] }
 0x442   : > { %2271 = vst [vmem:[%s5333_s12 + $0x228] sm:$0xff] %v2143_v54  ;;  %v2187_v54 = vmax.f32 %v6577_v45, 0.0 }
 0x443   : > { %2272 = vst [vmem:[%s5333_s12 + $0x230] sm:$0xff] %v2144_v33  ;;  %v6578_v33 = vld [vmem:[#allocation82_spill] sm:$0xff] }
 0x444   : > { %2273 = vst [vmem:[%s5333_s12 + $0x238] sm:$0xff] %v2145_v46  ;;  %v2188_v46 = vmax.f32 %v6578_v33, 0.0 }
 0x445   : > { %2274 = vst [vmem:[%s5333_s12 + $0x240] sm:$0xff] %v2146_v2  ;;  %v6579_v2 = vld [vmem:[#allocation83_spill] sm:$0xff] }
 0x446   : > { %2275 = vst [vmem:[%s5333_s12 + $0x248] sm:$0xff] %v2147_v21  ;;  %v2189_v21 = vmax.f32 %v6579_v2, 0.0 }
 0x447   : > { %2276 = vst [vmem:[%s5333_s12 + $0x250] sm:$0xff] %v2148_v60  ;;  %v6580_v60 = vld [vmem:[#allocation84_spill] sm:$0xff] }
 0x448   : > { %2277 = vst [vmem:[%s5333_s12 + $0x258] sm:$0xff] %v2149_v7  ;;  %v2190_v7 = vmax.f32 %v6580_v60, 0.0 }
 0x449   : > { %2278 = vst [vmem:[%s5333_s12 + $0x260] sm:$0xff] %v2150_v23  ;;  %v6581_v23 = vld [vmem:[#allocation77_spill] sm:$0xff] }
 0x44a   : > { %2279 = vst [vmem:[%s5333_s12 + $0x268] sm:$0xff] %v2151_v16  ;;  %v2191_v16 = vmax.f32 %v6581_v23, 0.0 }
 0x44b   : > { %2280 = vst [vmem:[%s5333_s12 + $0x270] sm:$0xff] %v2152_v61  ;;  %v6582_v61 = vld [vmem:[#allocation3_spill] sm:$0xff] }
 0x44c   : > { %2281 = vst [vmem:[%s5333_s12 + $0x278] sm:$0xff] %v2153_v6  ;;  %v2192_v6 = vmax.f32 %v6582_v61, 0.0 }
 0x44d   : > { %2282 = vst [vmem:[%s5333_s12 + $0x280] sm:$0xff] %v2154_v35  ;;  %v6583_v35 = vld [vmem:[#allocation5_spill] sm:$0xff] }
 0x44e   : > { %2283 = vst [vmem:[%s5333_s12 + $0x288] sm:$0xff] %v2155_v57  ;;  %v2193_v57 = vmax.f32 %v6583_v35, 0.0 }
 0x44f   : > { %2284 = vst [vmem:[%s5333_s12 + $0x290] sm:$0xff] %v2156_v3  ;;  %v6584_v3 = vld [vmem:[#allocation7_spill] sm:$0xff] }
 0x450   : > { %2285 = vst [vmem:[%s5333_s12 + $0x298] sm:$0xff] %v2157_v42  ;;  %v2194_v42 = vmax.f32 %v6584_v3, 0.0 }
 0x451   : > { %2286 = vst [vmem:[%s5333_s12 + $0x2a0] sm:$0xff] %v2158_v12  ;;  %v6585_v12 = vld [vmem:[#allocation9_spill] sm:$0xff] }
 0x452   : > { %2287 = vst [vmem:[%s5333_s12 + $0x2a8] sm:$0xff] %v2159_v4  ;;  %v2195_v4 = vmax.f32 %v6585_v12, 0.0 }
 0x453   : > { %2288 = vst [vmem:[%s5333_s12 + $0x2b0] sm:$0xff] %v2160_v15  ;;  %v6586_v15 = vld [vmem:[#allocation12_spill] sm:$0xff] }
 0x454   : > { %2289 = vst [vmem:[%s5333_s12 + $0x2b8] sm:$0xff] %v2161_v20  ;;  %v2196_v20 = vmax.f32 %v6586_v15, 0.0 }
 0x455   : > { %2290 = vst [vmem:[%s5333_s12 + $0x2c0] sm:$0xff] %v2162_v25  ;;  %v6587_v25 = vld [vmem:[#allocation19_spill] sm:$0xff] }
 0x456   : > { %2291 = vst [vmem:[%s5333_s12 + $0x2c8] sm:$0xff] %v2163_v31  ;;  %v2197_v31 = vmax.f32 %v6587_v25, 0.0 }
 0x457   : > { %2292 = vst [vmem:[%s5333_s12 + $0x2d0] sm:$0xff] %v2164_v43  ;;  %v6588_v43 = vld [vmem:[#allocation4_spill] sm:$0xff] }
 0x458   : > { %2293 = vst [vmem:[%s5333_s12 + $0x2d8] sm:$0xff] %v2165_v30  ;;  %v2198_v30 = vmax.f32 %v6588_v43, 0.0 }
 0x459   : > { %2294 = vst [vmem:[%s5333_s12 + $0x2e0] sm:$0xff] %v2166_v24  ;;  %v6589_v24 = vld [vmem:[#allocation6_spill] sm:$0xff] }
 0x45a   : > { %2295 = vst [vmem:[%s5333_s12 + $0x2e8] sm:$0xff] %v2167_v19  ;;  %v2199_v19 = vmax.f32 %v6589_v24, 0.0 }
 0x45b   : > { %2296 = vst [vmem:[%s5333_s12 + $0x2f0] sm:$0xff] %v2168_v38  ;;  %v2200_v38 = vmax.f32 %v6590_v50, 0.0 }
 0x45c   : > { %2297 = vst [vmem:[%s5333_s12 + $0x2f8] sm:$0xff] %v2169_v44  ;;  %v2201_v44 = vmax.f32 %v6591_v55, 0.0 }
 0x45d   : > { %2298 = vst [vmem:[%s5333_s12 + $0x300] sm:$0xff] %v2170_v56 }
 0x45e   : > { %2299 = vst [vmem:[%s5333_s12 + $0x308] sm:$0xff] %v2171_v52 }
 0x45f   : > { %2300 = vst [vmem:[%s5333_s12 + $0x310] sm:$0xff] %v2172_v32 }
 0x460   : > { %2301 = vst [vmem:[%s5333_s12 + $0x318] sm:$0xff] %v2173_v18 }
 0x461   : > { %2302 = vst [vmem:[%s5333_s12 + $0x320] sm:$0xff] %v2174_v1 }
 0x462   : > { %2303 = vst [vmem:[%s5333_s12 + $0x328] sm:$0xff] %v2175_v63 }
 0x463   : > { %2304 = vst [vmem:[%s5333_s12 + $0x330] sm:$0xff] %v2176_v58 }
 0x464   : > { %2305 = vst [vmem:[%s5333_s12 + $0x338] sm:$0xff] %v2177_v22 }
 0x465   : > { %2306 = vst [vmem:[%s5333_s12 + $0x340] sm:$0xff] %v2178_v47 }
 0x466   : > { %2307 = vst [vmem:[%s5333_s12 + $0x348] sm:$0xff] %v2179_v40 }
 0x467   : > { %2308 = vst [vmem:[%s5333_s12 + $0x350] sm:$0xff] %v2180_v36 }
 0x468   : > { %2309 = vst [vmem:[%s5333_s12 + $0x358] sm:$0xff] %v2181_v0 }
 0x469   : > { %2310 = vst [vmem:[%s5333_s12 + $0x360] sm:$0xff] %v2182_v13 }
 0x46a   : > { %2311 = vst [vmem:[%s5333_s12 + $0x368] sm:$0xff] %v2183_v9 }
 0x46b   : > { %2312 = vst [vmem:[%s5333_s12 + $0x370] sm:$0xff] %v2184_v41 }
 0x46c   : > { %2313 = vst [vmem:[%s5333_s12 + $0x378] sm:$0xff] %v2185_v29 }
 0x46d   : > { %2314 = vst [vmem:[%s5333_s12 + $0x380] sm:$0xff] %v2186_v17 }
 0x46e   : > { %2315 = vst [vmem:[%s5333_s12 + $0x388] sm:$0xff] %v2187_v54 }
 0x46f   : > { %2316 = vst [vmem:[%s5333_s12 + $0x390] sm:$0xff] %v2188_v46 }
 0x470   : > { %2317 = vst [vmem:[%s5333_s12 + $0x398] sm:$0xff] %v2189_v21 }
 0x471   : > { %2318 = vst [vmem:[%s5333_s12 + $0x3a0] sm:$0xff] %v2190_v7 }
 0x472   : > { %2319 = vst [vmem:[%s5333_s12 + $0x3a8] sm:$0xff] %v2191_v16 }
 0x473   : > { %2320 = vst [vmem:[%s5333_s12 + $0x3b0] sm:$0xff] %v2192_v6 }
 0x474   : > { %2321 = vst [vmem:[%s5333_s12 + $0x3b8] sm:$0xff] %v2193_v57 }
 0x475   : > { %2322 = vst [vmem:[%s5333_s12 + $0x3c0] sm:$0xff] %v2194_v42 }
 0x476   : > { %2323 = vst [vmem:[%s5333_s12 + $0x3c8] sm:$0xff] %v2195_v4 }
 0x477   : > { %2324 = vst [vmem:[%s5333_s12 + $0x3d0] sm:$0xff] %v2196_v20 }
 0x478   : > { %2325 = vst [vmem:[%s5333_s12 + $0x3d8] sm:$0xff] %v2197_v31 }
 0x479   : > { %2326 = vst [vmem:[%s5333_s12 + $0x3e0] sm:$0xff] %v2198_v30 }
 0x47a   : > { %2327 = vst [vmem:[%s5333_s12 + $0x3e8] sm:$0xff] %v2199_v19 }
 0x47b   : > { %2328 = vst [vmem:[%s5333_s12 + $0x3f0] sm:$0xff] %v2200_v38 }
 0x47c   : > { %2329 = vst [vmem:[%s5333_s12 + $0x3f8] sm:$0xff] %v2201_v44 }
 0x47d PF: > { %s15_s18 = sadd.s32 1, %s2809_s18  }
 0x47e   : > { %p12_p4 = scmp.ge.s32.totalorder %s15_s18, 4  }
 0x480   :  { %14 = sbr.rel (!%p12_p4) target bundleno = 1 (0x1), region = 70 }

</bundles_post_ra>
